<compile_context>
chip_gen: v7x
topology: tpu7x:2x2x1
jax: 0.10.0
libtpu: 0.0.40
codegen_flags: <defaults>
</compile_context>

<pallas_src>
import functools

import jax
import jax.numpy as jnp
from jax.experimental import pallas as pl
from jax.experimental.pallas import tpu as pltpu

EPS = 1e-5
K = 3
STRIDE = 2
PAD = 1
MAX_TILE_N = 8192                       # lane-dim tile cap (multiple of 128)
TILE_BUDGET_BYTES = 24 * 1024 * 1024    # budget for double-buffered I/O tiles
VMEM_LIMIT = 48 * 1024 * 1024           # safe on v5e/v6e (128 MiB) and v7x (64 MiB)

# (C_in, C_out, output_padding, H_out) per ConvTranspose2d layer; H_out values
# come from the output_size=(.., .., 2/4/7/14/28, ..) arguments in forward().
LAYERS = [
    (128, 128, 1, 2),
    (128, 64, 1, 4),
    (64, 32, 0, 7),
    (32, 16, 1, 14),
    (16, 1, 1, 28),
]


def _round_up(x, m):
    return (x + m - 1) // m * m


def _col_tile(npix, kkc, cout):
    """Budget-driven lane tile: 2 bufs x bf16 (patch kkc + out cout) per lane."""
    per_lane_bytes = 4 * (kkc + cout)
    cap = max(TILE_BUDGET_BYTES // per_lane_bytes, 128)
    cap = min(cap // 128 * 128, MAX_TILE_N)
    return min(_round_up(npix, 128), cap)


# ----------------------------- Pallas kernels -------------------------------
def _fused_convt_bn_relu_kernel(w_ref, p_ref, g_ref, b_ref, o_ref,
                                y_scr, sum_ref, ssq_ref, *, inv_n):
    """Fused ConvT-matmul + BatchNorm(batch stats) + ReLU, grid=(2, ntiles).

    Phase 0 (program_id(0)==0): y = W @ P per Npix tile (MXU, bf16 in / f32
    acc) stored into the resident VMEM scratch; per-channel sum / sum-of-
    squares accumulated in f32.  Conv bias is omitted (cancelled exactly by
    the mean subtraction); zero-padded Npix columns contribute exactly zero.

    Phase 1: BN scale/shift from the accumulated stats (biased variance,
    one-pass E[x^2]-E[x]^2) + ReLU, written lane-dense as bf16.
    """
    phase = pl.program_id(0)
    i = pl.program_id(1)

    @pl.when((phase == 0) & (i == 0))
    def _():
        sum_ref[...] = jnp.zeros_like(sum_ref)
        ssq_ref[...] = jnp.zeros_like(ssq_ref)

    @pl.when(phase == 0)
    def _():
        y = jnp.dot(w_ref[...], p_ref[...], preferred_element_type=jnp.float32)
        y_scr[i] = y
        sum_ref[...] += jnp.sum(y, axis=1, keepdims=True)
        ssq_ref[...] += jnp.sum(y * y, axis=1, keepdims=True)

    @pl.when(phase == 1)
    def _():
        mean = sum_ref[...] * inv_n                     # (Cout, 1)
        var = ssq_ref[...] * inv_n - mean * mean        # biased, one-pass
        scale = g_ref[...] * jax.lax.rsqrt(var + EPS)
        shift = b_ref[...] - mean * scale
        o_ref[...] = jnp.maximum(y_scr[i] * scale + shift, 0.0).astype(o_ref.dtype)


def _matmul_bias_sigmoid_kernel(w_ref, b_ref, p_ref, o_ref):
    """Final layer: matmul + bias + sigmoid (exp + EUP approx reciprocal)."""
    y = jnp.dot(w_ref[...], p_ref[...], preferred_element_type=jnp.float32)
    y = y + b_ref[...]
    d = 1.0 + jnp.exp(-y)
    # approx reciprocal runs on the otherwise-idle EUP slot; clip keeps the
    # output exactly inside sigmoid's (0,1) range despite the approximation.
    o_ref[...] = jnp.clip(pl.reciprocal(d, approx=True), 0.0, 1.0)


# ------------------------------ JAX glue ------------------------------------
def _upsample_and_pad(x_cbhw, out_pad):
    """Zero-insert (stride 2) + pad so ConvTranspose2d == valid conv w/ flipped kernel."""
    c, b, h, w = x_cbhw.shape
    hu = (h - 1) * STRIDE + 1
    wu = (w - 1) * STRIDE + 1
    ups = jnp.zeros((c, b, hu, wu), x_cbhw.dtype)
    ups = ups.at[:, :, ::STRIDE, ::STRIDE].set(x_cbhw)
    pb = K - 1 - PAD
    pa = K - 1 - PAD + out_pad
    return jnp.pad(ups, ((0, 0), (0, 0), (pb, pa), (pb, pa)))


def _im2col_t(xpad, ho, wo):
    """Transposed im2col on channel-major input:
    (C,B,Hp,Wp) -> (K*K*C, B*ho*wo); rows ordered (kh,kw,c) -- no transposes."""
    c, b = xpad.shape[0], xpad.shape[1]
    taps = []
    for kh in range(K):
        for kw in range(K):
            t = xpad[:, :, kh:kh + ho, kw:kw + wo]       # (C,B,ho,wo)
            taps.append(t.reshape(c, b * ho * wo))
    return jnp.concatenate(taps, axis=0)                 # (K*K*C, Npix)


def _prep_patches(x_cbhw, opad, ho, kkc, cout_rows):
    b = x_cbhw.shape[1]
    xpad = _upsample_and_pad(x_cbhw, opad)
    patches = _im2col_t(xpad, ho, ho)                    # bf16
    npix = b * ho * ho
    tn = _col_tile(npix, kkc, cout_rows)
    npad = _round_up(npix, tn)
    patches = jnp.pad(patches, ((0, 0), (0, npad - npix)))   # exact zeros
    return patches, npix, npad, tn


# --------------------------- per-layer wrappers ------------------------------
def _convt_bn_relu(x_cbhw, w_t, gamma, beta, opad, ho):
    b = x_cbhw.shape[1]
    cout, kkc = w_t.shape
    patches, npix, npad, tn = _prep_patches(x_cbhw, opad, ho, kkc, cout)
    ntiles = npad // tn

    # Patch tiles stream in phase 0 only; in phase 1 the index map stays on the
    # last tile so no re-fetch DMA is issued.  Output blocks are only advanced
    # (and therefore only written back) during phase 1.
    act = pl.pallas_call(
        functools.partial(_fused_convt_bn_relu_kernel, inv_n=1.0 / float(npix)),
        out_shape=jax.ShapeDtypeStruct((cout, npad), jnp.bfloat16),
        grid=(2, ntiles),
        in_specs=[
            pl.BlockSpec((cout, kkc), lambda p, i: (0, 0)),              # weights resident
            pl.BlockSpec((kkc, tn),
                         lambda p, i: (0, i * (1 - p) + (ntiles - 1) * p)),
            pl.BlockSpec((cout, 1), lambda p, i: (0, 0)),                # gamma
            pl.BlockSpec((cout, 1), lambda p, i: (0, 0)),                # beta
        ],
        out_specs=pl.BlockSpec((cout, tn), lambda p, i: (0, i * p)),
        scratch_shapes=[
            pltpu.VMEM((ntiles, cout, tn), jnp.float32),                 # whole y
            pltpu.VMEM((cout, 1), jnp.float32),                          # sum
            pltpu.VMEM((cout, 1), jnp.float32),                          # sumsq
        ],
        compiler_params=pltpu.CompilerParams(
            dimension_semantics=("arbitrary", "arbitrary"),
            vmem_limit_bytes=VMEM_LIMIT),
    )(w_t, patches, gamma, beta)

    act = act[:, :npix]
    return act.reshape(cout, b, ho, ho)                  # channel-major (C,B,H,W)


def _convt_sigmoid(x_cbhw, w_t, bias, opad, ho):
    b = x_cbhw.shape[1]
    cout, kkc = w_t.shape
    # Sublane-pad tiny Cout (=1) to a full group of 8 for clean MXU/store shapes.
    cpad = max(_round_up(cout, 8), 8)
    patches, npix, npad, tn = _prep_patches(x_cbhw, opad, ho, kkc, cpad)
    ntiles = npad // tn

    w_p = jnp.pad(w_t, ((0, cpad - cout), (0, 0)))
    b_p = jnp.pad(bias, ((0, cpad - cout), (0, 0)))

    y = pl.pallas_call(
        _matmul_bias_sigmoid_kernel,
        out_shape=jax.ShapeDtypeStruct((cpad, npad), jnp.float32),
        grid=(ntiles,),
        in_specs=[pl.BlockSpec((cpad, kkc), lambda i: (0, 0)),
                  pl.BlockSpec((cpad, 1), lambda i: (0, 0)),
                  pl.BlockSpec((kkc, tn), lambda i: (0, i))],
        out_specs=pl.BlockSpec((cpad, tn), lambda i: (0, i)),
        compiler_params=pltpu.CompilerParams(
            dimension_semantics=("parallel",), vmem_limit_bytes=VMEM_LIMIT),
    )(w_p, b_p, patches)

    y = y[:cout, :npix]
    return y.reshape(cout, b, ho, ho)                    # channel-major f32


# -------------------------------- params -------------------------------------
def init_params(key):
    """Deterministic synthetic parameters.

    ConvTranspose2d weights use the PyTorch layout (Cin, Cout, kH, kW); they are
    flipped spatially and re-laid-out as a lane-dense (Cout, K*K*Cin) bf16 slab
    (column order kh, kw, cin) matching the transposed im2col.  BatchNorm
    gamma/beta use PyTorch's default init (ones / zeros), stored as (Cout, 1).
    """
    params = []
    for (cin, cout, _, _) in LAYERS:
        key, kw_, kb_ = jax.random.split(key, 3)
        wt = jax.random.normal(kw_, (cin, cout, K, K), jnp.float32) * 0.05
        bias = jax.random.normal(kb_, (cout,), jnp.float32) * 0.05
        w_t = jnp.transpose(wt[:, :, ::-1, ::-1], (1, 2, 3, 0)).reshape(cout, K * K * cin)
        params.append((w_t.astype(jnp.bfloat16),
                       bias.reshape(cout, 1),                     # f32
                       jnp.ones((cout, 1), jnp.float32),          # gamma
                       jnp.zeros((cout, 1), jnp.float32)))        # beta
    return params


def decoder_forward(x_nchw, params):
    """Equivalent of Decoder(Type='DAE').forward: x [B,128,1,1] -> [B,1,28,28]."""
    # NCHW -> channel-major CBHW once at entry; layers stay channel-major.
    out = jnp.transpose(x_nchw, (1, 0, 2, 3)).astype(jnp.bfloat16)
    for li, ((_, _, opad, ho), (w_t, bias, gamma, beta)) in enumerate(zip(LAYERS, params)):
        if li < len(LAYERS) - 1:
            # Conv bias omitted: exactly cancelled by BatchNorm mean subtraction.
            out = _convt_bn_relu(out, w_t, gamma, beta, opad, ho)
        else:
            out = _convt_sigmoid(out, w_t, bias, opad, ho)
    return jnp.transpose(out, (1, 0, 2, 3))              # CBHW -> NCHW


if __name__ == "__main__":
    key = jax.random.PRNGKey(0)
    key, kx = jax.random.split(key)
    # Small batch (2) instead of the hard-coded 64 in output_size; same semantics.
    x = jax.random.normal(kx, (2, 128, 1, 1), jnp.float32)
    params = init_params(key)

    fwd = jax.jit(decoder_forward)
    y = jax.block_until_ready(fwd(x, params))

    assert y.shape == (2, 1, 28, 28), y.shape
    assert bool(jnp.all(jnp.isfinite(y)))
    assert bool(jnp.all((y >= 0.0) & (y <= 1.0)))   # sigmoid output range
    print("KERNEL_OK")
</pallas_src>

<mosaic_0001>
module attributes {stable_mosaic.version = 11 : i64} {
  func.func @_fused_convt_bn_relu_kernel(%arg0: i32, %arg1: i32, %arg2: memref<128x1152xbf16, #tpu.memory_space<vmem>>, %arg3: memref<1152x128xbf16, #tpu.memory_space<vmem>>, %arg4: memref<128x1xf32, #tpu.memory_space<vmem>>, %arg5: memref<128x1xf32, #tpu.memory_space<vmem>>, %arg6: memref<128x128xbf16, #tpu.memory_space<vmem>>, %arg7: memref<1x128x128xf32, #tpu.memory_space<vmem>>, %arg8: memref<128x1xf32, #tpu.memory_space<vmem>>, %arg9: memref<128x1xf32, #tpu.memory_space<vmem>>) attributes {dimension_semantics = [#tpu.dimension_semantics<arbitrary>, #tpu.dimension_semantics<arbitrary>], iteration_bounds = array<i64: 2, 1>, scalar_prefetch = 0 : i64, scratch_operands = 3 : i64, tpu.core_type = #tpu.core_type<tc>, window_params = [{pipeline_mode = #tpu.pipeline_mode<synchronous>, transform_indices = @transform_0, window_bounds = array<i64: 128, 1152>}, {transform_indices = @transform_1, window_bounds = array<i64: 1152, 128>}, {pipeline_mode = #tpu.pipeline_mode<synchronous>, transform_indices = @transform_2, window_bounds = array<i64: 128, 1>}, {pipeline_mode = #tpu.pipeline_mode<synchronous>, transform_indices = @transform_3, window_bounds = array<i64: 128, 1>}, {transform_indices = @transform_4, window_bounds = array<i64: 128, 128>}]} {
    %c0_i32 = arith.constant 0 : i32
    %0 = arith.cmpi eq, %arg0, %c0_i32 : i32
    %c0_i32_0 = arith.constant 0 : i32
    %1 = arith.cmpi eq, %arg1, %c0_i32_0 : i32
    %2 = arith.andi %0, %1 : i1
    %3 = arith.extui %2 : i1 to i32
    %c0_i32_1 = arith.constant 0 : i32
    %4 = arith.cmpi ne, %3, %c0_i32_1 : i32
    scf.if %4 {
      %cst = arith.constant 0.000000e+00 : f32
      %11 = vector.broadcast %cst : f32 to vector<128x1xf32>
      %c0 = arith.constant 0 : index
      %c0_5 = arith.constant 0 : index
      %12 = vector.load %arg8[%c0, %c0_5] : memref<128x1xf32, #tpu.memory_space<vmem>>, vector<128x1xf32>
      tpu.vector_store %arg8[%c0, %c0_5], %11 {strides = array<i32>} : memref<128x1xf32, #tpu.memory_space<vmem>>, vector<128x1xf32>,
      %cst_6 = arith.constant 0.000000e+00 : f32
      %13 = vector.broadcast %cst_6 : f32 to vector<128x1xf32>
      %c0_7 = arith.constant 0 : index
      %c0_8 = arith.constant 0 : index
      %14 = vector.load %arg9[%c0_7, %c0_8] : memref<128x1xf32, #tpu.memory_space<vmem>>, vector<128x1xf32>
      tpu.vector_store %arg9[%c0_7, %c0_8], %13 {strides = array<i32>} : memref<128x1xf32, #tpu.memory_space<vmem>>, vector<128x1xf32>,
    } else {
    }
    %c0_i32_2 = arith.constant 0 : i32
    %5 = arith.cmpi eq, %arg0, %c0_i32_2 : i32
    %6 = arith.extui %5 : i1 to i32
    %c0_i32_3 = arith.constant 0 : i32
    %7 = arith.cmpi ne, %6, %c0_i32_3 : i32
    scf.if %7 {
      %c0 = arith.constant 0 : index
      %c0_5 = arith.constant 0 : index
      %11 = vector.load %arg2[%c0, %c0_5] : memref<128x1152xbf16, #tpu.memory_space<vmem>>, vector<128x1152xbf16>
      %c0_6 = arith.constant 0 : index
      %c0_7 = arith.constant 0 : index
      %12 = vector.load %arg3[%c0_6, %c0_7] : memref<1152x128xbf16, #tpu.memory_space<vmem>>, vector<1152x128xbf16>
      %cst = arith.constant dense<0.000000e+00> : vector<128x128xf32>
      %13 = tpu.matmul %11, %12, %cst {dimension_numbers = #tpu.dot_dimension_numbers<[1], [0], [0], [1], [0, 0, 1, 1], [], []>} : vector<128x1152xbf16>, vector<1152x128xbf16>, vector<128x128xf32> -> vector<128x128xf32>
      %14 = arith.index_cast %arg1 : i32 to index
      %c0_8 = arith.constant 0 : index
      %c0_9 = arith.constant 0 : index
      %15 = vector.load %arg7[%14, %c0_8, %c0_9] : memref<1x128x128xf32, #tpu.memory_space<vmem>>, vector<1x128x128xf32>
      %16 = vector.shape_cast %15 : vector<1x128x128xf32> to vector<128x128xf32>
      %17 = vector.shape_cast %13 : vector<128x128xf32> to vector<1x128x128xf32>
      tpu.vector_store %arg7[%14, %c0_8, %c0_9], %17 {strides = array<i32>} : memref<1x128x128xf32, #tpu.memory_space<vmem>>, vector<1x128x128xf32>,
      %c0_10 = arith.constant 0 : index
      %c0_11 = arith.constant 0 : index
      %18 = vector.load %arg8[%c0_10, %c0_11] : memref<128x1xf32, #tpu.memory_space<vmem>>, vector<128x1xf32>
      %cst_12 = arith.constant dense<0.000000e+00> : vector<128xf32>
      %19 = vector.multi_reduction <add>, %13, %cst_12 [1] : vector<128x128xf32> to vector<128xf32>
      %20 = vector.shape_cast %19 : vector<128xf32> to vector<128x1xf32>
      %21 = arith.addf %18, %20 : vector<128x1xf32>
      %c0_13 = arith.constant 0 : index
      %c0_14 = arith.constant 0 : index
      %22 = vector.load %arg8[%c0_13, %c0_14] : memref<128x1xf32, #tpu.memory_space<vmem>>, vector<128x1xf32>
      tpu.vector_store %arg8[%c0_13, %c0_14], %21 {strides = array<i32>} : memref<128x1xf32, #tpu.memory_space<vmem>>, vector<128x1xf32>,
      %c0_15 = arith.constant 0 : index
      %c0_16 = arith.constant 0 : index
      %23 = vector.load %arg9[%c0_15, %c0_16] : memref<128x1xf32, #tpu.memory_space<vmem>>, vector<128x1xf32>
      %24 = arith.mulf %13, %13 : vector<128x128xf32>
      %cst_17 = arith.constant dense<0.000000e+00> : vector<128xf32>
      %25 = vector.multi_reduction <add>, %24, %cst_17 [1] : vector<128x128xf32> to vector<128xf32>
      %26 = vector.shape_cast %25 : vector<128xf32> to vector<128x1xf32>
      %27 = arith.addf %23, %26 : vector<128x1xf32>
      %c0_18 = arith.constant 0 : index
      %c0_19 = arith.constant 0 : index
      %28 = vector.load %arg9[%c0_18, %c0_19] : memref<128x1xf32, #tpu.memory_space<vmem>>, vector<128x1xf32>
      tpu.vector_store %arg9[%c0_18, %c0_19], %27 {strides = array<i32>} : memref<128x1xf32, #tpu.memory_space<vmem>>, vector<128x1xf32>,
    } else {
    }
    %c1_i32 = arith.constant 1 : i32
    %8 = arith.cmpi eq, %arg0, %c1_i32 : i32
    %9 = arith.extui %8 : i1 to i32
    %c0_i32_4 = arith.constant 0 : i32
    %10 = arith.cmpi ne, %9, %c0_i32_4 : i32
    scf.if %10 {
      %c0 = arith.constant 0 : index
      %c0_5 = arith.constant 0 : index
      %11 = vector.load %arg8[%c0, %c0_5] : memref<128x1xf32, #tpu.memory_space<vmem>>, vector<128x1xf32>
      %cst = arith.constant 1.250000e-01 : f32
      %12 = vector.broadcast %cst : f32 to vector<128x1xf32>
      %13 = arith.mulf %11, %12 : vector<128x1xf32>
      %c0_6 = arith.constant 0 : index
      %c0_7 = arith.constant 0 : index
      %14 = vector.load %arg9[%c0_6, %c0_7] : memref<128x1xf32, #tpu.memory_space<vmem>>, vector<128x1xf32>
      %cst_8 = arith.constant 1.250000e-01 : f32
      %15 = vector.broadcast %cst_8 : f32 to vector<128x1xf32>
      %16 = arith.mulf %14, %15 : vector<128x1xf32>
      %17 = arith.mulf %13, %13 : vector<128x1xf32>
      %18 = arith.subf %16, %17 : vector<128x1xf32>
      %c0_9 = arith.constant 0 : index
      %c0_10 = arith.constant 0 : index
      %19 = vector.load %arg4[%c0_9, %c0_10] : memref<128x1xf32, #tpu.memory_space<vmem>>, vector<128x1xf32>
      %cst_11 = arith.constant 9.99999974E-6 : f32
      %20 = vector.broadcast %cst_11 : f32 to vector<128x1xf32>
      %21 = arith.addf %18, %20 : vector<128x1xf32>
      %22 = math.rsqrt %21 : vector<128x1xf32>
      %23 = arith.mulf %19, %22 : vector<128x1xf32>
      %c0_12 = arith.constant 0 : index
      %c0_13 = arith.constant 0 : index
      %24 = vector.load %arg5[%c0_12, %c0_13] : memref<128x1xf32, #tpu.memory_space<vmem>>, vector<128x1xf32>
      %25 = arith.mulf %13, %23 : vector<128x1xf32>
      %26 = arith.subf %24, %25 : vector<128x1xf32>
      %27 = arith.index_cast %arg1 : i32 to index
      %c0_14 = arith.constant 0 : index
      %c0_15 = arith.constant 0 : index
      %28 = vector.load %arg7[%27, %c0_14, %c0_15] : memref<1x128x128xf32, #tpu.memory_space<vmem>>, vector<1x128x128xf32>
      %29 = vector.shape_cast %28 : vector<1x128x128xf32> to vector<128x128xf32>
      %30 = vector.broadcast %23 : vector<128x1xf32> to vector<128x128xf32>
      %31 = arith.mulf %29, %30 : vector<128x128xf32>
      %32 = vector.broadcast %26 : vector<128x1xf32> to vector<128x128xf32>
      %33 = arith.addf %31, %32 : vector<128x128xf32>
      %cst_16 = arith.constant 0.000000e+00 : f32
      %34 = vector.broadcast %cst_16 : f32 to vector<128x128xf32>
      %35 = arith.maximumf %33, %34 : vector<128x128xf32>
      %36 = arith.truncf %35 : vector<128x128xf32> to vector<128x128xbf16>
      %c0_17 = arith.constant 0 : index
      %c0_18 = arith.constant 0 : index
      %37 = vector.load %arg6[%c0_17, %c0_18] : memref<128x128xbf16, #tpu.memory_space<vmem>>, vector<128x128xbf16>
      tpu.vector_store %arg6[%c0_17, %c0_18], %36 {strides = array<i32>} : memref<128x128xbf16, #tpu.memory_space<vmem>>, vector<128x128xbf16>,
    } else {
    }
    return
  }
  func.func @transform_0(%arg0: i32, %arg1: i32) -> (i32, i32) {
    %c0_i32 = arith.constant 0 : i32
    %c0_i32_0 = arith.constant 0 : i32
    %c0_i32_1 = arith.constant 0 : i32
    return %c0_i32, %c0_i32_0 : i32, i32
  }
  func.func @transform_1(%arg0: i32, %arg1: i32) -> (i32, i32) {
    %c1_i32 = arith.constant 1 : i32
    %0 = arith.subi %c1_i32, %arg0 : i32
    %1 = arith.muli %arg1, %0 : i32
    %c0_i32 = arith.constant 0 : i32
    %2 = arith.muli %c0_i32, %arg0 : i32
    %3 = arith.addi %1, %2 : i32
    %c0_i32_0 = arith.constant 0 : i32
    %c0_i32_1 = arith.constant 0 : i32
    return %c0_i32_0, %3 : i32, i32
  }
  func.func @transform_2(%arg0: i32, %arg1: i32) -> (i32, i32) {
    %c0_i32 = arith.constant 0 : i32
    %c0_i32_0 = arith.constant 0 : i32
    %c0_i32_1 = arith.constant 0 : i32
    return %c0_i32, %c0_i32_0 : i32, i32
  }
  func.func @transform_3(%arg0: i32, %arg1: i32) -> (i32, i32) {
    %c0_i32 = arith.constant 0 : i32
    %c0_i32_0 = arith.constant 0 : i32
    %c0_i32_1 = arith.constant 0 : i32
    return %c0_i32, %c0_i32_0 : i32, i32
  }
  func.func @transform_4(%arg0: i32, %arg1: i32) -> (i32, i32) {
    %0 = arith.muli %arg1, %arg0 : i32
    %c0_i32 = arith.constant 0 : i32
    %c0_i32_0 = arith.constant 0 : i32
    return %c0_i32, %0 : i32, i32
  }
}

module attributes {stable_mosaic.version = 11 : i64} {
  func.func @_fused_convt_bn_relu_kernel(%arg0: i32, %arg1: i32, %arg2: memref<64x1152xbf16, #tpu.memory_space<vmem>>, %arg3: memref<1152x128xbf16, #tpu.memory_space<vmem>>, %arg4: memref<64x1xf32, #tpu.memory_space<vmem>>, %arg5: memref<64x1xf32, #tpu.memory_space<vmem>>, %arg6: memref<64x128xbf16, #tpu.memory_space<vmem>>, %arg7: memref<1x64x128xf32, #tpu.memory_space<vmem>>, %arg8: memref<64x1xf32, #tpu.memory_space<vmem>>, %arg9: memref<64x1xf32, #tpu.memory_space<vmem>>) attributes {dimension_semantics = [#tpu.dimension_semantics<arbitrary>, #tpu.dimension_semantics<arbitrary>], iteration_bounds = array<i64: 2, 1>, scalar_prefetch = 0 : i64, scratch_operands = 3 : i64, tpu.core_type = #tpu.core_type<tc>, window_params = [{pipeline_mode = #tpu.pipeline_mode<synchronous>, transform_indices = @transform_0, window_bounds = array<i64: 64, 1152>}, {transform_indices = @transform_1, window_bounds = array<i64: 1152, 128>}, {pipeline_mode = #tpu.pipeline_mode<synchronous>, transform_indices = @transform_2, window_bounds = array<i64: 64, 1>}, {pipeline_mode = #tpu.pipeline_mode<synchronous>, transform_indices = @transform_3, window_bounds = array<i64: 64, 1>}, {transform_indices = @transform_4, window_bounds = array<i64: 64, 128>}]} {
    %c0_i32 = arith.constant 0 : i32
    %0 = arith.cmpi eq, %arg0, %c0_i32 : i32
    %c0_i32_0 = arith.constant 0 : i32
    %1 = arith.cmpi eq, %arg1, %c0_i32_0 : i32
    %2 = arith.andi %0, %1 : i1
    %3 = arith.extui %2 : i1 to i32
    %c0_i32_1 = arith.constant 0 : i32
    %4 = arith.cmpi ne, %3, %c0_i32_1 : i32
    scf.if %4 {
      %cst = arith.constant 0.000000e+00 : f32
      %11 = vector.broadcast %cst : f32 to vector<64x1xf32>
      %c0 = arith.constant 0 : index
      %c0_5 = arith.constant 0 : index
      %12 = vector.load %arg8[%c0, %c0_5] : memref<64x1xf32, #tpu.memory_space<vmem>>, vector<64x1xf32>
      tpu.vector_store %arg8[%c0, %c0_5], %11 {strides = array<i32>} : memref<64x1xf32, #tpu.memory_space<vmem>>, vector<64x1xf32>,
      %cst_6 = arith.constant 0.000000e+00 : f32
      %13 = vector.broadcast %cst_6 : f32 to vector<64x1xf32>
      %c0_7 = arith.constant 0 : index
      %c0_8 = arith.constant 0 : index
      %14 = vector.load %arg9[%c0_7, %c0_8] : memref<64x1xf32, #tpu.memory_space<vmem>>, vector<64x1xf32>
      tpu.vector_store %arg9[%c0_7, %c0_8], %13 {strides = array<i32>} : memref<64x1xf32, #tpu.memory_space<vmem>>, vector<64x1xf32>,
    } else {
    }
    %c0_i32_2 = arith.constant 0 : i32
    %5 = arith.cmpi eq, %arg0, %c0_i32_2 : i32
    %6 = arith.extui %5 : i1 to i32
    %c0_i32_3 = arith.constant 0 : i32
    %7 = arith.cmpi ne, %6, %c0_i32_3 : i32
    scf.if %7 {
      %c0 = arith.constant 0 : index
      %c0_5 = arith.constant 0 : index
      %11 = vector.load %arg2[%c0, %c0_5] : memref<64x1152xbf16, #tpu.memory_space<vmem>>, vector<64x1152xbf16>
      %c0_6 = arith.constant 0 : index
      %c0_7 = arith.constant 0 : index
      %12 = vector.load %arg3[%c0_6, %c0_7] : memref<1152x128xbf16, #tpu.memory_space<vmem>>, vector<1152x128xbf16>
      %cst = arith.constant dense<0.000000e+00> : vector<64x128xf32>
      %13 = tpu.matmul %11, %12, %cst {dimension_numbers = #tpu.dot_dimension_numbers<[1], [0], [0], [1], [0, 0, 1, 1], [], []>} : vector<64x1152xbf16>, vector<1152x128xbf16>, vector<64x128xf32> -> vector<64x128xf32>
      %14 = arith.index_cast %arg1 : i32 to index
      %c0_8 = arith.constant 0 : index
      %c0_9 = arith.constant 0 : index
      %15 = vector.load %arg7[%14, %c0_8, %c0_9] : memref<1x64x128xf32, #tpu.memory_space<vmem>>, vector<1x64x128xf32>
      %16 = vector.shape_cast %15 : vector<1x64x128xf32> to vector<64x128xf32>
      %17 = vector.shape_cast %13 : vector<64x128xf32> to vector<1x64x128xf32>
      tpu.vector_store %arg7[%14, %c0_8, %c0_9], %17 {strides = array<i32>} : memref<1x64x128xf32, #tpu.memory_space<vmem>>, vector<1x64x128xf32>,
      %c0_10 = arith.constant 0 : index
      %c0_11 = arith.constant 0 : index
      %18 = vector.load %arg8[%c0_10, %c0_11] : memref<64x1xf32, #tpu.memory_space<vmem>>, vector<64x1xf32>
      %cst_12 = arith.constant dense<0.000000e+00> : vector<64xf32>
      %19 = vector.multi_reduction <add>, %13, %cst_12 [1] : vector<64x128xf32> to vector<64xf32>
      %20 = vector.shape_cast %19 : vector<64xf32> to vector<64x1xf32>
      %21 = arith.addf %18, %20 : vector<64x1xf32>
      %c0_13 = arith.constant 0 : index
      %c0_14 = arith.constant 0 : index
      %22 = vector.load %arg8[%c0_13, %c0_14] : memref<64x1xf32, #tpu.memory_space<vmem>>, vector<64x1xf32>
      tpu.vector_store %arg8[%c0_13, %c0_14], %21 {strides = array<i32>} : memref<64x1xf32, #tpu.memory_space<vmem>>, vector<64x1xf32>,
      %c0_15 = arith.constant 0 : index
      %c0_16 = arith.constant 0 : index
      %23 = vector.load %arg9[%c0_15, %c0_16] : memref<64x1xf32, #tpu.memory_space<vmem>>, vector<64x1xf32>
      %24 = arith.mulf %13, %13 : vector<64x128xf32>
      %cst_17 = arith.constant dense<0.000000e+00> : vector<64xf32>
      %25 = vector.multi_reduction <add>, %24, %cst_17 [1] : vector<64x128xf32> to vector<64xf32>
      %26 = vector.shape_cast %25 : vector<64xf32> to vector<64x1xf32>
      %27 = arith.addf %23, %26 : vector<64x1xf32>
      %c0_18 = arith.constant 0 : index
      %c0_19 = arith.constant 0 : index
      %28 = vector.load %arg9[%c0_18, %c0_19] : memref<64x1xf32, #tpu.memory_space<vmem>>, vector<64x1xf32>
      tpu.vector_store %arg9[%c0_18, %c0_19], %27 {strides = array<i32>} : memref<64x1xf32, #tpu.memory_space<vmem>>, vector<64x1xf32>,
    } else {
    }
    %c1_i32 = arith.constant 1 : i32
    %8 = arith.cmpi eq, %arg0, %c1_i32 : i32
    %9 = arith.extui %8 : i1 to i32
    %c0_i32_4 = arith.constant 0 : i32
    %10 = arith.cmpi ne, %9, %c0_i32_4 : i32
    scf.if %10 {
      %c0 = arith.constant 0 : index
      %c0_5 = arith.constant 0 : index
      %11 = vector.load %arg8[%c0, %c0_5] : memref<64x1xf32, #tpu.memory_space<vmem>>, vector<64x1xf32>
      %cst = arith.constant 3.125000e-02 : f32
      %12 = vector.broadcast %cst : f32 to vector<64x1xf32>
      %13 = arith.mulf %11, %12 : vector<64x1xf32>
      %c0_6 = arith.constant 0 : index
      %c0_7 = arith.constant 0 : index
      %14 = vector.load %arg9[%c0_6, %c0_7] : memref<64x1xf32, #tpu.memory_space<vmem>>, vector<64x1xf32>
      %cst_8 = arith.constant 3.125000e-02 : f32
      %15 = vector.broadcast %cst_8 : f32 to vector<64x1xf32>
      %16 = arith.mulf %14, %15 : vector<64x1xf32>
      %17 = arith.mulf %13, %13 : vector<64x1xf32>
      %18 = arith.subf %16, %17 : vector<64x1xf32>
      %c0_9 = arith.constant 0 : index
      %c0_10 = arith.constant 0 : index
      %19 = vector.load %arg4[%c0_9, %c0_10] : memref<64x1xf32, #tpu.memory_space<vmem>>, vector<64x1xf32>
      %cst_11 = arith.constant 9.99999974E-6 : f32
      %20 = vector.broadcast %cst_11 : f32 to vector<64x1xf32>
      %21 = arith.addf %18, %20 : vector<64x1xf32>
      %22 = math.rsqrt %21 : vector<64x1xf32>
      %23 = arith.mulf %19, %22 : vector<64x1xf32>
      %c0_12 = arith.constant 0 : index
      %c0_13 = arith.constant 0 : index
      %24 = vector.load %arg5[%c0_12, %c0_13] : memref<64x1xf32, #tpu.memory_space<vmem>>, vector<64x1xf32>
      %25 = arith.mulf %13, %23 : vector<64x1xf32>
      %26 = arith.subf %24, %25 : vector<64x1xf32>
      %27 = arith.index_cast %arg1 : i32 to index
      %c0_14 = arith.constant 0 : index
      %c0_15 = arith.constant 0 : index
      %28 = vector.load %arg7[%27, %c0_14, %c0_15] : memref<1x64x128xf32, #tpu.memory_space<vmem>>, vector<1x64x128xf32>
      %29 = vector.shape_cast %28 : vector<1x64x128xf32> to vector<64x128xf32>
      %30 = vector.broadcast %23 : vector<64x1xf32> to vector<64x128xf32>
      %31 = arith.mulf %29, %30 : vector<64x128xf32>
      %32 = vector.broadcast %26 : vector<64x1xf32> to vector<64x128xf32>
      %33 = arith.addf %31, %32 : vector<64x128xf32>
      %cst_16 = arith.constant 0.000000e+00 : f32
      %34 = vector.broadcast %cst_16 : f32 to vector<64x128xf32>
      %35 = arith.maximumf %33, %34 : vector<64x128xf32>
      %36 = arith.truncf %35 : vector<64x128xf32> to vector<64x128xbf16>
      %c0_17 = arith.constant 0 : index
      %c0_18 = arith.constant 0 : index
      %37 = vector.load %arg6[%c0_17, %c0_18] : memref<64x128xbf16, #tpu.memory_space<vmem>>, vector<64x128xbf16>
      tpu.vector_store %arg6[%c0_17, %c0_18], %36 {strides = array<i32>} : memref<64x128xbf16, #tpu.memory_space<vmem>>, vector<64x128xbf16>,
    } else {
    }
    return
  }
  func.func @transform_0(%arg0: i32, %arg1: i32) -> (i32, i32) {
    %c0_i32 = arith.constant 0 : i32
    %c0_i32_0 = arith.constant 0 : i32
    %c0_i32_1 = arith.constant 0 : i32
    return %c0_i32, %c0_i32_0 : i32, i32
  }
  func.func @transform_1(%arg0: i32, %arg1: i32) -> (i32, i32) {
    %c1_i32 = arith.constant 1 : i32
    %0 = arith.subi %c1_i32, %arg0 : i32
    %1 = arith.muli %arg1, %0 : i32
    %c0_i32 = arith.constant 0 : i32
    %2 = arith.muli %c0_i32, %arg0 : i32
    %3 = arith.addi %1, %2 : i32
    %c0_i32_0 = arith.constant 0 : i32
    %c0_i32_1 = arith.constant 0 : i32
    return %c0_i32_0, %3 : i32, i32
  }
  func.func @transform_2(%arg0: i32, %arg1: i32) -> (i32, i32) {
    %c0_i32 = arith.constant 0 : i32
    %c0_i32_0 = arith.constant 0 : i32
    %c0_i32_1 = arith.constant 0 : i32
    return %c0_i32, %c0_i32_0 : i32, i32
  }
  func.func @transform_3(%arg0: i32, %arg1: i32) -> (i32, i32) {
    %c0_i32 = arith.constant 0 : i32
    %c0_i32_0 = arith.constant 0 : i32
    %c0_i32_1 = arith.constant 0 : i32
    return %c0_i32, %c0_i32_0 : i32, i32
  }
  func.func @transform_4(%arg0: i32, %arg1: i32) -> (i32, i32) {
    %0 = arith.muli %arg1, %arg0 : i32
    %c0_i32 = arith.constant 0 : i32
    %c0_i32_0 = arith.constant 0 : i32
    return %c0_i32, %0 : i32, i32
  }
}

module attributes {stable_mosaic.version = 11 : i64} {
  func.func @_fused_convt_bn_relu_kernel(%arg0: i32, %arg1: i32, %arg2: memref<32x576xbf16, #tpu.memory_space<vmem>>, %arg3: memref<576x128xbf16, #tpu.memory_space<vmem>>, %arg4: memref<32x1xf32, #tpu.memory_space<vmem>>, %arg5: memref<32x1xf32, #tpu.memory_space<vmem>>, %arg6: memref<32x128xbf16, #tpu.memory_space<vmem>>, %arg7: memref<1x32x128xf32, #tpu.memory_space<vmem>>, %arg8: memref<32x1xf32, #tpu.memory_space<vmem>>, %arg9: memref<32x1xf32, #tpu.memory_space<vmem>>) attributes {dimension_semantics = [#tpu.dimension_semantics<arbitrary>, #tpu.dimension_semantics<arbitrary>], iteration_bounds = array<i64: 2, 1>, scalar_prefetch = 0 : i64, scratch_operands = 3 : i64, tpu.core_type = #tpu.core_type<tc>, window_params = [{pipeline_mode = #tpu.pipeline_mode<synchronous>, transform_indices = @transform_0, window_bounds = array<i64: 32, 576>}, {transform_indices = @transform_1, window_bounds = array<i64: 576, 128>}, {pipeline_mode = #tpu.pipeline_mode<synchronous>, transform_indices = @transform_2, window_bounds = array<i64: 32, 1>}, {pipeline_mode = #tpu.pipeline_mode<synchronous>, transform_indices = @transform_3, window_bounds = array<i64: 32, 1>}, {transform_indices = @transform_4, window_bounds = array<i64: 32, 128>}]} {
    %c0_i32 = arith.constant 0 : i32
    %0 = arith.cmpi eq, %arg0, %c0_i32 : i32
    %c0_i32_0 = arith.constant 0 : i32
    %1 = arith.cmpi eq, %arg1, %c0_i32_0 : i32
    %2 = arith.andi %0, %1 : i1
    %3 = arith.extui %2 : i1 to i32
    %c0_i32_1 = arith.constant 0 : i32
    %4 = arith.cmpi ne, %3, %c0_i32_1 : i32
    scf.if %4 {
      %cst = arith.constant 0.000000e+00 : f32
      %11 = vector.broadcast %cst : f32 to vector<32x1xf32>
      %c0 = arith.constant 0 : index
      %c0_5 = arith.constant 0 : index
      %12 = vector.load %arg8[%c0, %c0_5] : memref<32x1xf32, #tpu.memory_space<vmem>>, vector<32x1xf32>
      tpu.vector_store %arg8[%c0, %c0_5], %11 {strides = array<i32>} : memref<32x1xf32, #tpu.memory_space<vmem>>, vector<32x1xf32>,
      %cst_6 = arith.constant 0.000000e+00 : f32
      %13 = vector.broadcast %cst_6 : f32 to vector<32x1xf32>
      %c0_7 = arith.constant 0 : index
      %c0_8 = arith.constant 0 : index
      %14 = vector.load %arg9[%c0_7, %c0_8] : memref<32x1xf32, #tpu.memory_space<vmem>>, vector<32x1xf32>
      tpu.vector_store %arg9[%c0_7, %c0_8], %13 {strides = array<i32>} : memref<32x1xf32, #tpu.memory_space<vmem>>, vector<32x1xf32>,
    } else {
    }
    %c0_i32_2 = arith.constant 0 : i32
    %5 = arith.cmpi eq, %arg0, %c0_i32_2 : i32
    %6 = arith.extui %5 : i1 to i32
    %c0_i32_3 = arith.constant 0 : i32
    %7 = arith.cmpi ne, %6, %c0_i32_3 : i32
    scf.if %7 {
      %c0 = arith.constant 0 : index
      %c0_5 = arith.constant 0 : index
      %11 = vector.load %arg2[%c0, %c0_5] : memref<32x576xbf16, #tpu.memory_space<vmem>>, vector<32x576xbf16>
      %c0_6 = arith.constant 0 : index
      %c0_7 = arith.constant 0 : index
      %12 = vector.load %arg3[%c0_6, %c0_7] : memref<576x128xbf16, #tpu.memory_space<vmem>>, vector<576x128xbf16>
      %cst = arith.constant dense<0.000000e+00> : vector<32x128xf32>
      %13 = tpu.matmul %11, %12, %cst {dimension_numbers = #tpu.dot_dimension_numbers<[1], [0], [0], [1], [0, 0, 1, 1], [], []>} : vector<32x576xbf16>, vector<576x128xbf16>, vector<32x128xf32> -> vector<32x128xf32>
      %14 = arith.index_cast %arg1 : i32 to index
      %c0_8 = arith.constant 0 : index
      %c0_9 = arith.constant 0 : index
      %15 = vector.load %arg7[%14, %c0_8, %c0_9] : memref<1x32x128xf32, #tpu.memory_space<vmem>>, vector<1x32x128xf32>
      %16 = vector.shape_cast %15 : vector<1x32x128xf32> to vector<32x128xf32>
      %17 = vector.shape_cast %13 : vector<32x128xf32> to vector<1x32x128xf32>
      tpu.vector_store %arg7[%14, %c0_8, %c0_9], %17 {strides = array<i32>} : memref<1x32x128xf32, #tpu.memory_space<vmem>>, vector<1x32x128xf32>,
      %c0_10 = arith.constant 0 : index
      %c0_11 = arith.constant 0 : index
      %18 = vector.load %arg8[%c0_10, %c0_11] : memref<32x1xf32, #tpu.memory_space<vmem>>, vector<32x1xf32>
      %cst_12 = arith.constant dense<0.000000e+00> : vector<32xf32>
      %19 = vector.multi_reduction <add>, %13, %cst_12 [1] : vector<32x128xf32> to vector<32xf32>
      %20 = vector.shape_cast %19 : vector<32xf32> to vector<32x1xf32>
      %21 = arith.addf %18, %20 : vector<32x1xf32>
      %c0_13 = arith.constant 0 : index
      %c0_14 = arith.constant 0 : index
      %22 = vector.load %arg8[%c0_13, %c0_14] : memref<32x1xf32, #tpu.memory_space<vmem>>, vector<32x1xf32>
      tpu.vector_store %arg8[%c0_13, %c0_14], %21 {strides = array<i32>} : memref<32x1xf32, #tpu.memory_space<vmem>>, vector<32x1xf32>,
      %c0_15 = arith.constant 0 : index
      %c0_16 = arith.constant 0 : index
      %23 = vector.load %arg9[%c0_15, %c0_16] : memref<32x1xf32, #tpu.memory_space<vmem>>, vector<32x1xf32>
      %24 = arith.mulf %13, %13 : vector<32x128xf32>
      %cst_17 = arith.constant dense<0.000000e+00> : vector<32xf32>
      %25 = vector.multi_reduction <add>, %24, %cst_17 [1] : vector<32x128xf32> to vector<32xf32>
      %26 = vector.shape_cast %25 : vector<32xf32> to vector<32x1xf32>
      %27 = arith.addf %23, %26 : vector<32x1xf32>
      %c0_18 = arith.constant 0 : index
      %c0_19 = arith.constant 0 : index
      %28 = vector.load %arg9[%c0_18, %c0_19] : memref<32x1xf32, #tpu.memory_space<vmem>>, vector<32x1xf32>
      tpu.vector_store %arg9[%c0_18, %c0_19], %27 {strides = array<i32>} : memref<32x1xf32, #tpu.memory_space<vmem>>, vector<32x1xf32>,
    } else {
    }
    %c1_i32 = arith.constant 1 : i32
    %8 = arith.cmpi eq, %arg0, %c1_i32 : i32
    %9 = arith.extui %8 : i1 to i32
    %c0_i32_4 = arith.constant 0 : i32
    %10 = arith.cmpi ne, %9, %c0_i32_4 : i32
    scf.if %10 {
      %c0 = arith.constant 0 : index
      %c0_5 = arith.constant 0 : index
      %11 = vector.load %arg8[%c0, %c0_5] : memref<32x1xf32, #tpu.memory_space<vmem>>, vector<32x1xf32>
      %cst = arith.constant 0.0102040814 : f32
      %12 = vector.broadcast %cst : f32 to vector<32x1xf32>
      %13 = arith.mulf %11, %12 : vector<32x1xf32>
      %c0_6 = arith.constant 0 : index
      %c0_7 = arith.constant 0 : index
      %14 = vector.load %arg9[%c0_6, %c0_7] : memref<32x1xf32, #tpu.memory_space<vmem>>, vector<32x1xf32>
      %cst_8 = arith.constant 0.0102040814 : f32
      %15 = vector.broadcast %cst_8 : f32 to vector<32x1xf32>
      %16 = arith.mulf %14, %15 : vector<32x1xf32>
      %17 = arith.mulf %13, %13 : vector<32x1xf32>
      %18 = arith.subf %16, %17 : vector<32x1xf32>
      %c0_9 = arith.constant 0 : index
      %c0_10 = arith.constant 0 : index
      %19 = vector.load %arg4[%c0_9, %c0_10] : memref<32x1xf32, #tpu.memory_space<vmem>>, vector<32x1xf32>
      %cst_11 = arith.constant 9.99999974E-6 : f32
      %20 = vector.broadcast %cst_11 : f32 to vector<32x1xf32>
      %21 = arith.addf %18, %20 : vector<32x1xf32>
      %22 = math.rsqrt %21 : vector<32x1xf32>
      %23 = arith.mulf %19, %22 : vector<32x1xf32>
      %c0_12 = arith.constant 0 : index
      %c0_13 = arith.constant 0 : index
      %24 = vector.load %arg5[%c0_12, %c0_13] : memref<32x1xf32, #tpu.memory_space<vmem>>, vector<32x1xf32>
      %25 = arith.mulf %13, %23 : vector<32x1xf32>
      %26 = arith.subf %24, %25 : vector<32x1xf32>
      %27 = arith.index_cast %arg1 : i32 to index
      %c0_14 = arith.constant 0 : index
      %c0_15 = arith.constant 0 : index
      %28 = vector.load %arg7[%27, %c0_14, %c0_15] : memref<1x32x128xf32, #tpu.memory_space<vmem>>, vector<1x32x128xf32>
      %29 = vector.shape_cast %28 : vector<1x32x128xf32> to vector<32x128xf32>
      %30 = vector.broadcast %23 : vector<32x1xf32> to vector<32x128xf32>
      %31 = arith.mulf %29, %30 : vector<32x128xf32>
      %32 = vector.broadcast %26 : vector<32x1xf32> to vector<32x128xf32>
      %33 = arith.addf %31, %32 : vector<32x128xf32>
      %cst_16 = arith.constant 0.000000e+00 : f32
      %34 = vector.broadcast %cst_16 : f32 to vector<32x128xf32>
      %35 = arith.maximumf %33, %34 : vector<32x128xf32>
      %36 = arith.truncf %35 : vector<32x128xf32> to vector<32x128xbf16>
      %c0_17 = arith.constant 0 : index
      %c0_18 = arith.constant 0 : index
      %37 = vector.load %arg6[%c0_17, %c0_18] : memref<32x128xbf16, #tpu.memory_space<vmem>>, vector<32x128xbf16>
      tpu.vector_store %arg6[%c0_17, %c0_18], %36 {strides = array<i32>} : memref<32x128xbf16, #tpu.memory_space<vmem>>, vector<32x128xbf16>,
    } else {
    }
    return
  }
  func.func @transform_0(%arg0: i32, %arg1: i32) -> (i32, i32) {
    %c0_i32 = arith.constant 0 : i32
    %c0_i32_0 = arith.constant 0 : i32
    %c0_i32_1 = arith.constant 0 : i32
    return %c0_i32, %c0_i32_0 : i32, i32
  }
  func.func @transform_1(%arg0: i32, %arg1: i32) -> (i32, i32) {
    %c1_i32 = arith.constant 1 : i32
    %0 = arith.subi %c1_i32, %arg0 : i32
    %1 = arith.muli %arg1, %0 : i32
    %c0_i32 = arith.constant 0 : i32
    %2 = arith.muli %c0_i32, %arg0 : i32
    %3 = arith.addi %1, %2 : i32
    %c0_i32_0 = arith.constant 0 : i32
    %c0_i32_1 = arith.constant 0 : i32
    return %c0_i32_0, %3 : i32, i32
  }
  func.func @transform_2(%arg0: i32, %arg1: i32) -> (i32, i32) {
    %c0_i32 = arith.constant 0 : i32
    %c0_i32_0 = arith.constant 0 : i32
    %c0_i32_1 = arith.constant 0 : i32
    return %c0_i32, %c0_i32_0 : i32, i32
  }
  func.func @transform_3(%arg0: i32, %arg1: i32) -> (i32, i32) {
    %c0_i32 = arith.constant 0 : i32
    %c0_i32_0 = arith.constant 0 : i32
    %c0_i32_1 = arith.constant 0 : i32
    return %c0_i32, %c0_i32_0 : i32, i32
  }
  func.func @transform_4(%arg0: i32, %arg1: i32) -> (i32, i32) {
    %0 = arith.muli %arg1, %arg0 : i32
    %c0_i32 = arith.constant 0 : i32
    %c0_i32_0 = arith.constant 0 : i32
    return %c0_i32, %0 : i32, i32
  }
}

module attributes {stable_mosaic.version = 11 : i64} {
  func.func @_fused_convt_bn_relu_kernel(%arg0: i32, %arg1: i32, %arg2: memref<16x288xbf16, #tpu.memory_space<vmem>>, %arg3: memref<288x512xbf16, #tpu.memory_space<vmem>>, %arg4: memref<16x1xf32, #tpu.memory_space<vmem>>, %arg5: memref<16x1xf32, #tpu.memory_space<vmem>>, %arg6: memref<16x512xbf16, #tpu.memory_space<vmem>>, %arg7: memref<1x16x512xf32, #tpu.memory_space<vmem>>, %arg8: memref<16x1xf32, #tpu.memory_space<vmem>>, %arg9: memref<16x1xf32, #tpu.memory_space<vmem>>) attributes {dimension_semantics = [#tpu.dimension_semantics<arbitrary>, #tpu.dimension_semantics<arbitrary>], iteration_bounds = array<i64: 2, 1>, scalar_prefetch = 0 : i64, scratch_operands = 3 : i64, tpu.core_type = #tpu.core_type<tc>, window_params = [{pipeline_mode = #tpu.pipeline_mode<synchronous>, transform_indices = @transform_0, window_bounds = array<i64: 16, 288>}, {transform_indices = @transform_1, window_bounds = array<i64: 288, 512>}, {pipeline_mode = #tpu.pipeline_mode<synchronous>, transform_indices = @transform_2, window_bounds = array<i64: 16, 1>}, {pipeline_mode = #tpu.pipeline_mode<synchronous>, transform_indices = @transform_3, window_bounds = array<i64: 16, 1>}, {transform_indices = @transform_4, window_bounds = array<i64: 16, 512>}]} {
    %c0_i32 = arith.constant 0 : i32
    %0 = arith.cmpi eq, %arg0, %c0_i32 : i32
    %c0_i32_0 = arith.constant 0 : i32
    %1 = arith.cmpi eq, %arg1, %c0_i32_0 : i32
    %2 = arith.andi %0, %1 : i1
    %3 = arith.extui %2 : i1 to i32
    %c0_i32_1 = arith.constant 0 : i32
    %4 = arith.cmpi ne, %3, %c0_i32_1 : i32
    scf.if %4 {
      %cst = arith.constant 0.000000e+00 : f32
      %11 = vector.broadcast %cst : f32 to vector<16x1xf32>
      %c0 = arith.constant 0 : index
      %c0_5 = arith.constant 0 : index
      %12 = vector.load %arg8[%c0, %c0_5] : memref<16x1xf32, #tpu.memory_space<vmem>>, vector<16x1xf32>
      tpu.vector_store %arg8[%c0, %c0_5], %11 {strides = array<i32>} : memref<16x1xf32, #tpu.memory_space<vmem>>, vector<16x1xf32>,
      %cst_6 = arith.constant 0.000000e+00 : f32
      %13 = vector.broadcast %cst_6 : f32 to vector<16x1xf32>
      %c0_7 = arith.constant 0 : index
      %c0_8 = arith.constant 0 : index
      %14 = vector.load %arg9[%c0_7, %c0_8] : memref<16x1xf32, #tpu.memory_space<vmem>>, vector<16x1xf32>
      tpu.vector_store %arg9[%c0_7, %c0_8], %13 {strides = array<i32>} : memref<16x1xf32, #tpu.memory_space<vmem>>, vector<16x1xf32>,
    } else {
    }
    %c0_i32_2 = arith.constant 0 : i32
    %5 = arith.cmpi eq, %arg0, %c0_i32_2 : i32
    %6 = arith.extui %5 : i1 to i32
    %c0_i32_3 = arith.constant 0 : i32
    %7 = arith.cmpi ne, %6, %c0_i32_3 : i32
    scf.if %7 {
      %c0 = arith.constant 0 : index
      %c0_5 = arith.constant 0 : index
      %11 = vector.load %arg2[%c0, %c0_5] : memref<16x288xbf16, #tpu.memory_space<vmem>>, vector<16x288xbf16>
      %c0_6 = arith.constant 0 : index
      %c0_7 = arith.constant 0 : index
      %12 = vector.load %arg3[%c0_6, %c0_7] : memref<288x512xbf16, #tpu.memory_space<vmem>>, vector<288x512xbf16>
      %cst = arith.constant dense<0.000000e+00> : vector<16x512xf32>
      %13 = tpu.matmul %11, %12, %cst {dimension_numbers = #tpu.dot_dimension_numbers<[1], [0], [0], [1], [0, 0, 1, 1], [], []>} : vector<16x288xbf16>, vector<288x512xbf16>, vector<16x512xf32> -> vector<16x512xf32>
      %14 = arith.index_cast %arg1 : i32 to index
      %c0_8 = arith.constant 0 : index
      %c0_9 = arith.constant 0 : index
      %15 = vector.load %arg7[%14, %c0_8, %c0_9] : memref<1x16x512xf32, #tpu.memory_space<vmem>>, vector<1x16x512xf32>
      %16 = vector.shape_cast %15 : vector<1x16x512xf32> to vector<16x512xf32>
      %17 = vector.shape_cast %13 : vector<16x512xf32> to vector<1x16x512xf32>
      tpu.vector_store %arg7[%14, %c0_8, %c0_9], %17 {strides = array<i32>} : memref<1x16x512xf32, #tpu.memory_space<vmem>>, vector<1x16x512xf32>,
      %c0_10 = arith.constant 0 : index
      %c0_11 = arith.constant 0 : index
      %18 = vector.load %arg8[%c0_10, %c0_11] : memref<16x1xf32, #tpu.memory_space<vmem>>, vector<16x1xf32>
      %cst_12 = arith.constant dense<0.000000e+00> : vector<16xf32>
      %19 = vector.multi_reduction <add>, %13, %cst_12 [1] : vector<16x512xf32> to vector<16xf32>
      %20 = vector.shape_cast %19 : vector<16xf32> to vector<16x1xf32>
      %21 = arith.addf %18, %20 : vector<16x1xf32>
      %c0_13 = arith.constant 0 : index
      %c0_14 = arith.constant 0 : index
      %22 = vector.load %arg8[%c0_13, %c0_14] : memref<16x1xf32, #tpu.memory_space<vmem>>, vector<16x1xf32>
      tpu.vector_store %arg8[%c0_13, %c0_14], %21 {strides = array<i32>} : memref<16x1xf32, #tpu.memory_space<vmem>>, vector<16x1xf32>,
      %c0_15 = arith.constant 0 : index
      %c0_16 = arith.constant 0 : index
      %23 = vector.load %arg9[%c0_15, %c0_16] : memref<16x1xf32, #tpu.memory_space<vmem>>, vector<16x1xf32>
      %24 = arith.mulf %13, %13 : vector<16x512xf32>
      %cst_17 = arith.constant dense<0.000000e+00> : vector<16xf32>
      %25 = vector.multi_reduction <add>, %24, %cst_17 [1] : vector<16x512xf32> to vector<16xf32>
      %26 = vector.shape_cast %25 : vector<16xf32> to vector<16x1xf32>
      %27 = arith.addf %23, %26 : vector<16x1xf32>
      %c0_18 = arith.constant 0 : index
      %c0_19 = arith.constant 0 : index
      %28 = vector.load %arg9[%c0_18, %c0_19] : memref<16x1xf32, #tpu.memory_space<vmem>>, vector<16x1xf32>
      tpu.vector_store %arg9[%c0_18, %c0_19], %27 {strides = array<i32>} : memref<16x1xf32, #tpu.memory_space<vmem>>, vector<16x1xf32>,
    } else {
    }
    %c1_i32 = arith.constant 1 : i32
    %8 = arith.cmpi eq, %arg0, %c1_i32 : i32
    %9 = arith.extui %8 : i1 to i32
    %c0_i32_4 = arith.constant 0 : i32
    %10 = arith.cmpi ne, %9, %c0_i32_4 : i32
    scf.if %10 {
      %c0 = arith.constant 0 : index
      %c0_5 = arith.constant 0 : index
      %11 = vector.load %arg8[%c0, %c0_5] : memref<16x1xf32, #tpu.memory_space<vmem>>, vector<16x1xf32>
      %cst = arith.constant 0.00255102036 : f32
      %12 = vector.broadcast %cst : f32 to vector<16x1xf32>
      %13 = arith.mulf %11, %12 : vector<16x1xf32>
      %c0_6 = arith.constant 0 : index
      %c0_7 = arith.constant 0 : index
      %14 = vector.load %arg9[%c0_6, %c0_7] : memref<16x1xf32, #tpu.memory_space<vmem>>, vector<16x1xf32>
      %cst_8 = arith.constant 0.00255102036 : f32
      %15 = vector.broadcast %cst_8 : f32 to vector<16x1xf32>
      %16 = arith.mulf %14, %15 : vector<16x1xf32>
      %17 = arith.mulf %13, %13 : vector<16x1xf32>
      %18 = arith.subf %16, %17 : vector<16x1xf32>
      %c0_9 = arith.constant 0 : index
      %c0_10 = arith.constant 0 : index
      %19 = vector.load %arg4[%c0_9, %c0_10] : memref<16x1xf32, #tpu.memory_space<vmem>>, vector<16x1xf32>
      %cst_11 = arith.constant 9.99999974E-6 : f32
      %20 = vector.broadcast %cst_11 : f32 to vector<16x1xf32>
      %21 = arith.addf %18, %20 : vector<16x1xf32>
      %22 = math.rsqrt %21 : vector<16x1xf32>
      %23 = arith.mulf %19, %22 : vector<16x1xf32>
      %c0_12 = arith.constant 0 : index
      %c0_13 = arith.constant 0 : index
      %24 = vector.load %arg5[%c0_12, %c0_13] : memref<16x1xf32, #tpu.memory_space<vmem>>, vector<16x1xf32>
      %25 = arith.mulf %13, %23 : vector<16x1xf32>
      %26 = arith.subf %24, %25 : vector<16x1xf32>
      %27 = arith.index_cast %arg1 : i32 to index
      %c0_14 = arith.constant 0 : index
      %c0_15 = arith.constant 0 : index
      %28 = vector.load %arg7[%27, %c0_14, %c0_15] : memref<1x16x512xf32, #tpu.memory_space<vmem>>, vector<1x16x512xf32>
      %29 = vector.shape_cast %28 : vector<1x16x512xf32> to vector<16x512xf32>
      %30 = vector.broadcast %23 : vector<16x1xf32> to vector<16x512xf32>
      %31 = arith.mulf %29, %30 : vector<16x512xf32>
      %32 = vector.broadcast %26 : vector<16x1xf32> to vector<16x512xf32>
      %33 = arith.addf %31, %32 : vector<16x512xf32>
      %cst_16 = arith.constant 0.000000e+00 : f32
      %34 = vector.broadcast %cst_16 : f32 to vector<16x512xf32>
      %35 = arith.maximumf %33, %34 : vector<16x512xf32>
      %36 = arith.truncf %35 : vector<16x512xf32> to vector<16x512xbf16>
      %c0_17 = arith.constant 0 : index
      %c0_18 = arith.constant 0 : index
      %37 = vector.load %arg6[%c0_17, %c0_18] : memref<16x512xbf16, #tpu.memory_space<vmem>>, vector<16x512xbf16>
      tpu.vector_store %arg6[%c0_17, %c0_18], %36 {strides = array<i32>} : memref<16x512xbf16, #tpu.memory_space<vmem>>, vector<16x512xbf16>,
    } else {
    }
    return
  }
  func.func @transform_0(%arg0: i32, %arg1: i32) -> (i32, i32) {
    %c0_i32 = arith.constant 0 : i32
    %c0_i32_0 = arith.constant 0 : i32
    %c0_i32_1 = arith.constant 0 : i32
    return %c0_i32, %c0_i32_0 : i32, i32
  }
  func.func @transform_1(%arg0: i32, %arg1: i32) -> (i32, i32) {
    %c1_i32 = arith.constant 1 : i32
    %0 = arith.subi %c1_i32, %arg0 : i32
    %1 = arith.muli %arg1, %0 : i32
    %c0_i32 = arith.constant 0 : i32
    %2 = arith.muli %c0_i32, %arg0 : i32
    %3 = arith.addi %1, %2 : i32
    %c0_i32_0 = arith.constant 0 : i32
    %c0_i32_1 = arith.constant 0 : i32
    return %c0_i32_0, %3 : i32, i32
  }
  func.func @transform_2(%arg0: i32, %arg1: i32) -> (i32, i32) {
    %c0_i32 = arith.constant 0 : i32
    %c0_i32_0 = arith.constant 0 : i32
    %c0_i32_1 = arith.constant 0 : i32
    return %c0_i32, %c0_i32_0 : i32, i32
  }
  func.func @transform_3(%arg0: i32, %arg1: i32) -> (i32, i32) {
    %c0_i32 = arith.constant 0 : i32
    %c0_i32_0 = arith.constant 0 : i32
    %c0_i32_1 = arith.constant 0 : i32
    return %c0_i32, %c0_i32_0 : i32, i32
  }
  func.func @transform_4(%arg0: i32, %arg1: i32) -> (i32, i32) {
    %0 = arith.muli %arg1, %arg0 : i32
    %c0_i32 = arith.constant 0 : i32
    %c0_i32_0 = arith.constant 0 : i32
    return %c0_i32, %0 : i32, i32
  }
}

module attributes {stable_mosaic.version = 11 : i64} {
  func.func @_matmul_bias_sigmoid_kernel(%arg0: i32, %arg1: memref<8x144xbf16, #tpu.memory_space<vmem>>, %arg2: memref<8x1xf32, #tpu.memory_space<vmem>>, %arg3: memref<144x1664xbf16, #tpu.memory_space<vmem>>, %arg4: memref<8x1664xf32, #tpu.memory_space<vmem>>) attributes {dimension_semantics = [#tpu.dimension_semantics<parallel>], iteration_bounds = array<i64: 1>, scalar_prefetch = 0 : i64, scratch_operands = 0 : i64, tpu.core_type = #tpu.core_type<tc>, window_params = [{pipeline_mode = #tpu.pipeline_mode<synchronous>, transform_indices = @transform_0, window_bounds = array<i64: 8, 144>}, {pipeline_mode = #tpu.pipeline_mode<synchronous>, transform_indices = @transform_1, window_bounds = array<i64: 8, 1>}, {transform_indices = @transform_2, window_bounds = array<i64: 144, 1664>}, {transform_indices = @transform_3, window_bounds = array<i64: 8, 1664>}]} {
    %c0 = arith.constant 0 : index
    %c0_0 = arith.constant 0 : index
    %0 = vector.load %arg1[%c0, %c0_0] : memref<8x144xbf16, #tpu.memory_space<vmem>>, vector<8x144xbf16>
    %c0_1 = arith.constant 0 : index
    %c0_2 = arith.constant 0 : index
    %1 = vector.load %arg3[%c0_1, %c0_2] : memref<144x1664xbf16, #tpu.memory_space<vmem>>, vector<144x1664xbf16>
    %cst = arith.constant dense<0.000000e+00> : vector<8x1664xf32>
    %2 = tpu.matmul %0, %1, %cst {dimension_numbers = #tpu.dot_dimension_numbers<[1], [0], [0], [1], [0, 0, 1, 1], [], []>} : vector<8x144xbf16>, vector<144x1664xbf16>, vector<8x1664xf32> -> vector<8x1664xf32>
    %c0_3 = arith.constant 0 : index
    %c0_4 = arith.constant 0 : index
    %3 = vector.load %arg2[%c0_3, %c0_4] : memref<8x1xf32, #tpu.memory_space<vmem>>, vector<8x1xf32>
    %4 = vector.broadcast %3 : vector<8x1xf32> to vector<8x1664xf32>
    %5 = arith.addf %2, %4 : vector<8x1664xf32>
    %cst_5 = arith.constant 0.000000e+00 : f32
    %6 = vector.broadcast %cst_5 : f32 to vector<8x1664xf32>
    %7 = arith.subf %6, %5 : vector<8x1664xf32>
    %8 = math.exp %7 : vector<8x1664xf32>
    %cst_6 = arith.constant 1.000000e+00 : f32
    %9 = vector.broadcast %cst_6 : f32 to vector<8x1664xf32>
    %10 = arith.addf %9, %8 : vector<8x1664xf32>
    %11 = tpu.reciprocal %10 {approx = true} : vector<8x1664xf32> -> vector<8x1664xf32>
    %cst_7 = arith.constant 0.000000e+00 : f32
    %cst_8 = arith.constant 1.000000e+00 : f32
    %12 = vector.broadcast %cst_7 : f32 to vector<8x1664xf32>
    %13 = arith.maximumf %12, %11 : vector<8x1664xf32>
    %14 = vector.broadcast %cst_8 : f32 to vector<8x1664xf32>
    %15 = arith.minimumf %14, %13 : vector<8x1664xf32>
    %c0_9 = arith.constant 0 : index
    %c0_10 = arith.constant 0 : index
    %16 = vector.load %arg4[%c0_9, %c0_10] : memref<8x1664xf32, #tpu.memory_space<vmem>>, vector<8x1664xf32>
    tpu.vector_store %arg4[%c0_9, %c0_10], %15 {strides = array<i32>} : memref<8x1664xf32, #tpu.memory_space<vmem>>, vector<8x1664xf32>,
    return
  }
  func.func @transform_0(%arg0: i32) -> (i32, i32) {
    %c0_i32 = arith.constant 0 : i32
    %c0_i32_0 = arith.constant 0 : i32
    %c0_i32_1 = arith.constant 0 : i32
    return %c0_i32, %c0_i32_0 : i32, i32
  }
  func.func @transform_1(%arg0: i32) -> (i32, i32) {
    %c0_i32 = arith.constant 0 : i32
    %c0_i32_0 = arith.constant 0 : i32
    %c0_i32_1 = arith.constant 0 : i32
    return %c0_i32, %c0_i32_0 : i32, i32
  }
  func.func @transform_2(%arg0: i32) -> (i32, i32) {
    %c0_i32 = arith.constant 0 : i32
    %c0_i32_0 = arith.constant 0 : i32
    return %c0_i32, %arg0 : i32, i32
  }
  func.func @transform_3(%arg0: i32) -> (i32, i32) {
    %c0_i32 = arith.constant 0 : i32
    %c0_i32_0 = arith.constant 0 : i32
    return %c0_i32, %arg0 : i32, i32
  }
}

</mosaic_0001>

<bundles_post_ra>
// kernel: decoder_forward.6
= control target key start
LH: loop header
LB: loop body
LE: loop exit
PB: predicated region body
PF: predicated region fallthrough
CT: control target
= control target key end

     0   :  { %s2398_s15 = smov 0   ;;  %s2400_s16 = smov 0   ;;  %s2889_s0 = inlined_call_operand.vmem [shape: bf16[64,1152], index: 0, kind: input, shape index: {}]   ;;  %s2890_s1 = inlined_call_operand.vmem [shape: bf16[1152,128], index: 1, kind: input, shape index: {}]   ;;  %s2891_s2 = inlined_call_operand.vmem [shape: f32[64,1], index: 2, kind: input, shape index: {}]   ;;  %s2892_s3 = inlined_call_operand.vmem [shape: f32[64,1], index: 3, kind: input, shape index: {}]   ;;  %s2893_s4 = inlined_call_operand.vmem [shape: bf16[64,128], index: 4, kind: output, shape index: {}]  }
   0x1   :  { %s2402_s17 = smov 0  }
   0x2 LB: > { %s26_s18 = sadd.s32 1, %s2365_s16  ;;  %p1811_p0 = scmp.ge.s32.totalorder %s2369_s17, 1  ;;  %s2369_s17 = sphi %s2402_s17, %s14_s17   ;;  %s2365_s16 = sphi %s2400_s16, %s2895_s16   ;;  %s2361_s15 = sphi %s2398_s15, %s2894_s15  }
   0x3   : > { %p28_p1 = scmp.ge.s32.totalorder %s26_s18, 2  ;;  %p183_p2 = scmp.lt.s32.totalorder %s2369_s17, 3 }
   0x5   : > { %s2897_s18 = smov (%p28_p1, %s26_s18), 0  ;;  %p184_p3 = pnand %p1811_p0, %p183_p2 }
   0x6   : > { %p225_p4 = scmp.eq.s32.totalorder (!%p184_p3), %s2361_s15, 0 }
   0x7   : > { %187 = sbr.rel (%p184_p3) target bundleno = 698 (0x2ba), region = 36 }
   0xe   : > { %230 = sbr.rel (!%p225_p4) target bundleno = 23 (0x17), region = 40  ;;  %vm231_vm0 = vcmask (%p225_p4), 7168   ;;  %v2371_v0 = vmov (%p225_p4), 0.0  }
   0xf   : > { %232 = vst.msk [vmem:[#allocation3] sm:$0xff] (%p225_p4), %vm231_vm0, %v2371_v0  ;;  %233 = vst.msk [vmem:[#allocation3 + $0x8] sm:$0xff] (%p225_p4), %vm231_vm0, %v2371_v0 }
  0x10   : > { %234 = vst.msk [vmem:[#allocation3 + $0x10] sm:$0xff] (%p225_p4), %vm231_vm0, %v2371_v0  ;;  %235 = vst.msk [vmem:[#allocation3 + $0x18] sm:$0xff] (%p225_p4), %vm231_vm0, %v2371_v0 }
  0x11   : > { %236 = vst.msk [vmem:[#allocation3 + $0x20] sm:$0xff] (%p225_p4), %vm231_vm0, %v2371_v0  ;;  %237 = vst.msk [vmem:[#allocation3 + $0x28] sm:$0xff] (%p225_p4), %vm231_vm0, %v2371_v0 }
  0x12   : > { %238 = vst.msk [vmem:[#allocation3 + $0x30] sm:$0xff] (%p225_p4), %vm231_vm0, %v2371_v0  ;;  %239 = vst.msk [vmem:[#allocation3 + $0x38] sm:$0xff] (%p225_p4), %vm231_vm0, %v2371_v0 }
  0x13   : > { %240 = vst.msk [vmem:[#allocation4] sm:$0xff] (%p225_p4), %vm231_vm0, %v2371_v0  ;;  %241 = vst.msk [vmem:[#allocation4 + $0x8] sm:$0xff] (%p225_p4), %vm231_vm0, %v2371_v0 }
  0x14   : > { %242 = vst.msk [vmem:[#allocation4 + $0x10] sm:$0xff] (%p225_p4), %vm231_vm0, %v2371_v0  ;;  %243 = vst.msk [vmem:[#allocation4 + $0x18] sm:$0xff] (%p225_p4), %vm231_vm0, %v2371_v0 }
  0x15   : > { %244 = vst.msk [vmem:[#allocation4 + $0x20] sm:$0xff] %vm231_vm0, %v2371_v0  ;;  %245 = vst.msk [vmem:[#allocation4 + $0x28] sm:$0xff] %vm231_vm0, %v2371_v0 }
  0x16   : > { %246 = vst.msk [vmem:[#allocation4 + $0x30] sm:$0xff] %vm231_vm0, %v2371_v0  ;;  %247 = vst.msk [vmem:[#allocation4 + $0x38] sm:$0xff] %vm231_vm0, %v2371_v0 }
  0x17 PF: > { %p1813_p5 = scmp.ne.s32.totalorder %s2361_s15, 0 }
  0x18   : > { %v2205_v1 = vld [vmem:[%s2890_s1 + $0x40] sm:$0xff] (!%p1813_p5)   ;;  %v2209_v5 = vld [vmem:[%s2890_s1 + $0x48] sm:$0xff] (!%p1813_p5)   ;;  %v2213_v9 = vld [vmem:[%s2890_s1 + $0x50] sm:$0xff] (!%p1813_p5)   ;;  %vm1418_vm1 = vcmask (!%p1813_p5), 7168  }
  0x19   : > { %250 = sbr.rel (%p1813_p5) target bundleno = 511 (0x1ff), region = 44  ;;  %v2206_v2 = vld [vmem:[%s2890_s1 + $0xc0] sm:$0xff] (!%p1813_p5)   ;;  %1967 = vmatprep.subr.bf16.mxu0 (!%p1813_p5), %v2205_v1  ;;  %v2210_v6 = vld [vmem:[%s2890_s1 + $0xc8] sm:$0xff] (!%p1813_p5)   ;;  %v2214_v10 = vld [vmem:[%s2890_s1 + $0xd0] sm:$0xff] (!%p1813_p5)  }
  0x1a   : > { %v2207_v3 = vld [vmem:[%s2890_s1] sm:$0xff] (!%p1813_p5)   ;;  %2007 = vmatprep.subr.bf16.mxu1 (!%p1813_p5), %v2206_v2  ;;  %v2211_v7 = vld [vmem:[%s2890_s1 + $0x8] sm:$0xff] (!%p1813_p5)   ;;  %v2215_v11 = vld [vmem:[%s2890_s1 + $0x10] sm:$0xff] (!%p1813_p5)  }
  0x1b   : > { %v2208_v4 = vld [vmem:[%s2890_s1 + $0x80] sm:$0xff] (!%p1813_p5)   ;;  %1968 = vmatpush3.bf16.msra.mxu0 (!%p1813_p5), %v2207_v3  ;;  %v2212_v8 = vld [vmem:[%s2890_s1 + $0x88] sm:$0xff] (!%p1813_p5)   ;;  %v2216_v12 = vld [vmem:[%s2890_s1 + $0x90] sm:$0xff] (!%p1813_p5)  }
  0x1c   : > { %2008 = vmatpush3.bf16.msra.mxu1 (!%p1813_p5), %v2208_v4  ;;  %1969 = vmatprep.subr.bf16.mxu0 (!%p1813_p5), %v2209_v5  ;;  %v2217_v13 = vld [vmem:[%s2890_s1 + $0x58] sm:$0xff] (!%p1813_p5)   ;;  %v2221_v17 = vld [vmem:[%s2890_s1 + $0x60] sm:$0xff] (!%p1813_p5)   ;;  %v2225_v21 = vld [vmem:[%s2890_s1 + $0x68] sm:$0xff] (!%p1813_p5)  }
  0x1d   : > { %2009 = vmatprep.subr.bf16.mxu1 (!%p1813_p5), %v2210_v6  ;;  %v2218_v14 = vld [vmem:[%s2890_s1 + $0xd8] sm:$0xff] (!%p1813_p5)   ;;  %v2222_v18 = vld [vmem:[%s2890_s1 + $0xe0] sm:$0xff] (!%p1813_p5)   ;;  %v2226_v22 = vld [vmem:[%s2890_s1 + $0xe8] sm:$0xff] (!%p1813_p5)  }
  0x1e   : > { %v2219_v15 = vld [vmem:[%s2890_s1 + $0x18] sm:$0xff] (!%p1813_p5)   ;;  %v2223_v19 = vld [vmem:[%s2890_s1 + $0x20] sm:$0xff] (!%p1813_p5)   ;;  %v2227_v23 = vld [vmem:[%s2890_s1 + $0x28] sm:$0xff] (!%p1813_p5)  }
  0x1f   : > { %1970 = vmatpush3.bf16.msra.mxu0 (!%p1813_p5), %v2211_v7  ;;  %v2220_v16 = vld [vmem:[%s2890_s1 + $0x98] sm:$0xff] (!%p1813_p5)   ;;  %v2224_v20 = vld [vmem:[%s2890_s1 + $0xa0] sm:$0xff] (!%p1813_p5)   ;;  %v2228_v24 = vld [vmem:[%s2890_s1 + $0xa8] sm:$0xff] (!%p1813_p5)  }
  0x20   : > { %2010 = vmatpush3.bf16.msra.mxu1 %v2212_v8  ;;  %1971 = vmatprep.subr.bf16.mxu0 %v2213_v9  ;;  %v2229_v25 = vld [vmem:[%s2890_s1 + $0x70] sm:$0xff]   ;;  %v2233_v29 = vld [vmem:[%s2890_s1 + $0x78] sm:$0xff]   ;;  %v2237_v33 = vld [vmem:[%s2889_s0] ss:$36 sps:$4 sm:$0xff]  }
  0x21   : > { %2011 = vmatprep.subr.bf16.mxu1 %v2214_v10  ;;  %v2230_v26 = vld [vmem:[%s2890_s1 + $0xf0] sm:$0xff]   ;;  %v2234_v30 = vld [vmem:[%s2890_s1 + $0xf8] sm:$0xff]   ;;  %v2239_v34 = vld [vmem:[%s2889_s0 + $0x4] ss:$36 sps:$4 sm:$0xff]  }
  0x22   : > { %v2231_v27 = vld [vmem:[%s2890_s1 + $0x30] sm:$0xff]   ;;  %v2235_v31 = vld [vmem:[%s2890_s1 + $0x38] sm:$0xff]   ;;  %v2240_v35 = vld [vmem:[%s2889_s0 + $0x8] ss:$36 sps:$4 sm:$0xff]   ;;  %1083 = vmatprep.mubr.bf16.mxu0 %v2239_v34 }
  0x23   : > { %1972 = vmatpush3.bf16.msra.mxu0 %v2215_v11  ;;  %v2232_v28 = vld [vmem:[%s2890_s1 + $0xb0] sm:$0xff]   ;;  %v2236_v32 = vld [vmem:[%s2890_s1 + $0xb8] sm:$0xff]   ;;  %v2243_v37 = vld [vmem:[%s2890_s1 + $0x140] sm:$0xff]  }
  0x24   : > { %2012 = vmatpush3.bf16.msra.mxu1 %v2216_v12  ;;  %1973 = vmatprep.subr.bf16.mxu0 %v2217_v13  ;;  %v2242_v36 = vld [vmem:[%s2889_s0 + $0xc] ss:$36 sps:$4 sm:$0xff]   ;;  %v2244_v38 = vld [vmem:[%s2890_s1 + $0x1c0] sm:$0xff]   ;;  %v2253_v46 = vld [vmem:[%s2889_s0 + $0x54] ss:$36 sps:$4 sm:$0xff]  }
  0x25   : > { %2013 = vmatprep.subr.bf16.mxu1 %v2218_v14  ;;  %1148 = vmatprep.mubr.bf16.mxu1 %v2242_v36  ;;  %v2245_v39 = vld [vmem:[%s2890_s1 + $0x100] sm:$0xff]   ;;  %v2247_v41 = vld [vmem:[%s2890_s1 + $0x148] sm:$0xff]   ;;  %v2256_v48 = vld [vmem:[%s2889_s0 + $0x50] ss:$36 sps:$4 sm:$0xff]  }
  0x26   : > { %v2246_v40 = vld [vmem:[%s2890_s1 + $0x180] sm:$0xff]   ;;  %v2248_v42 = vld [vmem:[%s2890_s1 + $0x1c8] sm:$0xff]   ;;  %v2257_v49 = vld [vmem:[%s2890_s1 + $0x150] sm:$0xff]  }
  0x27   : > { %1974 = vmatpush3.bf16.msra.mxu0 %v2219_v15  ;;  %v2249_v43 = vld [vmem:[%s2890_s1 + $0x108] sm:$0xff]   ;;  %v2258_v50 = vld [vmem:[%s2890_s1 + $0x1d0] sm:$0xff]   ;;  %v2261_v53 = vld [vmem:[%s2890_s1 + $0x158] sm:$0xff]  }
  0x28   : > { %2014 = vmatpush3.bf16.msra.mxu1 %v2220_v16  ;;  %1975 = vmatprep.subr.bf16.mxu0 %v2221_v17  ;;  %v2250_v44 = vld [vmem:[%s2890_s1 + $0x188] sm:$0xff]   ;;  %v2259_v51 = vld [vmem:[%s2890_s1 + $0x110] sm:$0xff]   ;;  %v2262_v54 = vld [vmem:[%s2890_s1 + $0x1d8] sm:$0xff]  }
  0x29   : > { %2015 = vmatprep.subr.bf16.mxu1 %v2222_v18  ;;  %v2251_v45 = vld [vmem:[%s2889_s0 + $0x4c] ss:$36 sps:$4 sm:$0xff]   ;;  %v2263_v55 = vld [vmem:[%s2890_s1 + $0x118] sm:$0xff]   ;;  %v2271_v61 = vld [vmem:[%s2890_s1 + $0x160] sm:$0xff]  }
  0x2a   : > { %v2255_v47 = vld [vmem:[%s2889_s0 + $0x48] ss:$36 sps:$4 sm:$0xff]   ;;  %v2260_v52 = vld [vmem:[%s2890_s1 + $0x190] sm:$0xff]   ;;  %v2264_v56 = vld [vmem:[%s2890_s1 + $0x198] sm:$0xff]  }
  0x2b   : > { %1976 = vmatpush3.bf16.msra.mxu0 %v2223_v19  ;;  %v2265_v57 = vld [vmem:[%s2889_s0 + $0x94] ss:$36 sps:$4 sm:$0xff]   ;;  %v2267_v58 = vld [vmem:[%s2889_s0 + $0x9c] ss:$36 sps:$4 sm:$0xff]   ;;  %v2275_v1 = vld [vmem:[%s2890_s1 + $0x168] sm:$0xff]  }
  0x2c   : > { %2016 = vmatpush3.bf16.msra.mxu1 %v2224_v20  ;;  %1977 = vmatprep.subr.bf16.mxu0 %v2225_v21  ;;  %v2269_v59 = vld [vmem:[%s2889_s0 + $0x90] ss:$36 sps:$4 sm:$0xff]   ;;  %v2270_v60 = vld [vmem:[%s2889_s0 + $0x98] ss:$36 sps:$4 sm:$0xff]   ;;  %v2272_v62 = vld [vmem:[%s2890_s1 + $0x1e0] sm:$0xff]  }
  0x2d   : > { %2017 = vmatprep.subr.bf16.mxu1 %v2226_v22  ;;  %v2273_v63 = vld [vmem:[%s2890_s1 + $0x120] sm:$0xff]   ;;  %v2276_v2 = vld [vmem:[%s2890_s1 + $0x1e8] sm:$0xff]   ;;  %v2283_v7 = vld [vmem:[%s2889_s0 + $0xd8] ss:$36 sps:$4 sm:$0xff]  }
  0x2e   : > { %v2274_v0 = vld [vmem:[%s2890_s1 + $0x1a0] sm:$0xff]   ;;  %v2277_v3 = vld [vmem:[%s2890_s1 + $0x128] sm:$0xff]   ;;  %v2285_v9 = vld [vmem:[%s2890_s1 + $0x170] sm:$0xff]  }
  0x2f   : > { %1978 = vmatpush3.bf16.msra.mxu0 %v2227_v23  ;;  %v2278_v4 = vld [vmem:[%s2890_s1 + $0x1a8] sm:$0xff]   ;;  %v2279_v5 = vld [vmem:[%s2889_s0 + $0xdc] ss:$36 sps:$4 sm:$0xff]   ;;  %v2286_v10 = vld [vmem:[%s2890_s1 + $0x1f0] sm:$0xff]  }
  0x30   : > { %2018 = vmatpush3.bf16.msra.mxu1 %v2228_v24  ;;  %1979 = vmatprep.subr.bf16.mxu0 %v2229_v25  ;;  %v2281_v6 = vld [vmem:[%s2889_s0 + $0xe4] ss:$36 sps:$4 sm:$0xff]   ;;  %v2287_v11 = vld [vmem:[%s2890_s1 + $0x130] sm:$0xff]   ;;  %v2289_v13 = vld [vmem:[%s2890_s1 + $0x178] sm:$0xff]  }
  0x31   : > { %2019 = vmatprep.subr.bf16.mxu1 %v2230_v26  ;;  %v2284_v8 = vld [vmem:[%s2889_s0 + $0xe0] ss:$36 sps:$4 sm:$0xff]   ;;  %v2288_v12 = vld [vmem:[%s2890_s1 + $0x1b0] sm:$0xff]   ;;  %v2290_v14 = vld [vmem:[%s2890_s1 + $0x1f8] sm:$0xff]  }
  0x32   : > { %v2291_v15 = vld [vmem:[%s2890_s1 + $0x138] sm:$0xff]   ;;  %v2293_v17 = vld [vmem:[%s2889_s0 + $0x10] ss:$36 sps:$4 sm:$0xff]   ;;  %v2299_v21 = vld [vmem:[%s2890_s1 + $0x200] sm:$0xff]  }
  0x33   : > { %1980 = vmatpush3.bf16.msra.mxu0 %v2231_v27  ;;  %v2292_v16 = vld [vmem:[%s2890_s1 + $0x1b8] sm:$0xff]   ;;  %v2300_v22 = vld [vmem:[%s2890_s1 + $0x208] sm:$0xff]   ;;  %v2306_v26 = vld [vmem:[%s2889_s0 + $0x60] ss:$36 sps:$4 sm:$0xff]  }
  0x34   : > { %2020 = vmatpush3.bf16.msra.mxu1 %v2232_v28  ;;  %1981 = vmatprep.subr.bf16.mxu0 %v2233_v29  ;;  %v2295_v18 = vld [vmem:[%s2889_s0 + $0x14] ss:$36 sps:$4 sm:$0xff]   ;;  %v2298_v20 = vld [vmem:[%s2889_s0 + $0x1c] ss:$36 sps:$4 sm:$0xff]   ;;  %v2303_v24 = vld [vmem:[%s2889_s0 + $0x64] ss:$36 sps:$4 sm:$0xff]  }
  0x35   : > { %2021 = vmatprep.subr.bf16.mxu1 %v2234_v30  ;;  %v2296_v19 = vld [vmem:[%s2889_s0 + $0x18] ss:$36 sps:$4 sm:$0xff]   ;;  %v2307_v27 = vld [vmem:[%s2890_s1 + $0x210] sm:$0xff]   ;;  %v2309_v28 = vld [vmem:[%s2889_s0 + $0xa4] ss:$36 sps:$4 sm:$0xff]  }
  0x36   : > { %v2301_v23 = vld [vmem:[%s2889_s0 + $0x5c] ss:$36 sps:$4 sm:$0xff]   ;;  %v2311_v29 = vld [vmem:[%s2889_s0 + $0xac] ss:$36 sps:$4 sm:$0xff]  }
  0x37   : > { %1982 = vmatpush3.bf16.msra.mxu0 %v2235_v31  ;;  %v2305_v25 = vld [vmem:[%s2889_s0 + $0x58] ss:$36 sps:$4 sm:$0xff]   ;;  %v2313_v31 = vld [vmem:[%s2889_s0 + $0xa0] ss:$36 sps:$4 sm:$0xff]   ;;  %v2317_v34 = vld [vmem:[%s2889_s0 + $0xec] ss:$36 sps:$4 sm:$0xff]  }
  0x38   : > { %2022 = vmatpush3.bf16.msra.mxu1 %v2236_v32  ;;  %2047 = vmatprep.subr.bf16.mxu0 %v2243_v37  ;;  %v2308_v30 = vld [vmem:[%s2890_s1 + $0x218] sm:$0xff]   ;;  %v2314_v32 = vld [vmem:[%s2889_s0 + $0xa8] ss:$36 sps:$4 sm:$0xff]  }
  0x39   : > { %2087 = vmatprep.subr.bf16.mxu1 %v2244_v38  ;;  %v2316_v36 = vld [vmem:[%s2890_s1 + $0x228] sm:$0xff]   ;;  %v2323_v38 = vld [vmem:[%s2890_s1 + $0x230] sm:$0xff]  }
  0x3a   : > { %1084 = vmatmul.mubr.bf16.vlgmr.msra.gmra.mrb[0].mxu0 %v2237_v33  ;;  %v2315_v33 = vld [vmem:[%s2890_s1 + $0x220] sm:$0xff]   ;;  %v2321_v37 = vld [vmem:[%s2889_s0 + $0xe8] ss:$36 sps:$4 sm:$0xff]  }
  0x3b   : > { %1149 = vmatmul.mubr.bf16.vlgmr.msra.gmra.mrb[0].mxu1 %v2240_v35  ;;  %2048 = vmatpush3.bf16.msra.mxu0 %v2245_v39  ;;  %v2319_v35 = vld [vmem:[%s2889_s0 + $0xf4] ss:$36 sps:$4 sm:$0xff]  }
  0x3c   : > { %2088 = vmatpush3.bf16.msra.mxu1 %v2246_v40  ;;  %2049 = vmatprep.subr.bf16.mxu0 %v2247_v41  ;;  %v2322_v39 = vld [vmem:[%s2889_s0 + $0xf0] ss:$36 sps:$4 sm:$0xff]   ;;  %v2325_v40 = vld [vmem:[%s2889_s0 + $0x20] ss:$36 sps:$4 sm:$0xff]  }
  0x3d   : > { %2089 = vmatprep.subr.bf16.mxu1 %v2248_v42  ;;  %1091 = vmatprep.mubr.bf16.mxu0 %v2251_v45  ;;  %v2326_v41 = vld [vmem:[%s2889_s0 + $0xb0] ss:$36 sps:$4 sm:$0xff]   ;;  %v2324_v42 = vld [vmem:[%s2890_s1 + $0x238] sm:$0xff]  }
  0x3e   : > { %1156 = vmatprep.mubr.bf16.mxu1 %v2253_v46 }
  0x3f   : > { %2050 = vmatpush3.bf16.msra.mxu0 %v2249_v43  ;;  %v2327_v43 = vld [vmem:[%s2889_s0 + $0x68] ss:$36 sps:$4 sm:$0xff]  }
  0x40   : > { %2090 = vmatpush3.bf16.msra.mxu1 %v2250_v44  ;;  %2051 = vmatprep.subr.bf16.mxu0 %v2257_v49  ;;  %v2328_v44 = vld [vmem:[%s2889_s0 + $0xf8] ss:$36 sps:$4 sm:$0xff]  }
  0x41   : > { %2091 = vmatprep.subr.bf16.mxu1 %v2258_v50 }
  0x42   : > { %1092 = vmatmul.mubr.bf16.gmra.mrb[4].mxu0 %v2255_v47 }
  0x43   : > { %1157 = vmatmul.mubr.bf16.gmra.mrb[4].mxu1 %v2256_v48  ;;  %2052 = vmatpush3.bf16.msra.mxu0 %v2259_v51 }
  0x44   : > { %2092 = vmatpush3.bf16.msra.mxu1 %v2260_v52  ;;  %2053 = vmatprep.subr.bf16.mxu0 %v2261_v53 }
  0x45   : > { %2093 = vmatprep.subr.bf16.mxu1 %v2262_v54  ;;  %1099 = vmatprep.mubr.bf16.mxu0 %v2265_v57 }
  0x46   : > { %1164 = vmatprep.mubr.bf16.mxu1 %v2267_v58 }
  0x47   : > { %2054 = vmatpush3.bf16.msra.mxu0 %v2263_v55 }
  0x48   : > { %2094 = vmatpush3.bf16.msra.mxu1 %v2264_v56  ;;  %2055 = vmatprep.subr.bf16.mxu0 %v2271_v61 }
  0x49   : > { %2095 = vmatprep.subr.bf16.mxu1 %v2272_v62 }
  0x4a   : > { %1100 = vmatmul.mubr.bf16.gmra.mrb[8].mxu0 %v2269_v59 }
  0x4b   : > { %1165 = vmatmul.mubr.bf16.gmra.mrb[8].mxu1 %v2270_v60  ;;  %2056 = vmatpush3.bf16.msra.mxu0 %v2273_v63 }
  0x4c   : > { %2096 = vmatpush3.bf16.msra.mxu1 %v2274_v0  ;;  %2057 = vmatprep.subr.bf16.mxu0 %v2275_v1 }
  0x4d   : > { %2097 = vmatprep.subr.bf16.mxu1 %v2276_v2  ;;  %1107 = vmatprep.mubr.bf16.mxu0 %v2279_v5 }
  0x4e   : > { %1172 = vmatprep.mubr.bf16.mxu1 %v2281_v6 }
  0x4f   : > { %2058 = vmatpush3.bf16.msra.mxu0 %v2277_v3 }
  0x50   : > { %2098 = vmatpush3.bf16.msra.mxu1 %v2278_v4  ;;  %2059 = vmatprep.subr.bf16.mxu0 %v2285_v9 }
  0x51   : > { %2099 = vmatprep.subr.bf16.mxu1 %v2286_v10 }
  0x52   : > { %1108 = vmatmul.mubr.bf16.gmra.mrb[12].mxu0 %v2283_v7 }
  0x53   : > { %1173 = vmatmul.mubr.bf16.gmra.mrb[12].mxu1 %v2284_v8  ;;  %2060 = vmatpush3.bf16.msra.mxu0 %v2287_v11 }
  0x54   : > { %2100 = vmatpush3.bf16.msra.mxu1 %v2288_v12  ;;  %2061 = vmatprep.subr.bf16.mxu0 %v2289_v13 }
  0x55   : > { %2101 = vmatprep.subr.bf16.mxu1 %v2290_v14  ;;  %1213 = vmatprep.mubr.bf16.mxu0 %v2295_v18 }
  0x56   : > { %1278 = vmatprep.mubr.bf16.mxu1 %v2298_v20 }
  0x57   : > { %2062 = vmatpush3.bf16.msra.mxu0 %v2291_v15 }
  0x58   : > { %2102 = vmatpush3.bf16.msra.mxu1 %v2292_v16  ;;  %2139 = vmatprep.subr.bf16.mxu0 %v2299_v21 }
  0x59   : > { %2163 = vmatprep.subr.bf16.mxu1 %v2299_v21 }
  0x5a   : > { %1214 = vmatmul.mubr.bf16.vlgmr.msra.gmra.mrb[16].mxu0 %v2293_v17 }
  0x5b   : > { %1279 = vmatmul.mubr.bf16.vlgmr.msra.gmra.mrb[16].mxu1 %v2296_v19  ;;  %2140 = vmatpush3.bf16.msra.mxu0 %v2299_v21 }
  0x5c   : > { %2171 = vmatpush3.bf16.msra.mxu1 %v2299_v21  ;;  %2141 = vmatprep.subr.bf16.mxu0 %v2300_v22 }
  0x5d   : > { %2164 = vmatprep.subr.bf16.mxu1 %v2300_v22  ;;  %1221 = vmatprep.mubr.bf16.mxu0 %v2301_v23 }
  0x5e   : > { %1286 = vmatprep.mubr.bf16.mxu1 %v2303_v24 }
  0x5f   : > { %2142 = vmatpush3.bf16.msra.mxu0 %v2300_v22 }
  0x60   : > { %2172 = vmatpush3.bf16.msra.mxu1 %v2300_v22  ;;  %2143 = vmatprep.subr.bf16.mxu0 %v2307_v27 }
  0x61   : > { %2165 = vmatprep.subr.bf16.mxu1 %v2307_v27 }
  0x62   : > { %1222 = vmatmul.mubr.bf16.gmra.mrb[20].mxu0 %v2305_v25 }
  0x63   : > { %1287 = vmatmul.mubr.bf16.gmra.mrb[20].mxu1 %v2306_v26  ;;  %1229 = vmatprep.mubr.bf16.mxu0 %v2309_v28 }
  0x64   : > { %2144 = vmatpush3.bf16.msra.mxu0 %v2307_v27  ;;  %1294 = vmatprep.mubr.bf16.mxu1 %v2311_v29 }
  0x65   : > { %2173 = vmatpush3.bf16.msra.mxu1 %v2307_v27  ;;  %2145 = vmatprep.subr.bf16.mxu0 %v2308_v30 }
  0x66   : > { %2166 = vmatprep.subr.bf16.mxu1 %v2308_v30 }
  0x68   : > { %2146 = vmatpush3.bf16.msra.mxu0 %v2308_v30 }
  0x69   : > { %2174 = vmatpush3.bf16.msra.mxu1 %v2308_v30  ;;  %2147 = vmatprep.subr.bf16.mxu0 %v2315_v33 }
  0x6a   : > { %1230 = vmatmul.mubr.bf16.gmra.mrb[24].mxu0 %v2313_v31  ;;  %2167 = vmatprep.subr.bf16.mxu1 %v2315_v33 }
  0x6b   : > { %1295 = vmatmul.mubr.bf16.gmra.mrb[24].mxu1 %v2314_v32  ;;  %1237 = vmatprep.mubr.bf16.mxu0 %v2317_v34 }
  0x6c   : > { %2148 = vmatpush3.bf16.msra.mxu0 %v2315_v33  ;;  %1302 = vmatprep.mubr.bf16.mxu1 %v2319_v35 }
  0x6d   : > { %2175 = vmatpush3.bf16.msra.mxu1 %v2315_v33  ;;  %2149 = vmatprep.subr.bf16.mxu0 %v2316_v36 }
  0x6e   : > { %2168 = vmatprep.subr.bf16.mxu1 %v2316_v36 }
  0x70   : > { %2150 = vmatpush3.bf16.msra.mxu0 %v2316_v36 }
  0x71   : > { %2176 = vmatpush3.bf16.msra.mxu1 %v2316_v36  ;;  %2151 = vmatprep.subr.bf16.mxu0 %v2323_v38 }
  0x72   : > { %1238 = vmatmul.mubr.bf16.gmra.mrb[28].mxu0 %v2321_v37  ;;  %2169 = vmatprep.subr.bf16.mxu1 %v2323_v38 }
  0x73   : > { %1303 = vmatmul.mubr.bf16.gmra.mrb[28].mxu1 %v2322_v39  ;;  %2155 = vmatprep.mubr.bf16.mxu0 %v2325_v40 }
  0x74   : > { %2152 = vmatpush3.bf16.msra.mxu0 %v2323_v38  ;;  %2159 = vmatprep.mubr.bf16.mxu1 %v2326_v41 }
  0x75   : > { %2177 = vmatpush3.bf16.msra.mxu1 %v2323_v38  ;;  %2153 = vmatprep.subr.bf16.mxu0 %v2324_v42 }
  0x76   : > { %2170 = vmatprep.subr.bf16.mxu1 %v2324_v42 }
  0x78   : > { %2154 = vmatpush3.bf16.msra.mxu0 %v2324_v42 }
  0x79   : > { %2178 = vmatpush3.bf16.msra.mxu1 %v2324_v42 }
  0x7b   : > { %2156 = vmatmul.mubr.bf16.vlgmr.msra.gmra.mrb[32].mxu0 %v2327_v43 }
  0x7c   : > { %2160 = vmatmul.mubr.bf16.vlgmr.msra.gmra.mrb[32].mxu1 %v2328_v44 }
 0x10d   : > { %v1983_v45 = vpop.f32.mrb[0].mxu0 }
 0x10e   : > { %v2023_v46 = vpop.f32.mrb[0].mxu1  ;;  %v1984_v47 = vpop.f32.mrb[1].mxu0 }
 0x10f   : > { %v1985_v48 = vadd.f32 %v1984_v47, %v1983_v45  ;;  %v2024_v49 = vpop.f32.mrb[1].mxu1  ;;  %v1986_v50 = vpop.f32.mrb[2].mxu0 }
 0x110   : > { %v2025_v51 = vadd.f32 %v2024_v49, %v2023_v46  ;;  %v2026_v52 = vpop.f32.mrb[2].mxu1  ;;  %v1987_v53 = vpop.f32.mrb[3].mxu0 }
 0x111   : > { %v1988_v54 = vadd.f32 %v1987_v53, %v1986_v50  ;;  %v2027_v55 = vpop.f32.mrb[3].mxu1 }
 0x112   : > { %v1151_v56 = vadd.f32 %v2025_v51, %v1985_v48  ;;  %v2028_v57 = vadd.f32 %v2027_v55, %v2026_v52 }
 0x114   : > { %v1154_v58 = vadd.f32 %v2028_v57, %v1988_v54 }
 0x115   : > { %v1989_v59 = vpop.f32.mrb[4].mxu0 }
 0x116   : > { %v2029_v60 = vpop.f32.mrb[4].mxu1  ;;  %v1990_v61 = vpop.f32.mrb[5].mxu0 }
 0x117   : > { %v1991_v62 = vadd.f32 %v1990_v61, %v1989_v59  ;;  %v2030_v63 = vpop.f32.mrb[5].mxu1  ;;  %v1992_v0 = vpop.f32.mrb[6].mxu0 }
 0x118   : > { %v2031_v1 = vadd.f32 %v2030_v63, %v2029_v60  ;;  %v2032_v2 = vpop.f32.mrb[6].mxu1  ;;  %v1993_v3 = vpop.f32.mrb[7].mxu0 }
 0x119   : > { %v1994_v4 = vadd.f32 %v1993_v3, %v1992_v0  ;;  %v2033_v5 = vpop.f32.mrb[7].mxu1 }
 0x11a   : > { %v1159_v6 = vadd.f32 %v2031_v1, %v1991_v62  ;;  %v2034_v7 = vadd.f32 %v2033_v5, %v2032_v2 }
 0x11c   : > { %v1162_v8 = vadd.f32 %v2034_v7, %v1994_v4 }
 0x11d   : > { %v1995_v9 = vpop.f32.mrb[8].mxu0 }
 0x11e   : > { %v2035_v10 = vpop.f32.mrb[8].mxu1  ;;  %v1996_v11 = vpop.f32.mrb[9].mxu0 }
 0x11f   : > { %v1997_v12 = vadd.f32 %v1996_v11, %v1995_v9  ;;  %v2036_v13 = vpop.f32.mrb[9].mxu1  ;;  %v1998_v14 = vpop.f32.mrb[10].mxu0 }
 0x120   : > { %v2037_v15 = vadd.f32 %v2036_v13, %v2035_v10  ;;  %v2038_v16 = vpop.f32.mrb[10].mxu1  ;;  %v1999_v17 = vpop.f32.mrb[11].mxu0 }
 0x121   : > { %v2000_v18 = vadd.f32 %v1999_v17, %v1998_v14  ;;  %v2039_v19 = vpop.f32.mrb[11].mxu1 }
 0x122   : > { %v1167_v20 = vadd.f32 %v2037_v15, %v1997_v12  ;;  %v2040_v21 = vadd.f32 %v2039_v19, %v2038_v16 }
 0x124   : > { %v1170_v22 = vadd.f32 %v2040_v21, %v2000_v18 }
 0x125   : > { %v2001_v23 = vpop.f32.mrb[12].mxu0 }
 0x126   : > { %v2041_v24 = vpop.f32.mrb[12].mxu1  ;;  %v2002_v25 = vpop.f32.mrb[13].mxu0 }
 0x127   : > { %v2042_v26 = vpop.f32.mrb[13].mxu1  ;;  %v2003_v27 = vadd.f32 %v2002_v25, %v2001_v23  ;;  %v2004_v29 = vpop.f32.mrb[14].mxu0 }
 0x128   : > { %v2043_v28 = vadd.f32 %v2042_v26, %v2041_v24  ;;  %v2044_v30 = vpop.f32.mrb[14].mxu1  ;;  %v2005_v31 = vpop.f32.mrb[15].mxu0 }
 0x129   : > { %v2045_v32 = vpop.f32.mrb[15].mxu1  ;;  %v2006_v34 = vadd.f32 %v2005_v31, %v2004_v29 }
 0x12a   : > { %v1175_v33 = vadd.f32 %v2043_v28, %v2003_v27  ;;  %v2046_v35 = vadd.f32 %v2045_v32, %v2044_v30 }
 0x12c   : > { %v1178_v36 = vadd.f32 %v2046_v35, %v2006_v34 }
 0x12d   : > { %v2063_v37 = vpop.f32.mrb[16].mxu0 }
 0x12e   : > { %v2064_v38 = vpop.f32.mrb[17].mxu0  ;;  %v2103_v39 = vpop.f32.mrb[16].mxu1 }
 0x12f   : > { %v2065_v40 = vadd.f32 %v2064_v38, %v2063_v37  ;;  %v2066_v41 = vpop.f32.mrb[18].mxu0  ;;  %v2104_v42 = vpop.f32.mrb[17].mxu1 }
 0x130   : > { %v2067_v43 = vpop.f32.mrb[19].mxu0  ;;  %v2105_v45 = vadd.f32 %v2104_v42, %v2103_v39  ;;  %v2106_v46 = vpop.f32.mrb[18].mxu1 }
 0x131   : > { %v1216_v44 = vadd.f32 %v2065_v40, %v1151_v56  ;;  %v2068_v47 = vadd.f32 %v2067_v43, %v2066_v41  ;;  %v2107_v48 = vpop.f32.mrb[19].mxu1 }
 0x132   : > { %v2108_v50 = vadd.f32 %v2107_v48, %v2106_v46 }
 0x133   : > { %v1219_v49 = vadd.f32 %v2068_v47, %v1154_v58  ;;  %v1281_v51 = vadd.f32 %v2105_v45, %v1216_v44 }
 0x135   : > { %v2069_v52 = vpop.f32.mrb[20].mxu0  ;;  %v2760_v53 = vadd.f32 %v2108_v50, %v1219_v49 }
 0x136   : > { %v2070_v54 = vpop.f32.mrb[21].mxu0  ;;  %v2109_v55 = vpop.f32.mrb[20].mxu1 }
 0x137   : > { %v2071_v57 = vadd.f32 %v2070_v54, %v2069_v52  ;;  %v2072_v59 = vpop.f32.mrb[22].mxu0  ;;  %v2110_v60 = vpop.f32.mrb[21].mxu1 }
 0x138   : > { %v2073_v61 = vpop.f32.mrb[23].mxu0  ;;  %v2111_v63 = vadd.f32 %v2110_v60, %v2109_v55  ;;  %v2112_v0 = vpop.f32.mrb[22].mxu1 }
 0x139   : > { %v1224_v62 = vadd.f32 %v2071_v57, %v1159_v6  ;;  %v2074_v56 = vadd.f32 %v2073_v61, %v2072_v59  ;;  %v2113_v1 = vpop.f32.mrb[23].mxu1 }
 0x13a   : > { %v2114_v3 = vadd.f32 %v2113_v1, %v2112_v0  ;;  %v1392_v0 = vld [vmem:[#allocation3 + $0x30] sm:$0xff] }
 0x13b   : > { %v1227_v2 = vadd.f32 %v2074_v56, %v1162_v8  ;;  %v1289_v4 = vadd.f32 %v2111_v63, %v1224_v62  ;;  %v1388_v63 = vld [vmem:[#allocation3 + $0x10] sm:$0xff] }
 0x13d   : > { %v2075_v58 = vpop.f32.mrb[24].mxu0  ;;  %v1292_v5 = vadd.f32 %v2114_v3, %v1227_v2 }
 0x13e   : > { %v2076_v7 = vpop.f32.mrb[25].mxu0  ;;  %v2115_v9 = vpop.f32.mrb[24].mxu1 }
 0x13f   : > { %v2077_v10 = vadd.f32 %v2076_v7, %v2075_v58  ;;  %v2078_v11 = vpop.f32.mrb[26].mxu0  ;;  %v2116_v12 = vpop.f32.mrb[25].mxu1  ;;  %v1386_v58 = vld [vmem:[#allocation3] sm:$0xff] }
 0x140   : > { %v2079_v13 = vpop.f32.mrb[27].mxu0  ;;  %v2117_v15 = vadd.f32 %v2116_v12, %v2115_v9  ;;  %v2118_v16 = vpop.f32.mrb[26].mxu1  ;;  %v1390_v12 = vld [vmem:[#allocation3 + $0x20] sm:$0xff] }
 0x141   : > { %v1232_v14 = vadd.f32 %v2077_v10, %v1167_v20  ;;  %v2080_v17 = vadd.f32 %v2079_v13, %v2078_v11  ;;  %v2119_v6 = vpop.f32.mrb[27].mxu1  ;;  %v1393_v11 = vld [vmem:[#allocation3 + $0x38] sm:$0xff] }
 0x142   : > { %v2120_v19 = vadd.f32 %v2119_v6, %v2118_v16  ;;  %v1429_v6 = vld [vmem:[#allocation4 + $0x10] sm:$0xff] }
 0x143   : > { %v1235_v18 = vadd.f32 %v2080_v17, %v1170_v22  ;;  %v1297_v21 = vadd.f32 %v2117_v15, %v1232_v14  ;;  %v1391_v17 = vld [vmem:[#allocation3 + $0x28] sm:$0xff] }
 0x145   : > { %v2081_v23 = vpop.f32.mrb[28].mxu0  ;;  %v1300_v8 = vadd.f32 %v2120_v19, %v1235_v18 }
 0x146   : > { %v2082_v24 = vpop.f32.mrb[29].mxu0  ;;  %v2121_v25 = vpop.f32.mrb[28].mxu1 }
 0x147   : > { %v2083_v26 = vadd.f32 %v2082_v24, %v2081_v23  ;;  %v2084_v27 = vpop.f32.mrb[30].mxu0  ;;  %v2122_v28 = vpop.f32.mrb[29].mxu1  ;;  %v1387_v24 = vld [vmem:[#allocation3 + $0x8] sm:$0xff] }
 0x148   : > { %v2085_v29 = vpop.f32.mrb[31].mxu0  ;;  %v2123_v31 = vadd.f32 %v2122_v28, %v2121_v25  ;;  %v2124_v32 = vpop.f32.mrb[30].mxu1 }
 0x149   : > { %v1240_v30 = vadd.f32 %v2083_v26, %v1175_v33  ;;  %v2086_v34 = vadd.f32 %v2085_v29, %v2084_v27  ;;  %v2125_v20 = vpop.f32.mrb[31].mxu1  ;;  %v1428_v29 = vld [vmem:[#allocation4 + $0x8] sm:$0xff] }
 0x14a   : > { %v2126_v37 = vadd.f32 %v2125_v20, %v2124_v32 }
 0x14b   : > { %v1243_v35 = vadd.f32 %v2086_v34, %v1178_v36  ;;  %v1305_v38 = vadd.f32 %v2123_v31, %v1240_v30  ;;  %v1427_v30 = vld [vmem:[#allocation4] sm:$0xff] }
 0x14d   : > { %v1308_v39 = vadd.f32 %v2126_v37, %v1243_v35  ;;  %v1432_v35 = vld [vmem:[#allocation4 + $0x28] sm:$0xff]  ;;  %v1431_v37 = vld [vmem:[#allocation4 + $0x20] sm:$0xff] }
 0x14e   : > { %v2157_v22 = vpop.f32.mrb[32].mxu0 }
 0x14f   : > { %v1354_v40 = vadd.f32 %v2157_v22, %v1289_v4  ;;  %v2161_v41 = vpop.f32.mrb[32].mxu1  ;;  %v1345_v42 = vpop.f32.mrb[33].mxu0  ;;  %v1389_v4 = vld [vmem:[#allocation3 + $0x18] sm:$0xff] }
 0x150   : > { %v1370_v43 = vadd.f32 %v2161_v41, %v1305_v38  ;;  %v1346_v44 = vadd.f32 %v1345_v42, %v1281_v51  ;;  %v1361_v45 = vpop.f32.mrb[33].mxu1  ;;  %v2158_v46 = vpop.f32.mrb[34].mxu0  ;;  %v1434_v41 = vld [vmem:[#allocation4 + $0x38] sm:$0xff]  ;;  %v1433_v42 = vld [vmem:[#allocation4 + $0x30] sm:$0xff] }
 0x151   : > { %1380 = vst [vmem:[#allocation2 + $0x10] sm:$0xff] %v1354_v40  ;;  %v1362_v47 = vadd.f32 %v1361_v45, %v1297_v21  ;;  %v1357_v48 = vadd.f32 %v2158_v46, %v1292_v5  ;;  %v2162_v33 = vpop.f32.mrb[34].mxu1  ;;  %v1348_v49 = vpop.f32.mrb[35].mxu0  ;;  %1398 = vadd.xlane.f32.xlu1 %v1354_v40  ;;  %v1437_v51 = vmul.f32 %v1354_v40, %v1354_v40 }
 0x152   : > { %1384 = vst [vmem:[#allocation2 + $0x30] sm:$0xff] %v1370_v43  ;;  %1378 = vst [vmem:[#allocation2] sm:$0xff] %v1346_v44  ;;  %v1373_v36 = vadd.f32 %v2162_v33, %v1308_v39  ;;  %v1349_v50 = vadd.f32 %v1348_v49, %v2760_v53  ;;  %v1364_v52 = vpop.f32.mrb[35].mxu1  ;;  %1406 = vadd.xlane.f32.xlu0 %v1370_v43  ;;  %v1435_v53 = vmul.f32 %v1346_v44, %v1346_v44 }
 0x153   : > { %1382 = vst [vmem:[#allocation2 + $0x20] sm:$0xff] %v1362_v47  ;;  %1381 = vst [vmem:[#allocation2 + $0x18] sm:$0xff] %v1357_v48  ;;  %v1365_v54 = vadd.f32 %v1364_v52, %v1300_v8  ;;  %v1438_v55 = vmul.f32 %v1357_v48, %v1357_v48  ;;  %v1439_v60 = vmul.f32 %v1362_v47, %v1362_v47  ;;  %v1430_v8 = vld [vmem:[#allocation4 + $0x18] sm:$0xff] }
 0x154   : > { %1385 = vst [vmem:[#allocation2 + $0x38] sm:$0xff] %v1373_v36  ;;  %1379 = vst [vmem:[#allocation2 + $0x8] sm:$0xff] %v1349_v50  ;;  %v1436_v57 = vmul.f32 %v1349_v50, %v1349_v50  ;;  %v1442_v61 = vmul.f32 %v1373_v36, %v1373_v36  ;;  %v1441_v62 = vmul.f32 %v1370_v43, %v1370_v43 }
 0x155   : > { %1383 = vst [vmem:[#allocation2 + $0x28] sm:$0xff] %v1365_v54  ;;  %1400 = vadd.xlane.f32.xlu1 %v1357_v48  ;;  %v1440_v59 = vmul.f32 %v1365_v54, %v1365_v54 }
 0x156   : > { %1394 = vadd.xlane.f32.xlu0 %v1346_v44 }
 0x159   : > { %1408 = vadd.xlane.f32.xlu1 %v1373_v36 }
 0x15a   : > { %1402 = vadd.xlane.f32.xlu0 %v1362_v47 }
 0x15d   : > { %1404 = vadd.xlane.f32.xlu1 %v1365_v54 }
 0x15e   : > { %1447 = vadd.xlane.f32.xlu0 %v1437_v51 }
 0x161   : > { %1449 = vadd.xlane.f32.xlu1 %v1438_v55 }
 0x162   : > { %1396 = vadd.xlane.f32.xlu0 %v1349_v50 }
 0x165   : > { %1445 = vadd.xlane.f32.xlu1 %v1436_v57 }
 0x166   : > { %1443 = vadd.xlane.f32.xlu0 %v1435_v53 }
 0x169   : > { %1453 = vadd.xlane.f32.xlu1 %v1440_v59 }
 0x16a   : > { %1451 = vadd.xlane.f32.xlu0 %v1439_v60 }
 0x16d   : > { %1457 = vadd.xlane.f32.xlu1 %v1442_v61 }
 0x16e   : > { %1455 = vadd.xlane.f32.xlu0 %v1441_v62 }
 0x1de   : > { %v1399_v56 = vpop.xlane.xlu1 %1398 }
 0x1df   : > { %v1407_v1 = vpop.xlane.xlu0 %1406  ;;  %v1412_v2 = vadd.f32 %v1399_v56, %v1388_v63 }
 0x1e0   : > { %v1416_v3 = vadd.f32 %v1407_v1, %v1392_v0 }
 0x1e1   : > { %1421 = vst.msk [vmem:[#allocation3 + $0x10] sm:$0xff] %vm1418_vm1, %v1412_v2 }
 0x1e2   : > { %1425 = vst.msk [vmem:[#allocation3 + $0x30] sm:$0xff] %vm1418_vm1, %v1416_v3  ;;  %v1401_v5 = vpop.xlane.xlu1 %1400 }
 0x1e3   : > { %v1413_v7 = vadd.f32 %v1401_v5, %v1389_v4  ;;  %v1395_v9 = vpop.xlane.xlu0 %1394 }
 0x1e4   : > { %v1410_v10 = vadd.f32 %v1395_v9, %v1386_v58 }
 0x1e5   : > { %1422 = vst.msk [vmem:[#allocation3 + $0x18] sm:$0xff] %vm1418_vm1, %v1413_v7 }
 0x1e6   : > { %1419 = vst.msk [vmem:[#allocation3] sm:$0xff] %vm1418_vm1, %v1410_v10  ;;  %v1409_v13 = vpop.xlane.xlu1 %1408 }
 0x1e7   : > { %v1417_v14 = vadd.f32 %v1409_v13, %v1393_v11  ;;  %v1403_v15 = vpop.xlane.xlu0 %1402 }
 0x1e8   : > { %v1414_v16 = vadd.f32 %v1403_v15, %v1390_v12 }
 0x1e9   : > { %1426 = vst.msk [vmem:[#allocation3 + $0x38] sm:$0xff] %vm1418_vm1, %v1417_v14 }
 0x1ea   : > { %1423 = vst.msk [vmem:[#allocation3 + $0x20] sm:$0xff] %vm1418_vm1, %v1414_v16  ;;  %v1405_v18 = vpop.xlane.xlu1 %1404 }
 0x1eb   : > { %v1415_v19 = vadd.f32 %v1405_v18, %v1391_v17  ;;  %v1448_v21 = vpop.xlane.xlu0 %1447 }
 0x1ec   : > { %v1461_v23 = vadd.f32 %v1448_v21, %v1429_v6 }
 0x1ed   : > { %1424 = vst.msk [vmem:[#allocation3 + $0x28] sm:$0xff] %vm1418_vm1, %v1415_v19 }
 0x1ee   : > { %1469 = vst.msk [vmem:[#allocation4 + $0x10] sm:$0xff] %vm1418_vm1, %v1461_v23  ;;  %v1450_v25 = vpop.xlane.xlu1 %1449 }
 0x1ef   : > { %v1462_v26 = vadd.f32 %v1450_v25, %v1430_v8  ;;  %v1397_v27 = vpop.xlane.xlu0 %1396 }
 0x1f0   : > { %v1411_v28 = vadd.f32 %v1397_v27, %v1387_v24 }
 0x1f1   : > { %1470 = vst.msk [vmem:[#allocation4 + $0x18] sm:$0xff] %vm1418_vm1, %v1462_v26 }
 0x1f2   : > { %1420 = vst.msk [vmem:[#allocation3 + $0x8] sm:$0xff] %vm1418_vm1, %v1411_v28  ;;  %v1446_v31 = vpop.xlane.xlu1 %1445 }
 0x1f3   : > { %v1460_v32 = vadd.f32 %v1446_v31, %v1428_v29  ;;  %v1444_v34 = vpop.xlane.xlu0 %1443 }
 0x1f4   : > { %v1459_v20 = vadd.f32 %v1444_v34, %v1427_v30 }
 0x1f5   : > { %1468 = vst.msk [vmem:[#allocation4 + $0x8] sm:$0xff] %vm1418_vm1, %v1460_v32 }
 0x1f6   : > { %1467 = vst.msk [vmem:[#allocation4] sm:$0xff] %vm1418_vm1, %v1459_v20  ;;  %v1454_v38 = vpop.xlane.xlu1 %1453 }
 0x1f7   : > { %v1464_v39 = vadd.f32 %v1454_v38, %v1432_v35  ;;  %v1452_v22 = vpop.xlane.xlu0 %1451 }
 0x1f8   : > { %v1463_v40 = vadd.f32 %v1452_v22, %v1431_v37 }
 0x1f9   : > { %1472 = vst.msk [vmem:[#allocation4 + $0x28] sm:$0xff] %vm1418_vm1, %v1464_v39 }
 0x1fa   : > { %1471 = vst.msk [vmem:[#allocation4 + $0x20] sm:$0xff] %vm1418_vm1, %v1463_v40  ;;  %v1458_v43 = vpop.xlane.xlu1 %1457 }
 0x1fb   : > { %v1466_v44 = vadd.f32 %v1458_v43, %v1434_v41  ;;  %v1456_v45 = vpop.xlane.xlu0 %1455 }
 0x1fc   : > { %v1465_v46 = vadd.f32 %v1456_v45, %v1433_v42 }
 0x1fd   : > { %1474 = vst.msk [vmem:[#allocation4 + $0x38] sm:$0xff] %vm1418_vm1, %v1466_v44 }
 0x1fe   : > { %1473 = vst.msk [vmem:[#allocation4 + $0x30] sm:$0xff] %vm1418_vm1, %v1465_v46 }
 0x1ff PF: > { %p1922_p6 = scmp.ne.s32.totalorder %s2361_s15, 1 }
 0x200   : > { %v1481_v47 = vld [vmem:[#allocation3 + $0x10] sm:$0xff] (!%p1922_p6)  ;;  %v2372_v33 = vmov (!%p1922_p6), 0   ;;  %v1479_v50 = vld [vmem:[#allocation3] sm:$0xff] (!%p1922_p6)  ;;  %v1482_v55 = vld [vmem:[#allocation3 + $0x18] sm:$0xff] (!%p1922_p6) }
 0x201   : > { %1478 = sbr.rel (%p1922_p6) target bundleno = 698 (0x2ba), region = 48  ;;  %v1497_v48 = vld [vmem:[#allocation4 + $0x10] sm:$0xff] (!%p1922_p6)  ;;  %2330 = vset.pattern.permute.xlu1 (!%p1922_p6), %v2372_v33  ;;  %2329 = vset.pattern.permute.xlu0 (!%p1922_p6), %v2372_v33  ;;  %v2780_v49 = vmul.f32 (!%p1922_p6), 0.03125, %v1481_v47  ;;  %v1495_v52 = vld [vmem:[#allocation4] sm:$0xff] (!%p1922_p6)  ;;  %v2782_v54 = vmul.f32 (!%p1922_p6), 0.03125, %v1479_v50  ;;  %v1498_v57 = vld [vmem:[#allocation4 + $0x18] sm:$0xff] (!%p1922_p6) }
 0x202   : > { %v1505_v36 = vmul.f32 (!%p1922_p6), 0.03125, %v1497_v48  ;;  %v1503_v51 = vmul.f32 (!%p1922_p6), 0.03125, %v1495_v52  ;;  %v2786_v59 = vmul.f32 (!%p1922_p6), 0.03125, %v1482_v55  ;;  %v1506_v60 = vmul.f32 (!%p1922_p6), 0.03125, %v1498_v57  ;;  %v1480_v61 = vld [vmem:[#allocation3 + $0x8] sm:$0xff] (!%p1922_p6)  ;;  %v1483_v7 = vld [vmem:[#allocation3 + $0x20] sm:$0xff] (!%p1922_p6) }
 0x203   : > { %v1513_v53 = vmul.f32 (!%p1922_p6), %v2780_v49, %v2780_v49  ;;  %v1496_v62 = vld [vmem:[#allocation4 + $0x8] sm:$0xff] (!%p1922_p6)  ;;  %v1511_v63 = vmul.f32 (!%p1922_p6), %v2782_v54, %v2782_v54  ;;  %v2790_v0 = vmul.f32 (!%p1922_p6), 0.03125, %v1480_v61  ;;  %v1499_v9 = vld [vmem:[#allocation4 + $0x20] sm:$0xff] (!%p1922_p6)  ;;  %v2798_v12 = vmul.f32 (!%p1922_p6), 0.03125, %v1483_v7  ;;  %v1486_v14 = vld [vmem:[#allocation3 + $0x38] sm:$0xff] (!%p1922_p6) }
 0x204   : > { %v1504_v56 = vmul.f32 (!%p1922_p6), 0.03125, %v1496_v62  ;;  %v1484_v1 = vld [vmem:[#allocation3 + $0x28] sm:$0xff] (!%p1922_p6)  ;;  %v1514_v4 = vmul.f32 (!%p1922_p6), %v2786_v59, %v2786_v59  ;;  %v1507_v13 = vmul.f32 (!%p1922_p6), 0.03125, %v1499_v9  ;;  %v1502_v15 = vld [vmem:[#allocation4 + $0x38] sm:$0xff] (!%p1922_p6)  ;;  %v2802_v18 = vmul.f32 (!%p1922_p6), 0.03125, %v1486_v14  ;;  %v1485_v19 = vld [vmem:[#allocation3 + $0x30] sm:$0xff] (!%p1922_p6) }
 0x205   : > { %v1500_v2 = vld [vmem:[#allocation4 + $0x28] sm:$0xff] (!%p1922_p6)  ;;  %v1521_v3 = vsub.f32 (!%p1922_p6), %v1505_v36, %v1513_v53  ;;  %v2794_v58 = vmul.f32 (!%p1922_p6), 0.03125, %v1484_v1  ;;  %v1519_v10 = vsub.f32 (!%p1922_p6), %v1503_v51, %v1511_v63  ;;  %v1512_v11 = vmul.f32 (!%p1922_p6), %v2790_v0, %v2790_v0  ;;  %v1501_v25 = vld [vmem:[#allocation4 + $0x30] sm:$0xff] (!%p1922_p6)  ;;  %v1527_v41 = vld [vmem:[%s2891_s2] sm:$0xff] (!%p1922_p6) }
 0x206   : > { %v1508_v5 = vmul.f32 (!%p1922_p6), 0.03125, %v1500_v2  ;;  %v1522_v17 = vsub.f32 (!%p1922_p6), %v1506_v60, %v1514_v4  ;;  %v1515_v8 = vmul.f32 (!%p1922_p6), %v2798_v12, %v2798_v12  ;;  %v1510_v24 = vmul.f32 (!%p1922_p6), 0.03125, %v1502_v15  ;;  %v1529_v40 = vld [vmem:[%s2891_s2 + $0x10] sm:$0xff] (!%p1922_p6)  ;;  %v1530_v43 = vld [vmem:[%s2891_s2 + $0x18] sm:$0xff] (!%p1922_p6)  ;;  %v1528_v46 = vld [vmem:[%s2891_s2 + $0x8] sm:$0xff] (!%p1922_p6) }
 0x207   : > { %v1537_v16 = vadd.f32 (!%p1922_p6), 1e-05, %v1521_v3  ;;  %v1516_v6 = vmul.f32 (!%p1922_p6), %v2794_v58, %v2794_v58  ;;  %v1535_v21 = vadd.f32 (!%p1922_p6), 1e-05, %v1519_v10  ;;  %v1520_v23 = vsub.f32 (!%p1922_p6), %v1504_v56, %v1512_v11  ;;  %v1532_v51 = vld [vmem:[%s2891_s2 + $0x28] sm:$0xff] (!%p1922_p6)  ;;  %v1531_v57 = vld [vmem:[%s2891_s2 + $0x20] sm:$0xff] (!%p1922_p6) }
 0x208   : > { %v1538_v26 = vadd.f32 1e-05, %v1522_v17  ;;  %v1518_v28 = vmul.f32 %v2802_v18, %v2802_v18  ;;  %v1523_v30 = vsub.f32 %v1507_v13, %v1515_v8  ;;  %v2808_v31 = vmul.f32 0.03125, %v1485_v19  ;;  %v1534_v62 = vld [vmem:[%s2891_s2 + $0x38] sm:$0xff]  ;;  %v1533_v56 = vld [vmem:[%s2891_s2 + $0x30] sm:$0xff]  ;;  %v1559_v7 = vld [vmem:[%s2892_s3] sm:$0xff] }
 0x209   : > { %2331 = vrsqrt.f32 %v1537_v16  ;;  %v1524_v27 = vsub.f32 %v1508_v5, %v1516_v6  ;;  %v1536_v29 = vadd.f32 1e-05, %v1520_v23  ;;  %v1509_v20 = vmul.f32 0.03125, %v1501_v25  ;;  %v1560_v5 = vld [vmem:[%s2892_s3 + $0x8] sm:$0xff]  ;;  %v1561_v13 = vld [vmem:[%s2892_s3 + $0x10] sm:$0xff]  ;;  %v1563_v17 = vld [vmem:[%s2892_s3 + $0x20] sm:$0xff] }
 0x20a   : > { %2333 = vrsqrt.f32 %v1535_v21  ;;  %v1526_v34 = vsub.f32 %v1510_v24, %v1518_v28  ;;  %v1539_v35 = vadd.f32 1e-05, %v1523_v30  ;;  %v1517_v37 = vmul.f32 %v2808_v31, %v2808_v31  ;;  %v1586_v30 = vld [vmem:[#allocation2 + $0x8] sm:$0xff] }
 0x20b   : > { %2335 = vrsqrt.f32 %v1538_v26  ;;  %v1540_v32 = vadd.f32 1e-05, %v1524_v27 }
 0x20c   : > { %2337 = vrsqrt.f32 %v1536_v29  ;;  %v1542_v38 = vadd.f32 1e-05, %v1526_v34  ;;  %v1525_v39 = vsub.f32 %v1509_v20, %v1517_v37  ;;  %v1585_v34 = vld [vmem:[#allocation2] sm:$0xff]  ;;  %v1588_v37 = vld [vmem:[#allocation2 + $0x18] sm:$0xff] }
 0x20d   : > { %2339 = vrsqrt.f32 %v1540_v32 }
 0x20e   : > { %2341 = vrsqrt.f32 %v1539_v35  ;;  %v1541_v22 = vadd.f32 1e-05, %v1525_v39  ;;  %v1587_v39 = vld [vmem:[#allocation2 + $0x10] sm:$0xff] }
 0x20f   : > { %2343 = vrsqrt.f32 %v1542_v38 }
 0x210   : > { %2345 = vrsqrt.f32 %v1541_v22 }
 0x213   : > { %v2332_v42 = vpop.eup %2331 }
 0x214   : > { %v2334_v44 = vpop.eup %2333  ;;  %v1553_v45 = vmul.f32 %v2332_v42, %v1529_v40 }
 0x215   : > { %v2336_v47 = vpop.eup %2335  ;;  %v1551_v48 = vmul.f32 %v2334_v44, %v1527_v41 }
 0x216   : > { %v2338_v33 = vpop.eup %2337  ;;  %1605 = vperm.xlu1 %2330, %v1553_v45   ;;  %v1554_v36 = vmul.f32 %v2336_v47, %v1530_v43  ;;  %v1569_v11 = vmul.f32 %v1553_v45, %v2780_v49  ;;  %v1564_v49 = vld [vmem:[%s2892_s3 + $0x28] sm:$0xff] }
 0x217   : > { %v2340_v50 = vpop.eup %2339  ;;  %1595 = vperm.xlu0 %2329, %v1551_v48   ;;  %v1552_v52 = vmul.f32 %v2338_v33, %v1528_v46  ;;  %v1567_v3 = vmul.f32 %v1551_v48, %v2782_v54  ;;  %v1562_v54 = vld [vmem:[%s2892_s3 + $0x18] sm:$0xff]  ;;  %v1590_v45 = vld [vmem:[#allocation2 + $0x28] sm:$0xff]  ;;  %v1589_v48 = vld [vmem:[#allocation2 + $0x20] sm:$0xff] }
 0x218   : > { %v2342_v55 = vpop.eup %2341  ;;  %v1556_v53 = vmul.f32 %v2340_v50, %v1532_v51  ;;  %v1570_v10 = vmul.f32 %v1554_v36, %v2786_v59  ;;  %v1577_v16 = vsub.f32 %v1561_v13, %v1569_v11 }
 0x219   : > { %v2344_v60 = vpop.eup %2343  ;;  %v1555_v61 = vmul.f32 %v2342_v55, %v1531_v57  ;;  %v1568_v2 = vmul.f32 %v1552_v52, %v2790_v0  ;;  %v1575_v0 = vsub.f32 %v1559_v7, %v1567_v3 }
 0x21a   : > { %1610 = vperm.xlu1 %2330, %v1554_v36   ;;  %v2346_v63 = vpop.eup %2345  ;;  %v1558_v1 = vmul.f32 %v2344_v60, %v1534_v62  ;;  %v1578_v14 = vsub.f32 %v1562_v54, %v1570_v10  ;;  %v1572_v15 = vmul.f32 %v1556_v53, %v2794_v58  ;;  %v1566_v58 = vld [vmem:[%s2892_s3 + $0x38] sm:$0xff]  ;;  %v1591_v62 = vld [vmem:[#allocation2 + $0x30] sm:$0xff] }
 0x21b   : > { %1600 = vperm.xlu0 %2329, %v1552_v52   ;;  %v1557_v4 = vmul.f32 %v2346_v63, %v1533_v56  ;;  %v1576_v9 = vsub.f32 %v1560_v5, %v1568_v2  ;;  %v1571_v59 = vmul.f32 %v1555_v61, %v2798_v12  ;;  %v1565_v12 = vld [vmem:[%s2892_s3 + $0x30] sm:$0xff] }
 0x21c   : > { %v1580_v6 = vsub.f32 %v1564_v49, %v1572_v15  ;;  %v1574_v19 = vmul.f32 %v1558_v1, %v2802_v18 }
 0x21d   : > { %v1579_v21 = vsub.f32 %v1563_v17, %v1571_v59  ;;  %v1573_v23 = vmul.f32 %v1557_v4, %v2808_v31 }
 0x21e   : > { %1620 = vperm.xlu1 %2330, %v1556_v53   ;;  %v1582_v8 = vsub.f32 %v1566_v58, %v1574_v19  ;;  %v1592_v53 = vld [vmem:[#allocation2 + $0x38] sm:$0xff] }
 0x21f   : > { %1615 = vperm.xlu0 %2329, %v1555_v61   ;;  %v1581_v24 = vsub.f32 %v1565_v12, %v1573_v23 }
 0x222   : > { %1630 = vperm.xlu1 %2330, %v1558_v1  }
 0x223   : > { %1625 = vperm.xlu0 %2329, %v1557_v4  }
 0x226   : > { %1648 = vperm.xlu1 %2330, %v1576_v9  }
 0x227   : > { %1643 = vperm.xlu0 %2329, %v1575_v0  }
 0x22a   : > { %1658 = vperm.xlu1 %2330, %v1578_v14  }
 0x22b   : > { %1653 = vperm.xlu0 %2329, %v1577_v16  }
 0x22e   : > { %1668 = vperm.xlu1 %2330, %v1580_v6  }
 0x22f   : > { %1663 = vperm.xlu0 %2329, %v1579_v21  }
 0x232   : > { %1678 = vperm.xlu1 %2330, %v1582_v8  }
 0x233   : > { %1673 = vperm.xlu0 %2329, %v1581_v24  }
 0x295   : > { %v1606_v25 = vpop.permute.xlu1 %1605 }
 0x296   : > { %v1596_v18 = vpop.permute.xlu0 %1595  ;;  %v1635_v44 = vmul.f32 %v1606_v25, %v1587_v39 }
 0x297   : > { %v1633_v35 = vmul.f32 %v1596_v18, %v1585_v34 }
 0x299   : > { %v1611_v26 = vpop.permute.xlu1 %1610 }
 0x29a   : > { %v1601_v27 = vpop.permute.xlu0 %1600  ;;  %v1636_v42 = vmul.f32 %v1611_v26, %v1588_v37 }
 0x29b   : > { %v1634_v20 = vmul.f32 %v1601_v27, %v1586_v30 }
 0x29d   : > { %v1621_v28 = vpop.permute.xlu1 %1620 }
 0x29e   : > { %v1616_v29 = vpop.permute.xlu0 %1615  ;;  %v1638_v51 = vmul.f32 %v1621_v28, %v1590_v45 }
 0x29f   : > { %v1637_v57 = vmul.f32 %v1616_v29, %v1589_v48 }
 0x2a1   : > { %v1631_v32 = vpop.permute.xlu1 %1630 }
 0x2a2   : > { %v1626_v31 = vpop.permute.xlu0 %1625  ;;  %v1640_v3 = vmul.f32 %v1631_v32, %v1592_v53 }
 0x2a3   : > { %v1639_v5 = vmul.f32 %v1626_v31, %v1591_v62 }
 0x2a5   : > { %v1649_v38 = vpop.permute.xlu1 %1648 }
 0x2a6   : > { %v1682_v22 = vadd.f32 %v1649_v38, %v1634_v20  ;;  %v1644_v40 = vpop.permute.xlu0 %1643 }
 0x2a7   : > { %v1681_v41 = vadd.f32 %v1644_v40, %v1633_v35 }
 0x2a8   : > { %v1690_v43 = vmax.f32 %v1682_v22, 0.0 }
 0x2a9   : > { %v1689_v46 = vmax.f32 %v1681_v41, 0.0  ;;  %v1659_v47 = vpop.permute.xlu1 %1658 }
 0x2aa   : > { %v1684_v33 = vadd.f32 %v1659_v47, %v1636_v42  ;;  %v1654_v36 = vpop.permute.xlu0 %1653 }
 0x2ab   : > { %v1947_v50 = vpack.c.bf16 %v1690_v43, %v1689_v46  ;;  %v1683_v52 = vadd.f32 %v1654_v36, %v1635_v44 }
 0x2ac   : > { %v1692_v55 = vmax.f32 %v1684_v33, 0.0 }
 0x2ad   : > { %1948 = vst [vmem:[%s2893_s4] sm:$0xff] %v1947_v50   ;;  %v1691_v60 = vmax.f32 %v1683_v52, 0.0  ;;  %v1669_v61 = vpop.permute.xlu1 %1668 }
 0x2ae   : > { %v1686_v63 = vadd.f32 %v1669_v61, %v1638_v51  ;;  %v1664_v56 = vpop.permute.xlu0 %1663 }
 0x2af   : > { %v1952_v1 = vpack.c.bf16 %v1692_v55, %v1691_v60  ;;  %v1685_v2 = vadd.f32 %v1664_v56, %v1637_v57 }
 0x2b0   : > { %v1694_v4 = vmax.f32 %v1686_v63, 0.0 }
 0x2b1   : > { %1964 = vst [vmem:[%s2893_s4 + $0x8] sm:$0xff] %v1952_v1   ;;  %v1693_v7 = vmax.f32 %v1685_v2, 0.0  ;;  %v1679_v9 = vpop.permute.xlu1 %1678 }
 0x2b2   : > { %v1688_v10 = vadd.f32 %v1679_v9, %v1640_v3  ;;  %v1674_v11 = vpop.permute.xlu0 %1673 }
 0x2b3   : > { %v1957_v0 = vpack.c.bf16 %v1694_v4, %v1693_v7  ;;  %v1687_v54 = vadd.f32 %v1674_v11, %v1639_v5 }
 0x2b4   : > { %v1696_v13 = vmax.f32 %v1688_v10, 0.0 }
 0x2b5   : > { %1965 = vst [vmem:[%s2893_s4 + $0x10] sm:$0xff] %v1957_v0   ;;  %v1695_v14 = vmax.f32 %v1687_v54, 0.0 }
 0x2b7   : > { %v1962_v15 = vpack.c.bf16 %v1696_v13, %v1695_v14 }
 0x2b9   : > { %1966 = vst [vmem:[%s2893_s4 + $0x18] sm:$0xff] %v1962_v15  }
 0x2ba PF: > { %s14_s17 = sadd.s32 1, %s2369_s17   ;;  %s2894_s15 = smov %s2365_s16 }
 0x2bb   : > { %p11_p7 = scmp.ge.s32.totalorder %s14_s17, 4   ;;  %s2895_s16 = smov %s2897_s18 }
 0x2bd   :  { %13 = sbr.rel (!%p11_p7) target bundleno = 2 (0x2), region = 80 }

// kernel: decoder_forward.5
= control target key start
LH: loop header
LB: loop body
LE: loop exit
PB: predicated region body
PF: predicated region fallthrough
CT: control target
= control target key end

     0   :  { %s3402_s15 = smov 0   ;;  %s3404_s16 = smov 0   ;;  %s4250_s0 = inlined_call_operand.vmem [shape: bf16[128,1152], index: 0, kind: input, shape index: {}]   ;;  %s4251_s1 = inlined_call_operand.vmem [shape: bf16[1152,128], index: 1, kind: input, shape index: {}]   ;;  %s4252_s2 = inlined_call_operand.vmem [shape: f32[128,1], index: 2, kind: input, shape index: {}]   ;;  %s4253_s3 = inlined_call_operand.vmem [shape: f32[128,1], index: 3, kind: input, shape index: {}]   ;;  %s4254_s4 = inlined_call_operand.vmem [shape: bf16[128,128], index: 4, kind: output, shape index: {}]  }
   0x1   :  { %s3406_s17 = smov 0  }
   0x2 LB: > { %s26_s18 = sadd.s32 1, %s3369_s16  ;;  %p2563_p0 = scmp.ge.s32.totalorder %s3373_s17, 1  ;;  %s3373_s17 = sphi %s3406_s17, %s14_s17   ;;  %s3369_s16 = sphi %s3404_s16, %s4256_s16   ;;  %s3365_s15 = sphi %s3402_s15, %s4255_s15  }
   0x3   : > { %p28_p1 = scmp.ge.s32.totalorder %s26_s18, 2  ;;  %p183_p2 = scmp.lt.s32.totalorder %s3373_s17, 3 }
   0x5   : > { %s4258_s18 = smov (%p28_p1, %s26_s18), 0  ;;  %p184_p3 = pnand %p2563_p0, %p183_p2 }
   0x6   : > { %p225_p4 = scmp.eq.s32.totalorder (!%p184_p3), %s3365_s15, 0 }
   0x7   : > { %187 = sbr.rel (%p184_p3) target bundleno = 833 (0x341), region = 36 }
   0xe   : > { %230 = sbr.rel (!%p225_p4) target bundleno = 31 (0x1f), region = 40  ;;  %vm231_vm0 = vcmask (%p225_p4), 7168   ;;  %v3375_v0 = vmov (%p225_p4), 0.0  }
   0xf   : > { %232 = vst.msk [vmem:[#allocation3] sm:$0xff] (%p225_p4), %vm231_vm0, %v3375_v0  ;;  %233 = vst.msk [vmem:[#allocation3 + $0x8] sm:$0xff] (%p225_p4), %vm231_vm0, %v3375_v0 }
  0x10   : > { %234 = vst.msk [vmem:[#allocation3 + $0x10] sm:$0xff] (%p225_p4), %vm231_vm0, %v3375_v0  ;;  %235 = vst.msk [vmem:[#allocation3 + $0x18] sm:$0xff] (%p225_p4), %vm231_vm0, %v3375_v0 }
  0x11   : > { %236 = vst.msk [vmem:[#allocation3 + $0x20] sm:$0xff] (%p225_p4), %vm231_vm0, %v3375_v0  ;;  %237 = vst.msk [vmem:[#allocation3 + $0x28] sm:$0xff] (%p225_p4), %vm231_vm0, %v3375_v0 }
  0x12   : > { %238 = vst.msk [vmem:[#allocation3 + $0x30] sm:$0xff] (%p225_p4), %vm231_vm0, %v3375_v0  ;;  %239 = vst.msk [vmem:[#allocation3 + $0x38] sm:$0xff] (%p225_p4), %vm231_vm0, %v3375_v0 }
  0x13   : > { %240 = vst.msk [vmem:[#allocation3 + $0x40] sm:$0xff] (%p225_p4), %vm231_vm0, %v3375_v0  ;;  %241 = vst.msk [vmem:[#allocation3 + $0x48] sm:$0xff] (%p225_p4), %vm231_vm0, %v3375_v0 }
  0x14   : > { %242 = vst.msk [vmem:[#allocation3 + $0x50] sm:$0xff] (%p225_p4), %vm231_vm0, %v3375_v0  ;;  %243 = vst.msk [vmem:[#allocation3 + $0x58] sm:$0xff] (%p225_p4), %vm231_vm0, %v3375_v0 }
  0x15   : > { %244 = vst.msk [vmem:[#allocation3 + $0x60] sm:$0xff] %vm231_vm0, %v3375_v0  ;;  %245 = vst.msk [vmem:[#allocation3 + $0x68] sm:$0xff] %vm231_vm0, %v3375_v0 }
  0x16   : > { %246 = vst.msk [vmem:[#allocation3 + $0x70] sm:$0xff] %vm231_vm0, %v3375_v0  ;;  %247 = vst.msk [vmem:[#allocation3 + $0x78] sm:$0xff] %vm231_vm0, %v3375_v0 }
  0x17   : > { %248 = vst.msk [vmem:[#allocation4] sm:$0xff] %vm231_vm0, %v3375_v0  ;;  %249 = vst.msk [vmem:[#allocation4 + $0x8] sm:$0xff] %vm231_vm0, %v3375_v0 }
  0x18   : > { %250 = vst.msk [vmem:[#allocation4 + $0x10] sm:$0xff] %vm231_vm0, %v3375_v0  ;;  %251 = vst.msk [vmem:[#allocation4 + $0x18] sm:$0xff] %vm231_vm0, %v3375_v0 }
  0x19   : > { %252 = vst.msk [vmem:[#allocation4 + $0x20] sm:$0xff] %vm231_vm0, %v3375_v0  ;;  %253 = vst.msk [vmem:[#allocation4 + $0x28] sm:$0xff] %vm231_vm0, %v3375_v0 }
  0x1a   : > { %254 = vst.msk [vmem:[#allocation4 + $0x30] sm:$0xff] %vm231_vm0, %v3375_v0  ;;  %255 = vst.msk [vmem:[#allocation4 + $0x38] sm:$0xff] %vm231_vm0, %v3375_v0 }
  0x1b   : > { %256 = vst.msk [vmem:[#allocation4 + $0x40] sm:$0xff] %vm231_vm0, %v3375_v0  ;;  %257 = vst.msk [vmem:[#allocation4 + $0x48] sm:$0xff] %vm231_vm0, %v3375_v0 }
  0x1c   : > { %258 = vst.msk [vmem:[#allocation4 + $0x50] sm:$0xff] %vm231_vm0, %v3375_v0  ;;  %259 = vst.msk [vmem:[#allocation4 + $0x58] sm:$0xff] %vm231_vm0, %v3375_v0 }
  0x1d   : > { %260 = vst.msk [vmem:[#allocation4 + $0x60] sm:$0xff] %vm231_vm0, %v3375_v0  ;;  %261 = vst.msk [vmem:[#allocation4 + $0x68] sm:$0xff] %vm231_vm0, %v3375_v0 }
  0x1e   : > { %262 = vst.msk [vmem:[#allocation4 + $0x70] sm:$0xff] %vm231_vm0, %v3375_v0  ;;  %263 = vst.msk [vmem:[#allocation4 + $0x78] sm:$0xff] %vm231_vm0, %v3375_v0 }
  0x1f PF: > { %p2565_p5 = scmp.ne.s32.totalorder %s3365_s15, 0 }
  0x20   : > { %v3141_v1 = vld [vmem:[%s4251_s1 + $0x40] sm:$0xff] (!%p2565_p5)   ;;  %v3145_v5 = vld [vmem:[%s4251_s1 + $0x48] sm:$0xff] (!%p2565_p5)   ;;  %v3149_v9 = vld [vmem:[%s4251_s1 + $0x50] sm:$0xff] (!%p2565_p5)   ;;  %vm1858_vm1 = vcmask (!%p2565_p5), 7168  }
  0x21   : > { %266 = sbr.rel (%p2565_p5) target bundleno = 614 (0x266), region = 44  ;;  %v3142_v2 = vld [vmem:[%s4251_s1 + $0xc0] sm:$0xff] (!%p2565_p5)   ;;  %2795 = vmatprep.subr.bf16.mxu0 (!%p2565_p5), %v3141_v1  ;;  %v3146_v6 = vld [vmem:[%s4251_s1 + $0xc8] sm:$0xff] (!%p2565_p5)   ;;  %v3150_v10 = vld [vmem:[%s4251_s1 + $0xd0] sm:$0xff] (!%p2565_p5)  }
  0x22   : > { %v3143_v3 = vld [vmem:[%s4251_s1] sm:$0xff] (!%p2565_p5)   ;;  %2859 = vmatprep.subr.bf16.mxu1 (!%p2565_p5), %v3142_v2  ;;  %v3147_v7 = vld [vmem:[%s4251_s1 + $0x8] sm:$0xff] (!%p2565_p5)   ;;  %v3151_v11 = vld [vmem:[%s4251_s1 + $0x10] sm:$0xff] (!%p2565_p5)  }
  0x23   : > { %v3144_v4 = vld [vmem:[%s4251_s1 + $0x80] sm:$0xff] (!%p2565_p5)   ;;  %2796 = vmatpush3.bf16.msra.mxu0 (!%p2565_p5), %v3143_v3  ;;  %v3148_v8 = vld [vmem:[%s4251_s1 + $0x88] sm:$0xff] (!%p2565_p5)   ;;  %v3152_v12 = vld [vmem:[%s4251_s1 + $0x90] sm:$0xff] (!%p2565_p5)  }
  0x24   : > { %2860 = vmatpush3.bf16.msra.mxu1 (!%p2565_p5), %v3144_v4  ;;  %2797 = vmatprep.subr.bf16.mxu0 (!%p2565_p5), %v3145_v5  ;;  %v3153_v13 = vld [vmem:[%s4251_s1 + $0x58] sm:$0xff] (!%p2565_p5)   ;;  %v3157_v17 = vld [vmem:[%s4251_s1 + $0x60] sm:$0xff] (!%p2565_p5)   ;;  %v3161_v21 = vld [vmem:[%s4251_s1 + $0x68] sm:$0xff] (!%p2565_p5)  }
  0x25   : > { %2861 = vmatprep.subr.bf16.mxu1 (!%p2565_p5), %v3146_v6  ;;  %v3154_v14 = vld [vmem:[%s4251_s1 + $0xd8] sm:$0xff] (!%p2565_p5)   ;;  %v3158_v18 = vld [vmem:[%s4251_s1 + $0xe0] sm:$0xff] (!%p2565_p5)   ;;  %v3162_v22 = vld [vmem:[%s4251_s1 + $0xe8] sm:$0xff] (!%p2565_p5)  }
  0x26   : > { %v3155_v15 = vld [vmem:[%s4251_s1 + $0x18] sm:$0xff] (!%p2565_p5)   ;;  %v3159_v19 = vld [vmem:[%s4251_s1 + $0x20] sm:$0xff] (!%p2565_p5)   ;;  %v3163_v23 = vld [vmem:[%s4251_s1 + $0x28] sm:$0xff] (!%p2565_p5)  }
  0x27   : > { %2798 = vmatpush3.bf16.msra.mxu0 (!%p2565_p5), %v3147_v7  ;;  %v3156_v16 = vld [vmem:[%s4251_s1 + $0x98] sm:$0xff] (!%p2565_p5)   ;;  %v3160_v20 = vld [vmem:[%s4251_s1 + $0xa0] sm:$0xff] (!%p2565_p5)   ;;  %v3164_v24 = vld [vmem:[%s4251_s1 + $0xa8] sm:$0xff] (!%p2565_p5)  }
  0x28   : > { %2862 = vmatpush3.bf16.msra.mxu1 %v3148_v8  ;;  %2799 = vmatprep.subr.bf16.mxu0 %v3149_v9  ;;  %v3165_v25 = vld [vmem:[%s4251_s1 + $0x70] sm:$0xff]   ;;  %v3169_v29 = vld [vmem:[%s4251_s1 + $0x78] sm:$0xff]   ;;  %v3173_v33 = vld [vmem:[%s4250_s0] ss:$36 sps:$4 sm:$0xff]  }
  0x29   : > { %2863 = vmatprep.subr.bf16.mxu1 %v3150_v10  ;;  %v3166_v26 = vld [vmem:[%s4251_s1 + $0xf0] sm:$0xff]   ;;  %v3170_v30 = vld [vmem:[%s4251_s1 + $0xf8] sm:$0xff]   ;;  %v3175_v34 = vld [vmem:[%s4250_s0 + $0x4] ss:$36 sps:$4 sm:$0xff]  }
  0x2a   : > { %v3167_v27 = vld [vmem:[%s4251_s1 + $0x30] sm:$0xff]   ;;  %v3171_v31 = vld [vmem:[%s4251_s1 + $0x38] sm:$0xff]   ;;  %v3176_v35 = vld [vmem:[%s4250_s0 + $0x8] ss:$36 sps:$4 sm:$0xff]   ;;  %1323 = vmatprep.mubr.bf16.mxu0 %v3175_v34 }
  0x2b   : > { %2800 = vmatpush3.bf16.msra.mxu0 %v3151_v11  ;;  %v3168_v28 = vld [vmem:[%s4251_s1 + $0xb0] sm:$0xff]   ;;  %v3172_v32 = vld [vmem:[%s4251_s1 + $0xb8] sm:$0xff]   ;;  %v3179_v37 = vld [vmem:[%s4251_s1 + $0x140] sm:$0xff]  }
  0x2c   : > { %2864 = vmatpush3.bf16.msra.mxu1 %v3152_v12  ;;  %2801 = vmatprep.subr.bf16.mxu0 %v3153_v13  ;;  %v3178_v36 = vld [vmem:[%s4250_s0 + $0xc] ss:$36 sps:$4 sm:$0xff]   ;;  %v3180_v38 = vld [vmem:[%s4251_s1 + $0x1c0] sm:$0xff]   ;;  %v3185_v42 = vld [vmem:[%s4250_s0 + $0x54] ss:$36 sps:$4 sm:$0xff]  }
  0x2d   : > { %2865 = vmatprep.subr.bf16.mxu1 %v3154_v14  ;;  %1420 = vmatprep.mubr.bf16.mxu1 %v3178_v36  ;;  %v3181_v39 = vld [vmem:[%s4251_s1 + $0x100] sm:$0xff]   ;;  %v3183_v41 = vld [vmem:[%s4250_s0 + $0x4c] ss:$36 sps:$4 sm:$0xff]   ;;  %v3193_v49 = vld [vmem:[%s4250_s0 + $0x94] ss:$36 sps:$4 sm:$0xff]  }
  0x2e   : > { %v3182_v40 = vld [vmem:[%s4251_s1 + $0x180] sm:$0xff]   ;;  %v3187_v43 = vld [vmem:[%s4250_s0 + $0x48] ss:$36 sps:$4 sm:$0xff]   ;;  %v3188_v44 = vld [vmem:[%s4250_s0 + $0x50] ss:$36 sps:$4 sm:$0xff]  }
  0x2f   : > { %2802 = vmatpush3.bf16.msra.mxu0 %v3155_v15  ;;  %v3189_v45 = vld [vmem:[%s4251_s1 + $0x148] sm:$0xff]   ;;  %v3195_v50 = vld [vmem:[%s4250_s0 + $0x9c] ss:$36 sps:$4 sm:$0xff]   ;;  %v3197_v51 = vld [vmem:[%s4250_s0 + $0x90] ss:$36 sps:$4 sm:$0xff]  }
  0x30   : > { %2866 = vmatpush3.bf16.msra.mxu1 %v3156_v16  ;;  %2803 = vmatprep.subr.bf16.mxu0 %v3157_v17  ;;  %v3190_v46 = vld [vmem:[%s4251_s1 + $0x1c8] sm:$0xff]   ;;  %v3198_v52 = vld [vmem:[%s4250_s0 + $0x98] ss:$36 sps:$4 sm:$0xff]   ;;  %v3199_v53 = vld [vmem:[%s4251_s1 + $0x150] sm:$0xff]  }
  0x31   : > { %2867 = vmatprep.subr.bf16.mxu1 %v3158_v18  ;;  %v3191_v47 = vld [vmem:[%s4251_s1 + $0x108] sm:$0xff]   ;;  %v3200_v54 = vld [vmem:[%s4251_s1 + $0x1d0] sm:$0xff]   ;;  %v3203_v57 = vld [vmem:[%s4250_s0 + $0xdc] ss:$36 sps:$4 sm:$0xff]  }
  0x32   : > { %v3192_v48 = vld [vmem:[%s4251_s1 + $0x188] sm:$0xff]   ;;  %v3201_v55 = vld [vmem:[%s4251_s1 + $0x110] sm:$0xff]   ;;  %v3207_v59 = vld [vmem:[%s4250_s0 + $0xd8] ss:$36 sps:$4 sm:$0xff]  }
  0x33   : > { %2804 = vmatpush3.bf16.msra.mxu0 %v3159_v19  ;;  %v3202_v56 = vld [vmem:[%s4251_s1 + $0x190] sm:$0xff]   ;;  %v3205_v58 = vld [vmem:[%s4250_s0 + $0xe4] ss:$36 sps:$4 sm:$0xff]   ;;  %v3209_v61 = vld [vmem:[%s4251_s1 + $0x158] sm:$0xff]  }
  0x34   : > { %2868 = vmatpush3.bf16.msra.mxu1 %v3160_v20  ;;  %2805 = vmatprep.subr.bf16.mxu0 %v3161_v21  ;;  %v3208_v60 = vld [vmem:[%s4250_s0 + $0xe0] ss:$36 sps:$4 sm:$0xff]   ;;  %v3210_v62 = vld [vmem:[%s4251_s1 + $0x1d8] sm:$0xff]   ;;  %v3215_v2 = vld [vmem:[%s4250_s0 + $0x12c] ss:$36 sps:$4 sm:$0xff]  }
  0x35   : > { %2869 = vmatprep.subr.bf16.mxu1 %v3162_v22  ;;  %v3211_v63 = vld [vmem:[%s4251_s1 + $0x118] sm:$0xff]   ;;  %v3213_v1 = vld [vmem:[%s4250_s0 + $0x124] ss:$36 sps:$4 sm:$0xff]   ;;  %v3223_v9 = vld [vmem:[%s4250_s0 + $0x16c] ss:$36 sps:$4 sm:$0xff]  }
  0x36   : > { %v3212_v0 = vld [vmem:[%s4251_s1 + $0x198] sm:$0xff]   ;;  %v3217_v3 = vld [vmem:[%s4250_s0 + $0x120] ss:$36 sps:$4 sm:$0xff]   ;;  %v3218_v5 = vld [vmem:[%s4250_s0 + $0x128] ss:$36 sps:$4 sm:$0xff]  }
  0x37   : > { %2806 = vmatpush3.bf16.msra.mxu0 %v3163_v23  ;;  %v3219_v4 = vld [vmem:[%s4251_s1 + $0x160] sm:$0xff]   ;;  %v3225_v10 = vld [vmem:[%s4250_s0 + $0x174] ss:$36 sps:$4 sm:$0xff]   ;;  %v3229_v11 = vld [vmem:[%s4251_s1 + $0x168] sm:$0xff]  }
  0x38   : > { %2870 = vmatpush3.bf16.msra.mxu1 %v3164_v24  ;;  %2807 = vmatprep.subr.bf16.mxu0 %v3165_v25  ;;  %v3220_v6 = vld [vmem:[%s4251_s1 + $0x1e0] sm:$0xff]   ;;  %v3230_v12 = vld [vmem:[%s4251_s1 + $0x1e8] sm:$0xff]   ;;  %v3228_v16 = vld [vmem:[%s4250_s0 + $0x170] ss:$36 sps:$4 sm:$0xff]  }
  0x39   : > { %2871 = vmatprep.subr.bf16.mxu1 %v3166_v26  ;;  %v3221_v7 = vld [vmem:[%s4251_s1 + $0x120] sm:$0xff]   ;;  %v3227_v13 = vld [vmem:[%s4250_s0 + $0x168] ss:$36 sps:$4 sm:$0xff]   ;;  %v3233_v17 = vld [vmem:[%s4250_s0 + $0x1b4] ss:$36 sps:$4 sm:$0xff]  }
  0x3a   : > { %v3222_v8 = vld [vmem:[%s4251_s1 + $0x1a0] sm:$0xff]   ;;  %v3231_v14 = vld [vmem:[%s4251_s1 + $0x128] sm:$0xff]   ;;  %v3239_v19 = vld [vmem:[%s4251_s1 + $0x170] sm:$0xff]  }
  0x3b   : > { %2808 = vmatpush3.bf16.msra.mxu0 %v3167_v27  ;;  %v3232_v15 = vld [vmem:[%s4251_s1 + $0x1a8] sm:$0xff]   ;;  %v3235_v18 = vld [vmem:[%s4250_s0 + $0x1bc] ss:$36 sps:$4 sm:$0xff]   ;;  %v3240_v20 = vld [vmem:[%s4251_s1 + $0x1f0] sm:$0xff]  }
  0x3c   : > { %2872 = vmatpush3.bf16.msra.mxu1 %v3168_v28  ;;  %2809 = vmatprep.subr.bf16.mxu0 %v3169_v29  ;;  %v3241_v21 = vld [vmem:[%s4251_s1 + $0x130] sm:$0xff]   ;;  %v3238_v24 = vld [vmem:[%s4250_s0 + $0x1b8] ss:$36 sps:$4 sm:$0xff]   ;;  %v3245_v26 = vld [vmem:[%s4250_s0 + $0x204] ss:$36 sps:$4 sm:$0xff]  }
  0x3d   : > { %2873 = vmatprep.subr.bf16.mxu1 %v3170_v30  ;;  %v3242_v22 = vld [vmem:[%s4251_s1 + $0x1b0] sm:$0xff]   ;;  %v3243_v25 = vld [vmem:[%s4250_s0 + $0x1fc] ss:$36 sps:$4 sm:$0xff]  }
  0x3e   : > { %v3237_v23 = vld [vmem:[%s4250_s0 + $0x1b0] ss:$36 sps:$4 sm:$0xff]   ;;  %v3249_v27 = vld [vmem:[%s4251_s1 + $0x178] sm:$0xff]  }
  0x3f   : > { %2810 = vmatpush3.bf16.msra.mxu0 %v3171_v31  ;;  %v3250_v28 = vld [vmem:[%s4251_s1 + $0x1f8] sm:$0xff]   ;;  %v3253_v36 = vld [vmem:[%s4250_s0 + $0x10] ss:$36 sps:$4 sm:$0xff]  }
  0x40   : > { %2874 = vmatpush3.bf16.msra.mxu1 %v3172_v32  ;;  %2923 = vmatprep.subr.bf16.mxu0 %v3179_v37  ;;  %v3251_v29 = vld [vmem:[%s4251_s1 + $0x138] sm:$0xff]   ;;  %v3248_v32 = vld [vmem:[%s4250_s0 + $0x200] ss:$36 sps:$4 sm:$0xff]  }
  0x41   : > { %2987 = vmatprep.subr.bf16.mxu1 %v3180_v38  ;;  %v3252_v30 = vld [vmem:[%s4251_s1 + $0x1b8] sm:$0xff]  }
  0x42   : > { %1324 = vmatmul.mubr.bf16.vlgmr.msra.gmra.mrb[0].mxu0 %v3173_v33  ;;  %v3247_v31 = vld [vmem:[%s4250_s0 + $0x1f8] ss:$36 sps:$4 sm:$0xff]   ;;  %v3259_v33 = vld [vmem:[%s4251_s1 + $0x200] sm:$0xff]  }
  0x43   : > { %1421 = vmatmul.mubr.bf16.vlgmr.msra.gmra.mrb[0].mxu1 %v3176_v35  ;;  %2924 = vmatpush3.bf16.msra.mxu0 %v3181_v39  ;;  %v3255_v34 = vld [vmem:[%s4250_s0 + $0x14] ss:$36 sps:$4 sm:$0xff]   ;;  %v3258_v35 = vld [vmem:[%s4250_s0 + $0x1c] ss:$36 sps:$4 sm:$0xff]   ;;  %v3262_v39 = vld [vmem:[%s4250_s0 + $0x64] ss:$36 sps:$4 sm:$0xff]  }
  0x44   : > { %2988 = vmatpush3.bf16.msra.mxu1 %v3182_v40  ;;  %1331 = vmatprep.mubr.bf16.mxu0 %v3183_v41  ;;  %v3256_v37 = vld [vmem:[%s4250_s0 + $0x18] ss:$36 sps:$4 sm:$0xff]   ;;  %v3266_v40 = vld [vmem:[%s4251_s1 + $0x208] sm:$0xff]   ;;  %v3273_v41 = vld [vmem:[%s4251_s1 + $0x210] sm:$0xff]  }
  0x45   : > { %1428 = vmatprep.mubr.bf16.mxu1 %v3185_v42  ;;  %2925 = vmatprep.subr.bf16.mxu0 %v3189_v45  ;;  %v3260_v38 = vld [vmem:[%s4250_s0 + $0x5c] ss:$36 sps:$4 sm:$0xff]   ;;  %v3269_v45 = vld [vmem:[%s4250_s0 + $0xac] ss:$36 sps:$4 sm:$0xff]  }
  0x46   : > { %2989 = vmatprep.subr.bf16.mxu1 %v3190_v46  ;;  %v3264_v42 = vld [vmem:[%s4250_s0 + $0x58] ss:$36 sps:$4 sm:$0xff]  }
  0x47   : > { %2926 = vmatpush3.bf16.msra.mxu0 %v3191_v47  ;;  %v3280_v46 = vld [vmem:[%s4251_s1 + $0x218] sm:$0xff]   ;;  %v3287_v47 = vld [vmem:[%s4251_s1 + $0x220] sm:$0xff]  }
  0x48   : > { %2990 = vmatpush3.bf16.msra.mxu1 %v3192_v48  ;;  %2927 = vmatprep.subr.bf16.mxu0 %v3199_v53  ;;  %v3271_v48 = vld [vmem:[%s4250_s0 + $0xa0] ss:$36 sps:$4 sm:$0xff]   ;;  %v3278_v53 = vld [vmem:[%s4250_s0 + $0xe8] ss:$36 sps:$4 sm:$0xff]  }
  0x49   : > { %2991 = vmatprep.subr.bf16.mxu1 %v3200_v54  ;;  %v3301_v54 = vld [vmem:[%s4251_s1 + $0x230] sm:$0xff]  }
  0x4a   : > { %1332 = vmatmul.mubr.bf16.gmra.mrb[4].mxu0 %v3187_v43  ;;  %v3265_v43 = vld [vmem:[%s4250_s0 + $0x60] ss:$36 sps:$4 sm:$0xff]  }
  0x4b   : > { %1429 = vmatmul.mubr.bf16.gmra.mrb[4].mxu1 %v3188_v44  ;;  %1339 = vmatprep.mubr.bf16.mxu0 %v3193_v49  ;;  %v3267_v44 = vld [vmem:[%s4250_s0 + $0xa4] ss:$36 sps:$4 sm:$0xff]  }
  0x4c   : > { %1436 = vmatprep.mubr.bf16.mxu1 %v3195_v50  ;;  %2928 = vmatpush3.bf16.msra.mxu0 %v3201_v55  ;;  %v3272_v49 = vld [vmem:[%s4250_s0 + $0xa8] ss:$36 sps:$4 sm:$0xff]   ;;  %v3279_v55 = vld [vmem:[%s4250_s0 + $0xf0] ss:$36 sps:$4 sm:$0xff]  }
  0x4d   : > { %2992 = vmatpush3.bf16.msra.mxu1 %v3202_v56  ;;  %2929 = vmatprep.subr.bf16.mxu0 %v3209_v61  ;;  %v3274_v50 = vld [vmem:[%s4250_s0 + $0xec] ss:$36 sps:$4 sm:$0xff]   ;;  %v3281_v56 = vld [vmem:[%s4250_s0 + $0x134] ss:$36 sps:$4 sm:$0xff]   ;;  %v3288_v61 = vld [vmem:[%s4250_s0 + $0x17c] ss:$36 sps:$4 sm:$0xff]  }
  0x4e   : > { %2993 = vmatprep.subr.bf16.mxu1 %v3210_v62  ;;  %v3290_v62 = vld [vmem:[%s4250_s0 + $0x184] ss:$36 sps:$4 sm:$0xff]  }
  0x50   : > { %2930 = vmatpush3.bf16.msra.mxu0 %v3211_v63  ;;  %v3292_v63 = vld [vmem:[%s4250_s0 + $0x178] ss:$36 sps:$4 sm:$0xff]  }
  0x51   : > { %2994 = vmatpush3.bf16.msra.mxu1 %v3212_v0  ;;  %2931 = vmatprep.subr.bf16.mxu0 %v3219_v4  ;;  %v3293_v0 = vld [vmem:[%s4250_s0 + $0x180] ss:$36 sps:$4 sm:$0xff]   ;;  %v3300_v4 = vld [vmem:[%s4250_s0 + $0x1c8] ss:$36 sps:$4 sm:$0xff]  }
  0x52   : > { %1340 = vmatmul.mubr.bf16.gmra.mrb[8].mxu0 %v3197_v51  ;;  %2995 = vmatprep.subr.bf16.mxu1 %v3220_v6  ;;  %v3276_v51 = vld [vmem:[%s4250_s0 + $0xf4] ss:$36 sps:$4 sm:$0xff]  }
  0x53   : > { %1437 = vmatmul.mubr.bf16.gmra.mrb[8].mxu1 %v3198_v52  ;;  %1347 = vmatprep.mubr.bf16.mxu0 %v3203_v57  ;;  %v3294_v52 = vld [vmem:[%s4251_s1 + $0x228] sm:$0xff]   ;;  %v3283_v57 = vld [vmem:[%s4250_s0 + $0x13c] ss:$36 sps:$4 sm:$0xff]   ;;  %v3304_v6 = vld [vmem:[%s4250_s0 + $0x214] ss:$36 sps:$4 sm:$0xff]  }
  0x54   : > { %1444 = vmatprep.mubr.bf16.mxu1 %v3205_v58  ;;  %2932 = vmatpush3.bf16.msra.mxu0 %v3221_v7  ;;  %v3308_v58 = vld [vmem:[%s4251_s1 + $0x238] sm:$0xff]   ;;  %v3306_v7 = vld [vmem:[%s4250_s0 + $0x208] ss:$36 sps:$4 sm:$0xff]  }
  0x55   : > { %2996 = vmatpush3.bf16.msra.mxu1 %v3222_v8  ;;  %2933 = vmatprep.subr.bf16.mxu0 %v3229_v11  ;;  %v3307_v8 = vld [vmem:[%s4250_s0 + $0x210] ss:$36 sps:$4 sm:$0xff]   ;;  %v3311_v11 = vld [vmem:[%s4250_s0 + $0x68] ss:$36 sps:$4 sm:$0xff]  }
  0x56   : > { %2997 = vmatprep.subr.bf16.mxu1 %v3230_v12  ;;  %v3312_v12 = vld [vmem:[%s4250_s0 + $0x188] ss:$36 sps:$4 sm:$0xff]  }
  0x58   : > { %2934 = vmatpush3.bf16.msra.mxu0 %v3231_v14  ;;  %v3314_v14 = vld [vmem:[%s4250_s0 + $0x1d0] ss:$36 sps:$4 sm:$0xff]  }
  0x59   : > { %2998 = vmatpush3.bf16.msra.mxu1 %v3232_v15  ;;  %2935 = vmatprep.subr.bf16.mxu0 %v3239_v19  ;;  %v3315_v15 = vld [vmem:[%s4250_s0 + $0xf8] ss:$36 sps:$4 sm:$0xff]  }
  0x5a   : > { %1348 = vmatmul.mubr.bf16.gmra.mrb[12].mxu0 %v3207_v59  ;;  %2999 = vmatprep.subr.bf16.mxu1 %v3240_v20  ;;  %v3285_v59 = vld [vmem:[%s4250_s0 + $0x130] ss:$36 sps:$4 sm:$0xff]  }
  0x5b   : > { %1445 = vmatmul.mubr.bf16.gmra.mrb[12].mxu1 %v3208_v60  ;;  %1355 = vmatprep.mubr.bf16.mxu0 %v3213_v1  ;;  %v3286_v60 = vld [vmem:[%s4250_s0 + $0x138] ss:$36 sps:$4 sm:$0xff]   ;;  %v3295_v1 = vld [vmem:[%s4250_s0 + $0x1c4] ss:$36 sps:$4 sm:$0xff]  }
  0x5c   : > { %1452 = vmatprep.mubr.bf16.mxu1 %v3215_v2  ;;  %2936 = vmatpush3.bf16.msra.mxu0 %v3241_v21  ;;  %v3297_v2 = vld [vmem:[%s4250_s0 + $0x1cc] ss:$36 sps:$4 sm:$0xff]  }
  0x5d   : > { %3000 = vmatpush3.bf16.msra.mxu1 %v3242_v22  ;;  %2937 = vmatprep.subr.bf16.mxu0 %v3249_v27 }
  0x5e   : > { %3001 = vmatprep.subr.bf16.mxu1 %v3250_v28 }
  0x60   : > { %2938 = vmatpush3.bf16.msra.mxu0 %v3251_v29 }
  0x61   : > { %3002 = vmatpush3.bf16.msra.mxu1 %v3252_v30  ;;  %3067 = vmatprep.subr.bf16.mxu0 %v3259_v33 }
  0x62   : > { %1356 = vmatmul.mubr.bf16.gmra.mrb[16].mxu0 %v3217_v3  ;;  %3099 = vmatprep.subr.bf16.mxu1 %v3259_v33  ;;  %v3299_v3 = vld [vmem:[%s4250_s0 + $0x1c0] ss:$36 sps:$4 sm:$0xff]  }
  0x63   : > { %1453 = vmatmul.mubr.bf16.gmra.mrb[16].mxu1 %v3218_v5  ;;  %1363 = vmatprep.mubr.bf16.mxu0 %v3223_v9  ;;  %v3302_v5 = vld [vmem:[%s4250_s0 + $0x20c] ss:$36 sps:$4 sm:$0xff]   ;;  %v3309_v9 = vld [vmem:[%s4250_s0 + $0x20] ss:$36 sps:$4 sm:$0xff]  }
  0x64   : > { %1460 = vmatprep.mubr.bf16.mxu1 %v3225_v10  ;;  %v3310_v10 = vld [vmem:[%s4250_s0 + $0x140] ss:$36 sps:$4 sm:$0xff]  }
  0x6a   : > { %1364 = vmatmul.mubr.bf16.gmra.mrb[20].mxu0 %v3227_v13  ;;  %v3313_v13 = vld [vmem:[%s4250_s0 + $0xb0] ss:$36 sps:$4 sm:$0xff]  }
  0x6b   : > { %1461 = vmatmul.mubr.bf16.gmra.mrb[20].mxu1 %v3228_v16  ;;  %1371 = vmatprep.mubr.bf16.mxu0 %v3233_v17  ;;  %v3316_v16 = vld [vmem:[%s4250_s0 + $0x218] ss:$36 sps:$4 sm:$0xff]  }
  0x6c   : > { %1468 = vmatprep.mubr.bf16.mxu1 %v3235_v18 }
  0x72   : > { %1372 = vmatmul.mubr.bf16.gmra.mrb[24].mxu0 %v3237_v23 }
  0x73   : > { %1469 = vmatmul.mubr.bf16.gmra.mrb[24].mxu1 %v3238_v24  ;;  %1379 = vmatprep.mubr.bf16.mxu0 %v3243_v25 }
  0x74   : > { %1476 = vmatprep.mubr.bf16.mxu1 %v3245_v26 }
  0x7a   : > { %1380 = vmatmul.mubr.bf16.gmra.mrb[28].mxu0 %v3247_v31 }
  0x7b   : > { %1477 = vmatmul.mubr.bf16.gmra.mrb[28].mxu1 %v3248_v32  ;;  %1517 = vmatprep.mubr.bf16.mxu0 %v3255_v34 }
  0x7c   : > { %1614 = vmatprep.mubr.bf16.mxu1 %v3258_v35 }
  0x82   : > { %1518 = vmatmul.mubr.bf16.vlgmr.msra.gmra.mrb[32].mxu0 %v3253_v36 }
  0x83   : > { %1615 = vmatmul.mubr.bf16.vlgmr.msra.gmra.mrb[32].mxu1 %v3256_v37  ;;  %3068 = vmatpush3.bf16.msra.mxu0 %v3259_v33 }
  0x84   : > { %3107 = vmatpush3.bf16.msra.mxu1 %v3259_v33  ;;  %1525 = vmatprep.mubr.bf16.mxu0 %v3260_v38 }
  0x85   : > { %1622 = vmatprep.mubr.bf16.mxu1 %v3262_v39  ;;  %3069 = vmatprep.subr.bf16.mxu0 %v3266_v40 }
  0x86   : > { %3100 = vmatprep.subr.bf16.mxu1 %v3266_v40 }
  0x87   : > { %3070 = vmatpush3.bf16.msra.mxu0 %v3266_v40 }
  0x88   : > { %3108 = vmatpush3.bf16.msra.mxu1 %v3266_v40  ;;  %3071 = vmatprep.subr.bf16.mxu0 %v3273_v41 }
  0x89   : > { %3101 = vmatprep.subr.bf16.mxu1 %v3273_v41 }
  0x8a   : > { %1526 = vmatmul.mubr.bf16.gmra.mrb[36].mxu0 %v3264_v42 }
  0x8b   : > { %1623 = vmatmul.mubr.bf16.gmra.mrb[36].mxu1 %v3265_v43  ;;  %1533 = vmatprep.mubr.bf16.mxu0 %v3267_v44 }
  0x8c   : > { %1630 = vmatprep.mubr.bf16.mxu1 %v3269_v45  ;;  %3072 = vmatpush3.bf16.msra.mxu0 %v3273_v41 }
  0x8d   : > { %3109 = vmatpush3.bf16.msra.mxu1 %v3273_v41  ;;  %3073 = vmatprep.subr.bf16.mxu0 %v3280_v46 }
  0x8e   : > { %3102 = vmatprep.subr.bf16.mxu1 %v3280_v46 }
  0x90   : > { %3074 = vmatpush3.bf16.msra.mxu0 %v3280_v46 }
  0x91   : > { %3110 = vmatpush3.bf16.msra.mxu1 %v3280_v46  ;;  %3075 = vmatprep.subr.bf16.mxu0 %v3287_v47 }
  0x92   : > { %1534 = vmatmul.mubr.bf16.gmra.mrb[40].mxu0 %v3271_v48  ;;  %3103 = vmatprep.subr.bf16.mxu1 %v3287_v47 }
  0x93   : > { %1631 = vmatmul.mubr.bf16.gmra.mrb[40].mxu1 %v3272_v49  ;;  %1541 = vmatprep.mubr.bf16.mxu0 %v3274_v50 }
  0x94   : > { %1638 = vmatprep.mubr.bf16.mxu1 %v3276_v51  ;;  %3076 = vmatpush3.bf16.msra.mxu0 %v3287_v47 }
  0x95   : > { %3111 = vmatpush3.bf16.msra.mxu1 %v3287_v47  ;;  %3077 = vmatprep.subr.bf16.mxu0 %v3294_v52 }
  0x96   : > { %3104 = vmatprep.subr.bf16.mxu1 %v3294_v52 }
  0x98   : > { %3078 = vmatpush3.bf16.msra.mxu0 %v3294_v52 }
  0x99   : > { %3112 = vmatpush3.bf16.msra.mxu1 %v3294_v52  ;;  %3079 = vmatprep.subr.bf16.mxu0 %v3301_v54 }
  0x9a   : > { %1542 = vmatmul.mubr.bf16.gmra.mrb[44].mxu0 %v3278_v53  ;;  %3105 = vmatprep.subr.bf16.mxu1 %v3301_v54 }
  0x9b   : > { %1639 = vmatmul.mubr.bf16.gmra.mrb[44].mxu1 %v3279_v55  ;;  %1549 = vmatprep.mubr.bf16.mxu0 %v3281_v56 }
  0x9c   : > { %1646 = vmatprep.mubr.bf16.mxu1 %v3283_v57  ;;  %3080 = vmatpush3.bf16.msra.mxu0 %v3301_v54 }
  0x9d   : > { %3113 = vmatpush3.bf16.msra.mxu1 %v3301_v54  ;;  %3081 = vmatprep.subr.bf16.mxu0 %v3308_v58 }
  0x9e   : > { %3106 = vmatprep.subr.bf16.mxu1 %v3308_v58 }
  0xa0   : > { %3082 = vmatpush3.bf16.msra.mxu0 %v3308_v58 }
  0xa1   : > { %3114 = vmatpush3.bf16.msra.mxu1 %v3308_v58 }
  0xa2   : > { %1550 = vmatmul.mubr.bf16.gmra.mrb[48].mxu0 %v3285_v59 }
  0xa3   : > { %1647 = vmatmul.mubr.bf16.gmra.mrb[48].mxu1 %v3286_v60  ;;  %1557 = vmatprep.mubr.bf16.mxu0 %v3288_v61 }
  0xa4   : > { %1654 = vmatprep.mubr.bf16.mxu1 %v3290_v62 }
  0xaa   : > { %1558 = vmatmul.mubr.bf16.gmra.mrb[52].mxu0 %v3292_v63 }
  0xab   : > { %1655 = vmatmul.mubr.bf16.gmra.mrb[52].mxu1 %v3293_v0  ;;  %1565 = vmatprep.mubr.bf16.mxu0 %v3295_v1 }
  0xac   : > { %1662 = vmatprep.mubr.bf16.mxu1 %v3297_v2 }
  0xb2   : > { %1566 = vmatmul.mubr.bf16.gmra.mrb[56].mxu0 %v3299_v3 }
  0xb3   : > { %1663 = vmatmul.mubr.bf16.gmra.mrb[56].mxu1 %v3300_v4  ;;  %1573 = vmatprep.mubr.bf16.mxu0 %v3302_v5 }
  0xb4   : > { %1670 = vmatprep.mubr.bf16.mxu1 %v3304_v6 }
  0xba   : > { %1574 = vmatmul.mubr.bf16.gmra.mrb[60].mxu0 %v3306_v7 }
  0xbb   : > { %1671 = vmatmul.mubr.bf16.gmra.mrb[60].mxu1 %v3307_v8  ;;  %3083 = vmatprep.mubr.bf16.mxu0 %v3309_v9 }
  0xbc   : > { %3091 = vmatprep.mubr.bf16.mxu1 %v3310_v10 }
  0xc2   : > { %3084 = vmatmul.mubr.bf16.vlgmr.msra.gmra.mrb[64].mxu0 %v3311_v11 }
  0xc3   : > { %3092 = vmatmul.mubr.bf16.vlgmr.msra.gmra.mrb[64].mxu1 %v3312_v12  ;;  %3087 = vmatprep.mubr.bf16.mxu0 %v3313_v13 }
  0xc4   : > { %3095 = vmatprep.mubr.bf16.mxu1 %v3314_v14 }
  0xca   : > { %3088 = vmatmul.mubr.bf16.gmra.mrb[68].mxu0 %v3315_v15 }
  0xcb   : > { %3096 = vmatmul.mubr.bf16.gmra.mrb[68].mxu1 %v3316_v16 }
 0x115   : > { %v2811_v17 = vpop.f32.mrb[0].mxu0 }
 0x116   : > { %v2875_v18 = vpop.f32.mrb[0].mxu1  ;;  %v2812_v19 = vpop.f32.mrb[1].mxu0 }
 0x117   : > { %v2813_v20 = vadd.f32 %v2812_v19, %v2811_v17  ;;  %v2876_v21 = vpop.f32.mrb[1].mxu1  ;;  %v2814_v22 = vpop.f32.mrb[2].mxu0 }
 0x118   : > { %v2877_v23 = vadd.f32 %v2876_v21, %v2875_v18  ;;  %v2878_v24 = vpop.f32.mrb[2].mxu1  ;;  %v2815_v25 = vpop.f32.mrb[3].mxu0 }
 0x119   : > { %v2816_v26 = vadd.f32 %v2815_v25, %v2814_v22  ;;  %v2879_v27 = vpop.f32.mrb[3].mxu1 }
 0x11a   : > { %v3888_v28 = vadd.f32 %v2877_v23, %v2813_v20  ;;  %v2880_v29 = vadd.f32 %v2879_v27, %v2878_v24 }
 0x11c   : > { %v3890_v30 = vadd.f32 %v2880_v29, %v2816_v26 }
 0x11d   : > { %v2817_v31 = vpop.f32.mrb[4].mxu0 }
 0x11e   : > { %v2881_v32 = vpop.f32.mrb[4].mxu1  ;;  %v2818_v33 = vpop.f32.mrb[5].mxu0 }
 0x11f   : > { %v2819_v34 = vadd.f32 %v2818_v33, %v2817_v31  ;;  %v2882_v35 = vpop.f32.mrb[5].mxu1  ;;  %v2820_v36 = vpop.f32.mrb[6].mxu0 }
 0x120   : > { %v2883_v37 = vadd.f32 %v2882_v35, %v2881_v32  ;;  %v2884_v38 = vpop.f32.mrb[6].mxu1  ;;  %v2821_v39 = vpop.f32.mrb[7].mxu0 }
 0x121   : > { %v2822_v40 = vadd.f32 %v2821_v39, %v2820_v36  ;;  %v2885_v41 = vpop.f32.mrb[7].mxu1 }
 0x122   : > { %v3892_v42 = vadd.f32 %v2883_v37, %v2819_v34  ;;  %v2886_v43 = vadd.f32 %v2885_v41, %v2884_v38 }
 0x124   : > { %v3894_v44 = vadd.f32 %v2886_v43, %v2822_v40 }
 0x125   : > { %v2823_v45 = vpop.f32.mrb[8].mxu0 }
 0x126   : > { %v2887_v46 = vpop.f32.mrb[8].mxu1  ;;  %v2824_v47 = vpop.f32.mrb[9].mxu0 }
 0x127   : > { %v2825_v48 = vadd.f32 %v2824_v47, %v2823_v45  ;;  %v2888_v49 = vpop.f32.mrb[9].mxu1  ;;  %v2826_v50 = vpop.f32.mrb[10].mxu0 }
 0x128   : > { %v2889_v51 = vadd.f32 %v2888_v49, %v2887_v46  ;;  %v2890_v52 = vpop.f32.mrb[10].mxu1  ;;  %v2827_v53 = vpop.f32.mrb[11].mxu0 }
 0x129   : > { %v2828_v54 = vadd.f32 %v2827_v53, %v2826_v50  ;;  %v2891_v55 = vpop.f32.mrb[11].mxu1 }
 0x12a   : > { %v3896_v56 = vadd.f32 %v2889_v51, %v2825_v48  ;;  %v2892_v57 = vadd.f32 %v2891_v55, %v2890_v52 }
 0x12c   : > { %v3898_v58 = vadd.f32 %v2892_v57, %v2828_v54 }
 0x12d   : > { %v2829_v59 = vpop.f32.mrb[12].mxu0 }
 0x12e   : > { %v2893_v60 = vpop.f32.mrb[12].mxu1  ;;  %v2830_v61 = vpop.f32.mrb[13].mxu0 }
 0x12f   : > { %v2831_v62 = vadd.f32 %v2830_v61, %v2829_v59  ;;  %v2894_v63 = vpop.f32.mrb[13].mxu1  ;;  %v2832_v0 = vpop.f32.mrb[14].mxu0 }
 0x130   : > { %v2895_v1 = vadd.f32 %v2894_v63, %v2893_v60  ;;  %v2896_v2 = vpop.f32.mrb[14].mxu1  ;;  %v2833_v3 = vpop.f32.mrb[15].mxu0 }
 0x131   : > { %v2834_v4 = vadd.f32 %v2833_v3, %v2832_v0  ;;  %v2897_v5 = vpop.f32.mrb[15].mxu1 }
 0x132   : > { %v3900_v6 = vadd.f32 %v2895_v1, %v2831_v62  ;;  %v2898_v7 = vadd.f32 %v2897_v5, %v2896_v2 }
 0x134   : > { %v3902_v8 = vadd.f32 %v2898_v7, %v2834_v4 }
 0x135   : > { %v2835_v9 = vpop.f32.mrb[16].mxu0 }
 0x136   : > { %v2899_v10 = vpop.f32.mrb[16].mxu1  ;;  %v2836_v11 = vpop.f32.mrb[17].mxu0 }
 0x137   : > { %v2837_v12 = vadd.f32 %v2836_v11, %v2835_v9  ;;  %v2900_v13 = vpop.f32.mrb[17].mxu1  ;;  %v2838_v14 = vpop.f32.mrb[18].mxu0 }
 0x138   : > { %v2901_v15 = vadd.f32 %v2900_v13, %v2899_v10  ;;  %v2902_v16 = vpop.f32.mrb[18].mxu1  ;;  %v2839_v17 = vpop.f32.mrb[19].mxu0 }
 0x139   : > { %v2840_v18 = vadd.f32 %v2839_v17, %v2838_v14  ;;  %v2903_v19 = vpop.f32.mrb[19].mxu1 }
 0x13a   : > { %v3904_v20 = vadd.f32 %v2901_v15, %v2837_v12  ;;  %v2904_v21 = vadd.f32 %v2903_v19, %v2902_v16 }
 0x13c   : > { %v3906_v22 = vadd.f32 %v2904_v21, %v2840_v18 }
 0x13d   : > { %v2841_v23 = vpop.f32.mrb[20].mxu0 }
 0x13e   : > { %v2905_v24 = vpop.f32.mrb[20].mxu1  ;;  %v2842_v25 = vpop.f32.mrb[21].mxu0 }
 0x13f   : > { %v2843_v26 = vadd.f32 %v2842_v25, %v2841_v23  ;;  %v2906_v27 = vpop.f32.mrb[21].mxu1  ;;  %v2844_v29 = vpop.f32.mrb[22].mxu0 }
 0x140   : > { %v2907_v31 = vadd.f32 %v2906_v27, %v2905_v24  ;;  %v2908_v32 = vpop.f32.mrb[22].mxu1  ;;  %v2845_v33 = vpop.f32.mrb[23].mxu0 }
 0x141   : > { %v2846_v34 = vadd.f32 %v2845_v33, %v2844_v29  ;;  %v2909_v35 = vpop.f32.mrb[23].mxu1 }
 0x142   : > { %v3908_v36 = vadd.f32 %v2907_v31, %v2843_v26  ;;  %v2910_v37 = vadd.f32 %v2909_v35, %v2908_v32 }
 0x144   : > { %v3910_v38 = vadd.f32 %v2910_v37, %v2846_v34 }
 0x145   : > { %v2847_v39 = vpop.f32.mrb[24].mxu0 }
 0x146   : > { %v2911_v40 = vpop.f32.mrb[24].mxu1  ;;  %v2848_v41 = vpop.f32.mrb[25].mxu0 }
 0x147   : > { %v2849_v43 = vadd.f32 %v2848_v41, %v2847_v39  ;;  %v2912_v45 = vpop.f32.mrb[25].mxu1  ;;  %v2850_v46 = vpop.f32.mrb[26].mxu0 }
 0x148   : > { %v2913_v47 = vadd.f32 %v2912_v45, %v2911_v40  ;;  %v2914_v48 = vpop.f32.mrb[26].mxu1  ;;  %v2851_v49 = vpop.f32.mrb[27].mxu0 }
 0x149   : > { %v2852_v50 = vadd.f32 %v2851_v49, %v2850_v46  ;;  %v2915_v51 = vpop.f32.mrb[27].mxu1 }
 0x14a   : > { %v3912_v52 = vadd.f32 %v2913_v47, %v2849_v43  ;;  %v2916_v53 = vadd.f32 %v2915_v51, %v2914_v48 }
 0x14c   : > { %v3914_v54 = vadd.f32 %v2916_v53, %v2852_v50 }
 0x14d   : > { %v2853_v55 = vpop.f32.mrb[28].mxu0 }
 0x14e   : > { %v2917_v57 = vpop.f32.mrb[28].mxu1  ;;  %v2854_v59 = vpop.f32.mrb[29].mxu0 }
 0x14f   : > { %v2855_v60 = vadd.f32 %v2854_v59, %v2853_v55  ;;  %v2918_v61 = vpop.f32.mrb[29].mxu1  ;;  %v2856_v62 = vpop.f32.mrb[30].mxu0 }
 0x150   : > { %v2919_v63 = vadd.f32 %v2918_v61, %v2917_v57  ;;  %v2920_v0 = vpop.f32.mrb[30].mxu1  ;;  %v2857_v1 = vpop.f32.mrb[31].mxu0 }
 0x151   : > { %v2858_v2 = vadd.f32 %v2857_v1, %v2856_v62  ;;  %v2921_v3 = vpop.f32.mrb[31].mxu1 }
 0x152   : > { %v3916_v4 = vadd.f32 %v2919_v63, %v2855_v60  ;;  %v2922_v5 = vadd.f32 %v2921_v3, %v2920_v0 }
 0x154   : > { %v3918_v7 = vadd.f32 %v2922_v5, %v2858_v2 }
 0x155   : > { %v2939_v9 = vpop.f32.mrb[32].mxu0 }
 0x156   : > { %v3003_v10 = vpop.f32.mrb[32].mxu1  ;;  %v2940_v11 = vpop.f32.mrb[33].mxu0 }
 0x157   : > { %v2941_v12 = vadd.f32 %v2940_v11, %v2939_v9  ;;  %v3004_v13 = vpop.f32.mrb[33].mxu1  ;;  %v2942_v14 = vpop.f32.mrb[34].mxu0 }
 0x158   : > { %v3005_v15 = vadd.f32 %v3004_v13, %v3003_v10  ;;  %v3006_v16 = vpop.f32.mrb[34].mxu1  ;;  %v2943_v17 = vpop.f32.mrb[35].mxu0 }
 0x159   : > { %v1520_v18 = vadd.f32 %v2941_v12, %v3888_v28  ;;  %v2944_v19 = vadd.f32 %v2943_v17, %v2942_v14  ;;  %v3007_v21 = vpop.f32.mrb[35].mxu1 }
 0x15a   : > { %v3008_v23 = vadd.f32 %v3007_v21, %v3006_v16 }
 0x15b   : > { %v1523_v24 = vadd.f32 %v2944_v19, %v3890_v30  ;;  %v3922_v25 = vadd.f32 %v3005_v15, %v1520_v18 }
 0x15d   : > { %v2945_v26 = vpop.f32.mrb[36].mxu0  ;;  %v3924_v27 = vadd.f32 %v3008_v23, %v1523_v24 }
 0x15e   : > { %v3009_v29 = vpop.f32.mrb[36].mxu1  ;;  %v2946_v31 = vpop.f32.mrb[37].mxu0 }
 0x15f   : > { %v2947_v32 = vadd.f32 %v2946_v31, %v2945_v26  ;;  %v3010_v33 = vpop.f32.mrb[37].mxu1  ;;  %v2948_v34 = vpop.f32.mrb[38].mxu0 }
 0x160   : > { %v3011_v35 = vadd.f32 %v3010_v33, %v3009_v29  ;;  %v3012_v37 = vpop.f32.mrb[38].mxu1  ;;  %v2949_v39 = vpop.f32.mrb[39].mxu0 }
 0x161   : > { %v1528_v28 = vadd.f32 %v2947_v32, %v3892_v42  ;;  %v2950_v40 = vadd.f32 %v2949_v39, %v2948_v34  ;;  %v3013_v41 = vpop.f32.mrb[39].mxu1 }
 0x162   : > { %v3014_v43 = vadd.f32 %v3013_v41, %v3012_v37 }
 0x163   : > { %v1531_v30 = vadd.f32 %v2950_v40, %v3894_v44  ;;  %v3928_v45 = vadd.f32 %v3011_v35, %v1528_v28 }
 0x165   : > { %v2951_v46 = vpop.f32.mrb[40].mxu0  ;;  %v3930_v47 = vadd.f32 %v3014_v43, %v1531_v30 }
 0x166   : > { %v3015_v48 = vpop.f32.mrb[40].mxu1  ;;  %v2952_v49 = vpop.f32.mrb[41].mxu0 }
 0x167   : > { %v2953_v50 = vadd.f32 %v2952_v49, %v2951_v46  ;;  %v3016_v51 = vpop.f32.mrb[41].mxu1  ;;  %v2954_v53 = vpop.f32.mrb[42].mxu0 }
 0x168   : > { %v3017_v55 = vadd.f32 %v3016_v51, %v3015_v48  ;;  %v3018_v57 = vpop.f32.mrb[42].mxu1  ;;  %v2955_v59 = vpop.f32.mrb[43].mxu0 }
 0x169   : > { %v1536_v42 = vadd.f32 %v2953_v50, %v3896_v56  ;;  %v2956_v60 = vadd.f32 %v2955_v59, %v2954_v53  ;;  %v3019_v61 = vpop.f32.mrb[43].mxu1 }
 0x16a   : > { %v3020_v62 = vadd.f32 %v3019_v61, %v3018_v57 }
 0x16b   : > { %v1539_v44 = vadd.f32 %v2956_v60, %v3898_v58  ;;  %v3934_v63 = vadd.f32 %v3017_v55, %v1536_v42 }
 0x16d   : > { %v2957_v0 = vpop.f32.mrb[44].mxu0  ;;  %v3936_v1 = vadd.f32 %v3020_v62, %v1539_v44 }
 0x16e   : > { %v3021_v2 = vpop.f32.mrb[44].mxu1  ;;  %v2958_v3 = vpop.f32.mrb[45].mxu0 }
 0x16f   : > { %v2959_v5 = vadd.f32 %v2958_v3, %v2957_v0  ;;  %v3022_v9 = vpop.f32.mrb[45].mxu1  ;;  %v2960_v10 = vpop.f32.mrb[46].mxu0 }
 0x170   : > { %v3023_v11 = vadd.f32 %v3022_v9, %v3021_v2  ;;  %v3024_v12 = vpop.f32.mrb[46].mxu1  ;;  %v2961_v13 = vpop.f32.mrb[47].mxu0 }
 0x171   : > { %v1544_v56 = vadd.f32 %v2959_v5, %v3900_v6  ;;  %v2962_v14 = vadd.f32 %v2961_v13, %v2960_v10  ;;  %v3025_v15 = vpop.f32.mrb[47].mxu1 }
 0x172   : > { %v3026_v16 = vadd.f32 %v3025_v15, %v3024_v12 }
 0x173   : > { %v1547_v58 = vadd.f32 %v2962_v14, %v3902_v8  ;;  %v3940_v17 = vadd.f32 %v3023_v11, %v1544_v56 }
 0x175   : > { %v2963_v18 = vpop.f32.mrb[48].mxu0  ;;  %v3942_v19 = vadd.f32 %v3026_v16, %v1547_v58 }
 0x176   : > { %v3027_v21 = vpop.f32.mrb[48].mxu1  ;;  %v2964_v23 = vpop.f32.mrb[49].mxu0 }
 0x177   : > { %v2965_v24 = vadd.f32 %v2964_v23, %v2963_v18  ;;  %v3028_v26 = vpop.f32.mrb[49].mxu1  ;;  %v2966_v29 = vpop.f32.mrb[50].mxu0 }
 0x178   : > { %v3029_v31 = vadd.f32 %v3028_v26, %v3027_v21  ;;  %v3030_v32 = vpop.f32.mrb[50].mxu1  ;;  %v2967_v33 = vpop.f32.mrb[51].mxu0 }
 0x179   : > { %v1552_v6 = vadd.f32 %v2965_v24, %v3904_v20  ;;  %v2968_v34 = vadd.f32 %v2967_v33, %v2966_v29  ;;  %v3031_v35 = vpop.f32.mrb[51].mxu1 }
 0x17a   : > { %v3032_v37 = vadd.f32 %v3031_v35, %v3030_v32 }
 0x17b   : > { %v1555_v8 = vadd.f32 %v2968_v34, %v3906_v22  ;;  %v1649_v39 = vadd.f32 %v3029_v31, %v1552_v6 }
 0x17d   : > { %v2969_v28 = vpop.f32.mrb[52].mxu0  ;;  %v3946_v40 = vadd.f32 %v3032_v37, %v1555_v8 }
 0x17e   : > { %v3033_v41 = vpop.f32.mrb[52].mxu1  ;;  %v2970_v43 = vpop.f32.mrb[53].mxu0 }
 0x17f   : > { %v2971_v30 = vadd.f32 %v2970_v43, %v2969_v28  ;;  %v3034_v46 = vpop.f32.mrb[53].mxu1  ;;  %v2972_v48 = vpop.f32.mrb[54].mxu0 }
 0x180   : > { %v3035_v49 = vadd.f32 %v3034_v46, %v3033_v41  ;;  %v3036_v50 = vpop.f32.mrb[54].mxu1  ;;  %v2973_v51 = vpop.f32.mrb[55].mxu0 }
 0x181   : > { %v1560_v53 = vadd.f32 %v2971_v30, %v3908_v36  ;;  %v2974_v20 = vadd.f32 %v2973_v51, %v2972_v48  ;;  %v3037_v55 = vpop.f32.mrb[55].mxu1 }
 0x182   : > { %v3038_v57 = vadd.f32 %v3037_v55, %v3036_v50 }
 0x183   : > { %v1563_v59 = vadd.f32 %v2974_v20, %v3910_v38  ;;  %v1657_v22 = vadd.f32 %v3035_v49, %v1560_v53 }
 0x185   : > { %v2975_v42 = vpop.f32.mrb[56].mxu0  ;;  %v1660_v60 = vadd.f32 %v3038_v57, %v1563_v59 }
 0x186   : > { %v3039_v61 = vpop.f32.mrb[56].mxu1  ;;  %v2976_v62 = vpop.f32.mrb[57].mxu0 }
 0x187   : > { %v2977_v44 = vadd.f32 %v2976_v62, %v2975_v42  ;;  %v3040_v0 = vpop.f32.mrb[57].mxu1  ;;  %v2978_v2 = vpop.f32.mrb[58].mxu0 }
 0x188   : > { %v3041_v3 = vadd.f32 %v3040_v0, %v3039_v61  ;;  %v3042_v5 = vpop.f32.mrb[58].mxu1  ;;  %v2979_v9 = vpop.f32.mrb[59].mxu0 }
 0x189   : > { %v1568_v10 = vadd.f32 %v2977_v44, %v3912_v52  ;;  %v2980_v11 = vadd.f32 %v2979_v9, %v2978_v2  ;;  %v3043_v36 = vpop.f32.mrb[59].mxu1 }
 0x18a   : > { %v3044_v12 = vadd.f32 %v3043_v36, %v3042_v5 }
 0x18b   : > { %v1571_v13 = vadd.f32 %v2980_v11, %v3914_v54  ;;  %v1665_v56 = vadd.f32 %v3041_v3, %v1568_v10 }
 0x18d   : > { %v2981_v38 = vpop.f32.mrb[60].mxu0  ;;  %v3952_v14 = vadd.f32 %v3044_v12, %v1571_v13 }
 0x18e   : > { %v3045_v15 = vpop.f32.mrb[60].mxu1  ;;  %v2982_v16 = vpop.f32.mrb[61].mxu0 }
 0x18f   : > { %v2983_v58 = vadd.f32 %v2982_v16, %v2981_v38  ;;  %v3046_v18 = vpop.f32.mrb[61].mxu1  ;;  %v2984_v21 = vpop.f32.mrb[62].mxu0 }
 0x190   : > { %v3047_v23 = vadd.f32 %v3046_v18, %v3045_v15  ;;  %v3048_v24 = vpop.f32.mrb[62].mxu1  ;;  %v2985_v26 = vpop.f32.mrb[63].mxu0  ;;  %v1804_v15 = vld [vmem:[#allocation3 + $0x50] sm:$0xff] }
 0x191   : > { %v1576_v29 = vadd.f32 %v2983_v58, %v3916_v4  ;;  %v2986_v52 = vadd.f32 %v2985_v26, %v2984_v21  ;;  %v3049_v31 = vpop.f32.mrb[63].mxu1 }
 0x192   : > { %v3050_v32 = vadd.f32 %v3049_v31, %v3048_v24  ;;  %v1794_v24 = vld [vmem:[#allocation3] sm:$0xff] }
 0x193   : > { %v1579_v33 = vadd.f32 %v2986_v52, %v3918_v7  ;;  %v1673_v54 = vadd.f32 %v3047_v23, %v1576_v29  ;;  %v1797_v23 = vld [vmem:[#allocation3 + $0x18] sm:$0xff] }
 0x195   : > { %v3085_v6 = vpop.f32.mrb[64].mxu0  ;;  %v1676_v34 = vadd.f32 %v3050_v32, %v1579_v33  ;;  %v1805_v32 = vld [vmem:[#allocation3 + $0x58] sm:$0xff]  ;;  %v1802_v33 = vld [vmem:[#allocation3 + $0x40] sm:$0xff] }
 0x196   : > { %v1722_v35 = vadd.f32 %v3085_v6, %v3928_v45  ;;  %v3093_v37 = vpop.f32.mrb[64].mxu1  ;;  %v1713_v8 = vpop.f32.mrb[65].mxu0 }
 0x197   : > { %v1754_v28 = vadd.f32 %v3093_v37, %v1657_v22  ;;  %v1714_v41 = vadd.f32 %v1713_v8, %v3922_v25  ;;  %v1745_v43 = vpop.f32.mrb[65].mxu1  ;;  %v3086_v30 = vpop.f32.mrb[66].mxu0  ;;  %v1803_v37 = vld [vmem:[#allocation3 + $0x48] sm:$0xff]  ;;  %v1877_v8 = vld [vmem:[#allocation4 + $0x10] sm:$0xff] }
 0x198   : > { %1780 = vst [vmem:[#allocation2 + $0x10] sm:$0xff] %v1722_v35  ;;  %v1746_v46 = vadd.f32 %v1745_v43, %v1649_v39  ;;  %v1725_v4 = vadd.f32 %v3086_v30, %v3930_v47  ;;  %v3094_v48 = vpop.f32.mrb[66].mxu1  ;;  %v1716_v49 = vpop.f32.mrb[67].mxu0  ;;  %1814 = vadd.xlane.f32.xlu1 %v1722_v35  ;;  %v1893_v62 = vmul.f32 %v1722_v35, %v1722_v35 }
 0x199   : > { %1788 = vst [vmem:[#allocation2 + $0x50] sm:$0xff] %v1754_v28  ;;  %1778 = vst [vmem:[#allocation2] sm:$0xff] %v1714_v41  ;;  %v1757_v7 = vadd.f32 %v3094_v48, %v1660_v60  ;;  %v1717_v50 = vadd.f32 %v1716_v49, %v3924_v27  ;;  %v1748_v45 = vpop.f32.mrb[67].mxu1  ;;  %1830 = vadd.xlane.f32.xlu0 %v1754_v28  ;;  %v1901_v44 = vmul.f32 %v1754_v28, %v1754_v28 }
 0x19a   : > { %1786 = vst [vmem:[#allocation2 + $0x40] sm:$0xff] %v1746_v46  ;;  %1781 = vst [vmem:[#allocation2 + $0x18] sm:$0xff] %v1725_v4  ;;  %v1749_v25 = vadd.f32 %v1748_v45, %v3946_v40  ;;  %v1891_v2 = vmul.f32 %v1714_v41, %v1714_v41  ;;  %v1899_v5 = vmul.f32 %v1746_v46, %v1746_v46  ;;  %v1886_v45 = vld [vmem:[#allocation4 + $0x58] sm:$0xff] }
 0x19b   : > { %1789 = vst [vmem:[#allocation2 + $0x58] sm:$0xff] %v1757_v7  ;;  %1779 = vst [vmem:[#allocation2 + $0x8] sm:$0xff] %v1717_v50  ;;  %v1902_v0 = vmul.f32 %v1757_v7, %v1757_v7 }
 0x19c   : > { %1787 = vst [vmem:[#allocation2 + $0x48] sm:$0xff] %v1749_v25  ;;  %1816 = vadd.xlane.f32.xlu1 %v1725_v4  ;;  %v1900_v3 = vmul.f32 %v1749_v25, %v1749_v25 }
 0x19d   : > { %1810 = vadd.xlane.f32.xlu0 %v1714_v41  ;;  %v3089_v47 = vpop.f32.mrb[68].mxu0 }
 0x19e   : > { %v1738_v39 = vadd.f32 %v3089_v47, %v3940_v17  ;;  %v3097_v51 = vpop.f32.mrb[68].mxu1  ;;  %v1729_v53 = vpop.f32.mrb[69].mxu0 }
 0x19f   : > { %v1770_v20 = vadd.f32 %v3097_v51, %v1673_v54  ;;  %v1730_v55 = vadd.f32 %v1729_v53, %v3934_v63  ;;  %v1761_v27 = vpop.f32.mrb[69].mxu1  ;;  %v3090_v57 = vpop.f32.mrb[70].mxu0 }
 0x1a0   : > { %1784 = vst [vmem:[#allocation2 + $0x30] sm:$0xff] %v1738_v39  ;;  %v1762_v59 = vadd.f32 %v1761_v27, %v1665_v56  ;;  %v1741_v22 = vadd.f32 %v3090_v57, %v3942_v19  ;;  %v3098_v40 = vpop.f32.mrb[70].mxu1  ;;  %v1732_v42 = vpop.f32.mrb[71].mxu0  ;;  %1832 = vadd.xlane.f32.xlu1 %v1757_v7  ;;  %v1894_v19 = vmul.f32 %v1725_v4, %v1725_v4  ;;  %v1885_v4 = vld [vmem:[#allocation4 + $0x50] sm:$0xff] }
 0x1a1   : > { %1792 = vst [vmem:[#allocation2 + $0x70] sm:$0xff] %v1770_v20  ;;  %1782 = vst [vmem:[#allocation2 + $0x20] sm:$0xff] %v1730_v55  ;;  %v1773_v60 = vadd.f32 %v3098_v40, %v1676_v34  ;;  %v1733_v61 = vadd.f32 %v1732_v42, %v3936_v1  ;;  %v1764_v17 = vpop.f32.mrb[71].mxu1  ;;  %1826 = vadd.xlane.f32.xlu0 %v1746_v46  ;;  %v1892_v1 = vmul.f32 %v1717_v50, %v1717_v50  ;;  %v1878_v46 = vld [vmem:[#allocation4 + $0x18] sm:$0xff]  ;;  %v1884_v40 = vld [vmem:[#allocation4 + $0x48] sm:$0xff] }
 0x1a2   : > { %1790 = vst [vmem:[#allocation2 + $0x60] sm:$0xff] %v1762_v59  ;;  %1785 = vst [vmem:[#allocation2 + $0x38] sm:$0xff] %v1741_v22  ;;  %v1765_v63 = vadd.f32 %v1764_v17, %v3952_v14  ;;  %v1898_v9 = vmul.f32 %v1741_v22, %v1741_v22  ;;  %v1897_v10 = vmul.f32 %v1738_v39, %v1738_v39  ;;  %v1796_v14 = vld [vmem:[#allocation3 + $0x10] sm:$0xff]  ;;  %v1883_v42 = vld [vmem:[#allocation4 + $0x40] sm:$0xff] }
 0x1a3   : > { %1793 = vst [vmem:[#allocation2 + $0x78] sm:$0xff] %v1773_v60  ;;  %1783 = vst [vmem:[#allocation2 + $0x28] sm:$0xff] %v1733_v61  ;;  %v1896_v11 = vmul.f32 %v1733_v61, %v1733_v61  ;;  %v1895_v36 = vmul.f32 %v1730_v55, %v1730_v55  ;;  %v1903_v13 = vmul.f32 %v1762_v59, %v1762_v59 }
 0x1a4   : > { %1791 = vst [vmem:[#allocation2 + $0x68] sm:$0xff] %v1765_v63  ;;  %1828 = vadd.xlane.f32.xlu1 %v1749_v25  ;;  %v1904_v12 = vmul.f32 %v1765_v63, %v1765_v63  ;;  %v1906_v56 = vmul.f32 %v1773_v60, %v1773_v60  ;;  %v1905_v38 = vmul.f32 %v1770_v20, %v1770_v20  ;;  %v1795_v25 = vld [vmem:[#allocation3 + $0x8] sm:$0xff] }
 0x1a5   : > { %1911 = vadd.xlane.f32.xlu0 %v1893_v62  ;;  %v1801_v62 = vld [vmem:[#allocation3 + $0x38] sm:$0xff] }
 0x1a8   : > { %1913 = vadd.xlane.f32.xlu1 %v1894_v19  ;;  %v1800_v19 = vld [vmem:[#allocation3 + $0x30] sm:$0xff] }
 0x1a9   : > { %1927 = vadd.xlane.f32.xlu0 %v1901_v44 }
 0x1ac   : > { %1929 = vadd.xlane.f32.xlu1 %v1902_v0 }
 0x1ad   : > { %1812 = vadd.xlane.f32.xlu0 %v1717_v50 }
 0x1b0   : > { %1909 = vadd.xlane.f32.xlu1 %v1892_v1 }
 0x1b1   : > { %1907 = vadd.xlane.f32.xlu0 %v1891_v2 }
 0x1b4   : > { %1925 = vadd.xlane.f32.xlu1 %v1900_v3  ;;  %v1809_v3 = vld [vmem:[#allocation3 + $0x78] sm:$0xff] }
 0x1b5   : > { %1923 = vadd.xlane.f32.xlu0 %v1899_v5  ;;  %v1808_v5 = vld [vmem:[#allocation3 + $0x70] sm:$0xff] }
 0x1b8   : > { %1824 = vadd.xlane.f32.xlu1 %v1741_v22 }
 0x1b9   : > { %1822 = vadd.xlane.f32.xlu0 %v1738_v39 }
 0x1bc   : > { %1840 = vadd.xlane.f32.xlu1 %v1773_v60 }
 0x1bd   : > { %1838 = vadd.xlane.f32.xlu0 %v1770_v20  ;;  %v1876_v20 = vld [vmem:[#allocation4 + $0x8] sm:$0xff] }
 0x1c0   : > { %1820 = vadd.xlane.f32.xlu1 %v1733_v61 }
 0x1c1   : > { %1818 = vadd.xlane.f32.xlu0 %v1730_v55  ;;  %v1875_v55 = vld [vmem:[#allocation4] sm:$0xff] }
 0x1c4   : > { %1836 = vadd.xlane.f32.xlu1 %v1765_v63 }
 0x1c5   : > { %1834 = vadd.xlane.f32.xlu0 %v1762_v59 }
 0x1c8   : > { %1921 = vadd.xlane.f32.xlu1 %v1898_v9 }
 0x1c9   : > { %1919 = vadd.xlane.f32.xlu0 %v1897_v10 }
 0x1cc   : > { %1917 = vadd.xlane.f32.xlu1 %v1896_v11 }
 0x1cd   : > { %1915 = vadd.xlane.f32.xlu0 %v1895_v36 }
 0x1d0   : > { %1933 = vadd.xlane.f32.xlu1 %v1904_v12  ;;  %v1799_v12 = vld [vmem:[#allocation3 + $0x28] sm:$0xff] }
 0x1d1   : > { %1931 = vadd.xlane.f32.xlu0 %v1903_v13  ;;  %v1798_v13 = vld [vmem:[#allocation3 + $0x20] sm:$0xff] }
 0x1d4   : > { %1937 = vadd.xlane.f32.xlu1 %v1906_v56 }
 0x1d5   : > { %1935 = vadd.xlane.f32.xlu0 %v1905_v38 }
 0x225   : > { %v1815_v16 = vpop.xlane.xlu1 %1814 }
 0x226   : > { %v1831_v58 = vpop.xlane.xlu0 %1830  ;;  %v1844_v18 = vadd.f32 %v1815_v16, %v1796_v14  ;;  %v1807_v16 = vld [vmem:[#allocation3 + $0x68] sm:$0xff] }
 0x227   : > { %v1852_v21 = vadd.f32 %v1831_v58, %v1804_v15  ;;  %v1806_v58 = vld [vmem:[#allocation3 + $0x60] sm:$0xff] }
 0x228   : > { %1861 = vst.msk [vmem:[#allocation3 + $0x10] sm:$0xff] %vm1858_vm1, %v1844_v18 }
 0x229   : > { %1869 = vst.msk [vmem:[#allocation3 + $0x50] sm:$0xff] %vm1858_vm1, %v1852_v21  ;;  %v1817_v26 = vpop.xlane.xlu1 %1816 }
 0x22a   : > { %v1845_v29 = vadd.f32 %v1817_v26, %v1797_v23  ;;  %v1811_v52 = vpop.xlane.xlu0 %1810  ;;  %v1882_v26 = vld [vmem:[#allocation4 + $0x38] sm:$0xff] }
 0x22b   : > { %v1842_v31 = vadd.f32 %v1811_v52, %v1794_v24 }
 0x22c   : > { %1862 = vst.msk [vmem:[#allocation3 + $0x18] sm:$0xff] %vm1858_vm1, %v1845_v29  ;;  %v1881_v29 = vld [vmem:[#allocation4 + $0x30] sm:$0xff] }
 0x22d   : > { %1859 = vst.msk [vmem:[#allocation3] sm:$0xff] %vm1858_vm1, %v1842_v31  ;;  %v1833_v54 = vpop.xlane.xlu1 %1832 }
 0x22e   : > { %v1853_v6 = vadd.f32 %v1833_v54, %v1805_v32  ;;  %v1827_v34 = vpop.xlane.xlu0 %1826  ;;  %v1880_v54 = vld [vmem:[#allocation4 + $0x28] sm:$0xff] }
 0x22f   : > { %v1850_v35 = vadd.f32 %v1827_v34, %v1802_v33 }
 0x230   : > { %1870 = vst.msk [vmem:[#allocation3 + $0x58] sm:$0xff] %vm1858_vm1, %v1853_v6  ;;  %v1879_v6 = vld [vmem:[#allocation4 + $0x20] sm:$0xff] }
 0x231   : > { %1867 = vst.msk [vmem:[#allocation3 + $0x40] sm:$0xff] %vm1858_vm1, %v1850_v35  ;;  %v1829_v28 = vpop.xlane.xlu1 %1828 }
 0x232   : > { %v1851_v41 = vadd.f32 %v1829_v28, %v1803_v37  ;;  %v1912_v43 = vpop.xlane.xlu0 %1911  ;;  %v1888_v28 = vld [vmem:[#allocation4 + $0x68] sm:$0xff] }
 0x233   : > { %v1941_v30 = vadd.f32 %v1912_v43, %v1877_v8 }
 0x234   : > { %1868 = vst.msk [vmem:[#allocation3 + $0x48] sm:$0xff] %vm1858_vm1, %v1851_v41  ;;  %v1887_v41 = vld [vmem:[#allocation4 + $0x60] sm:$0xff] }
 0x235   : > { %1957 = vst.msk [vmem:[#allocation4 + $0x10] sm:$0xff] %vm1858_vm1, %v1941_v30  ;;  %v1914_v48 = vpop.xlane.xlu1 %1913 }
 0x236   : > { %v1942_v49 = vadd.f32 %v1914_v48, %v1878_v46  ;;  %v1928_v7 = vpop.xlane.xlu0 %1927  ;;  %v1890_v48 = vld [vmem:[#allocation4 + $0x78] sm:$0xff] }
 0x237   : > { %v1949_v50 = vadd.f32 %v1928_v7, %v1885_v4 }
 0x238   : > { %1958 = vst.msk [vmem:[#allocation4 + $0x18] sm:$0xff] %vm1858_vm1, %v1942_v49  ;;  %v1889_v49 = vld [vmem:[#allocation4 + $0x70] sm:$0xff] }
 0x239   : > { %1965 = vst.msk [vmem:[#allocation4 + $0x50] sm:$0xff] %vm1858_vm1, %v1949_v50  ;;  %v1930_v47 = vpop.xlane.xlu1 %1929 }
 0x23a   : > { %v1950_v39 = vadd.f32 %v1930_v47, %v1886_v45  ;;  %v1813_v51 = vpop.xlane.xlu0 %1812 }
 0x23b   : > { %v1843_v53 = vadd.f32 %v1813_v51, %v1795_v25 }
 0x23c   : > { %1966 = vst.msk [vmem:[#allocation4 + $0x58] sm:$0xff] %vm1858_vm1, %v1950_v39 }
 0x23d   : > { %1860 = vst.msk [vmem:[#allocation3 + $0x8] sm:$0xff] %vm1858_vm1, %v1843_v53  ;;  %v1910_v27 = vpop.xlane.xlu1 %1909 }
 0x23e   : > { %v1940_v57 = vadd.f32 %v1910_v27, %v1876_v20  ;;  %v1908_v59 = vpop.xlane.xlu0 %1907 }
 0x23f   : > { %v1939_v22 = vadd.f32 %v1908_v59, %v1875_v55 }
 0x240   : > { %1956 = vst.msk [vmem:[#allocation4 + $0x8] sm:$0xff] %vm1858_vm1, %v1940_v57 }
 0x241   : > { %1955 = vst.msk [vmem:[#allocation4] sm:$0xff] %vm1858_vm1, %v1939_v22  ;;  %v1926_v60 = vpop.xlane.xlu1 %1925 }
 0x242   : > { %v1948_v61 = vadd.f32 %v1926_v60, %v1884_v40  ;;  %v1924_v17 = vpop.xlane.xlu0 %1923 }
 0x243   : > { %v1947_v63 = vadd.f32 %v1924_v17, %v1883_v42 }
 0x244   : > { %1964 = vst.msk [vmem:[#allocation4 + $0x48] sm:$0xff] %vm1858_vm1, %v1948_v61 }
 0x245   : > { %1963 = vst.msk [vmem:[#allocation4 + $0x40] sm:$0xff] %vm1858_vm1, %v1947_v63  ;;  %v1825_v44 = vpop.xlane.xlu1 %1824 }
 0x246   : > { %v1849_v0 = vadd.f32 %v1825_v44, %v1801_v62  ;;  %v1823_v1 = vpop.xlane.xlu0 %1822 }
 0x247   : > { %v1848_v2 = vadd.f32 %v1823_v1, %v1800_v19 }
 0x248   : > { %1866 = vst.msk [vmem:[#allocation3 + $0x38] sm:$0xff] %vm1858_vm1, %v1849_v0 }
 0x249   : > { %1865 = vst.msk [vmem:[#allocation3 + $0x30] sm:$0xff] %vm1858_vm1, %v1848_v2  ;;  %v1841_v9 = vpop.xlane.xlu1 %1840 }
 0x24a   : > { %v1857_v10 = vadd.f32 %v1841_v9, %v1809_v3  ;;  %v1839_v11 = vpop.xlane.xlu0 %1838 }
 0x24b   : > { %v1856_v36 = vadd.f32 %v1839_v11, %v1808_v5 }
 0x24c   : > { %1874 = vst.msk [vmem:[#allocation3 + $0x78] sm:$0xff] %vm1858_vm1, %v1857_v10 }
 0x24d   : > { %1873 = vst.msk [vmem:[#allocation3 + $0x70] sm:$0xff] %vm1858_vm1, %v1856_v36  ;;  %v1821_v56 = vpop.xlane.xlu1 %1820 }
 0x24e   : > { %v1847_v38 = vadd.f32 %v1821_v56, %v1799_v12  ;;  %v1819_v14 = vpop.xlane.xlu0 %1818 }
 0x24f   : > { %v1846_v15 = vadd.f32 %v1819_v14, %v1798_v13 }
 0x250   : > { %1864 = vst.msk [vmem:[#allocation3 + $0x28] sm:$0xff] %vm1858_vm1, %v1847_v38 }
 0x251   : > { %1863 = vst.msk [vmem:[#allocation3 + $0x20] sm:$0xff] %vm1858_vm1, %v1846_v15  ;;  %v1837_v18 = vpop.xlane.xlu1 %1836 }
 0x252   : > { %v1855_v21 = vadd.f32 %v1837_v18, %v1807_v16  ;;  %v1835_v23 = vpop.xlane.xlu0 %1834 }
 0x253   : > { %v1854_v24 = vadd.f32 %v1835_v23, %v1806_v58 }
 0x254   : > { %1872 = vst.msk [vmem:[#allocation3 + $0x68] sm:$0xff] %vm1858_vm1, %v1855_v21 }
 0x255   : > { %1871 = vst.msk [vmem:[#allocation3 + $0x60] sm:$0xff] %vm1858_vm1, %v1854_v24  ;;  %v1922_v52 = vpop.xlane.xlu1 %1921 }
 0x256   : > { %v1946_v31 = vadd.f32 %v1922_v52, %v1882_v26  ;;  %v1920_v32 = vpop.xlane.xlu0 %1919 }
 0x257   : > { %v1945_v33 = vadd.f32 %v1920_v32, %v1881_v29 }
 0x258   : > { %1962 = vst.msk [vmem:[#allocation4 + $0x38] sm:$0xff] %vm1858_vm1, %v1946_v31 }
 0x259   : > { %1961 = vst.msk [vmem:[#allocation4 + $0x30] sm:$0xff] %vm1858_vm1, %v1945_v33  ;;  %v1918_v34 = vpop.xlane.xlu1 %1917 }
 0x25a   : > { %v1944_v35 = vadd.f32 %v1918_v34, %v1880_v54  ;;  %v1916_v37 = vpop.xlane.xlu0 %1915 }
 0x25b   : > { %v1943_v8 = vadd.f32 %v1916_v37, %v1879_v6 }
 0x25c   : > { %1960 = vst.msk [vmem:[#allocation4 + $0x28] sm:$0xff] %vm1858_vm1, %v1944_v35 }
 0x25d   : > { %1959 = vst.msk [vmem:[#allocation4 + $0x20] sm:$0xff] %vm1858_vm1, %v1943_v8  ;;  %v1934_v43 = vpop.xlane.xlu1 %1933 }
 0x25e   : > { %v1952_v30 = vadd.f32 %v1934_v43, %v1888_v28  ;;  %v1932_v46 = vpop.xlane.xlu0 %1931 }
 0x25f   : > { %v1951_v4 = vadd.f32 %v1932_v46, %v1887_v41 }
 0x260   : > { %1968 = vst.msk [vmem:[#allocation4 + $0x68] sm:$0xff] %vm1858_vm1, %v1952_v30 }
 0x261   : > { %1967 = vst.msk [vmem:[#allocation4 + $0x60] sm:$0xff] %vm1858_vm1, %v1951_v4  ;;  %v1938_v7 = vpop.xlane.xlu1 %1937 }
 0x262   : > { %v1954_v50 = vadd.f32 %v1938_v7, %v1890_v48  ;;  %v1936_v45 = vpop.xlane.xlu0 %1935 }
 0x263   : > { %v1953_v25 = vadd.f32 %v1936_v45, %v1889_v49 }
 0x264   : > { %1970 = vst.msk [vmem:[#allocation4 + $0x78] sm:$0xff] %vm1858_vm1, %v1954_v50 }
 0x265   : > { %1969 = vst.msk [vmem:[#allocation4 + $0x70] sm:$0xff] %vm1858_vm1, %v1953_v25 }
 0x266 PF: > { %p2710_p6 = scmp.ne.s32.totalorder %s3365_s15, 1 }
 0x267   : > { %v1977_v47 = vld [vmem:[#allocation3 + $0x10] sm:$0xff] (!%p2710_p6)  ;;  %v3376_v51 = vmov (!%p2710_p6), 0   ;;  %v1975_v55 = vld [vmem:[#allocation3] sm:$0xff] (!%p2710_p6)  ;;  %v1978_v22 = vld [vmem:[#allocation3 + $0x18] sm:$0xff] (!%p2710_p6) }
 0x268   : > { %1974 = sbr.rel (%p2710_p6) target bundleno = 833 (0x341), region = 48  ;;  %v2009_v39 = vld [vmem:[#allocation4 + $0x10] sm:$0xff] (!%p2710_p6)  ;;  %3318 = vset.pattern.permute.xlu1 (!%p2710_p6), %v3376_v51  ;;  %3317 = vset.pattern.permute.xlu0 (!%p2710_p6), %v3376_v51  ;;  %v3999_v53 = vmul.f32 (!%p2710_p6), 0.125, %v1977_v47  ;;  %v2007_v27 = vld [vmem:[#allocation4] sm:$0xff] (!%p2710_p6)  ;;  %v4001_v57 = vmul.f32 (!%p2710_p6), 0.125, %v1975_v55  ;;  %v2010_v40 = vld [vmem:[#allocation4 + $0x18] sm:$0xff] (!%p2710_p6) }
 0x269   : > { %v2025_v20 = vmul.f32 (!%p2710_p6), 0.125, %v2009_v39  ;;  %v2023_v59 = vmul.f32 (!%p2710_p6), 0.125, %v2007_v27  ;;  %v4005_v60 = vmul.f32 (!%p2710_p6), 0.125, %v1978_v22  ;;  %v2026_v61 = vmul.f32 (!%p2710_p6), 0.125, %v2010_v40  ;;  %v1976_v17 = vld [vmem:[#allocation3 + $0x8] sm:$0xff] (!%p2710_p6)  ;;  %v1979_v10 = vld [vmem:[#allocation3 + $0x20] sm:$0xff] (!%p2710_p6) }
 0x26a   : > { %v2041_v42 = vmul.f32 (!%p2710_p6), %v3999_v53, %v3999_v53  ;;  %v2008_v63 = vld [vmem:[#allocation4 + $0x8] sm:$0xff] (!%p2710_p6)  ;;  %v2039_v62 = vmul.f32 (!%p2710_p6), %v4001_v57, %v4001_v57  ;;  %v4009_v19 = vmul.f32 (!%p2710_p6), 0.125, %v1976_v17  ;;  %v2011_v11 = vld [vmem:[#allocation4 + $0x20] sm:$0xff] (!%p2710_p6)  ;;  %v4017_v13 = vmul.f32 (!%p2710_p6), 0.125, %v1979_v10  ;;  %v1982_v38 = vld [vmem:[#allocation3 + $0x38] sm:$0xff] (!%p2710_p6) }
 0x26b   : > { %v2024_v44 = vmul.f32 (!%p2710_p6), 0.125, %v2008_v63  ;;  %v1980_v0 = vld [vmem:[#allocation3 + $0x28] sm:$0xff] (!%p2710_p6)  ;;  %v2042_v3 = vmul.f32 (!%p2710_p6), %v4005_v60, %v4005_v60  ;;  %v2027_v56 = vmul.f32 (!%p2710_p6), 0.125, %v2011_v11  ;;  %v2014_v14 = vld [vmem:[#allocation4 + $0x38] sm:$0xff] (!%p2710_p6)  ;;  %v4021_v18 = vmul.f32 (!%p2710_p6), 0.125, %v1982_v38  ;;  %v1981_v21 = vld [vmem:[#allocation3 + $0x30] sm:$0xff] (!%p2710_p6) }
 0x26c   : > { %v2012_v1 = vld [vmem:[#allocation4 + $0x28] sm:$0xff] (!%p2710_p6)  ;;  %v2057_v2 = vsub.f32 (!%p2710_p6), %v2025_v20, %v2041_v42  ;;  %v4013_v5 = vmul.f32 (!%p2710_p6), 0.125, %v1980_v0  ;;  %v2055_v36 = vsub.f32 (!%p2710_p6), %v2023_v59, %v2039_v62  ;;  %v2040_v12 = vmul.f32 (!%p2710_p6), %v4009_v19, %v4009_v19  ;;  %v2013_v52 = vld [vmem:[#allocation4 + $0x30] sm:$0xff] (!%p2710_p6)  ;;  %v1983_v8 = vld [vmem:[#allocation3 + $0x40] sm:$0xff] (!%p2710_p6) }
 0x26d   : > { %v2028_v9 = vmul.f32 (!%p2710_p6), 0.125, %v2012_v1  ;;  %v2058_v16 = vsub.f32 (!%p2710_p6), %v2026_v61, %v2042_v3  ;;  %v2043_v26 = vmul.f32 (!%p2710_p6), %v4017_v13, %v4017_v13  ;;  %v2030_v29 = vmul.f32 (!%p2710_p6), 0.125, %v2014_v14  ;;  %v1984_v54 = vld [vmem:[#allocation3 + $0x48] sm:$0xff] (!%p2710_p6)  ;;  %v2015_v30 = vld [vmem:[#allocation4 + $0x40] sm:$0xff] (!%p2710_p6)  ;;  %v1986_v49 = vld [vmem:[#allocation3 + $0x58] sm:$0xff] (!%p2710_p6) }
 0x26e   : > { %v2089_v15 = vadd.f32 (!%p2710_p6), 1e-05, %v2057_v2  ;;  %v2044_v58 = vmul.f32 (!%p2710_p6), %v4013_v5, %v4013_v5  ;;  %v2087_v23 = vadd.f32 (!%p2710_p6), 1e-05, %v2055_v36  ;;  %v2056_v24 = vsub.f32 (!%p2710_p6), %v2024_v44, %v2040_v12  ;;  %v2016_v37 = vld [vmem:[#allocation4 + $0x48] sm:$0xff] (!%p2710_p6)  ;;  %v2018_v7 = vld [vmem:[#allocation4 + $0x58] sm:$0xff] (!%p2710_p6) }
 0x26f   : > { %v2090_v31 = vadd.f32 1e-05, %v2058_v16  ;;  %v2046_v33 = vmul.f32 %v4021_v18, %v4021_v18  ;;  %v2059_v34 = vsub.f32 %v2027_v56, %v2043_v26  ;;  %v4027_v35 = vmul.f32 0.125, %v1981_v21  ;;  %v1985_v47 = vld [vmem:[#allocation3 + $0x50] sm:$0xff]  ;;  %v1988_v27 = vld [vmem:[#allocation3 + $0x68] sm:$0xff]  ;;  %v1987_v61 = vld [vmem:[#allocation3 + $0x60] sm:$0xff] }
 0x270   : > { %3319 = vrsqrt.f32 %v2089_v15  ;;  %v2060_v32 = vsub.f32 %v2028_v9, %v2044_v58  ;;  %v2088_v6 = vadd.f32 1e-05, %v2056_v24  ;;  %v2029_v43 = vmul.f32 0.125, %v2013_v52  ;;  %v2017_v39 = vld [vmem:[#allocation4 + $0x50] sm:$0xff]  ;;  %v2020_v59 = vld [vmem:[#allocation4 + $0x68] sm:$0xff]  ;;  %v2019_v0 = vld [vmem:[#allocation4 + $0x60] sm:$0xff] }
 0x271   : > { %3321 = vrsqrt.f32 %v2087_v23  ;;  %v2062_v41 = vsub.f32 %v2030_v29, %v2046_v33  ;;  %v2091_v46 = vadd.f32 1e-05, %v2059_v34  ;;  %v2045_v4 = vmul.f32 %v4027_v35, %v4027_v35  ;;  %v2073_v1 = vld [vmem:[%s4252_s2 + $0x10] sm:$0xff]  ;;  %v2071_v11 = vld [vmem:[%s4252_s2] sm:$0xff]  ;;  %v2074_v14 = vld [vmem:[%s4252_s2 + $0x18] sm:$0xff] }
 0x272   : > { %3323 = vrsqrt.f32 %v2090_v31  ;;  %v2092_v28 = vadd.f32 1e-05, %v2060_v32  ;;  %v4031_v48 = vmul.f32 0.125, %v1984_v54  ;;  %v2032_v45 = vmul.f32 0.125, %v2016_v37  ;;  %v2072_v26 = vld [vmem:[%s4252_s2 + $0x8] sm:$0xff] }
 0x273   : > { %3325 = vrsqrt.f32 %v2088_v6  ;;  %v2094_v50 = vadd.f32 1e-05, %v2062_v41  ;;  %v4033_v25 = vmul.f32 0.125, %v1983_v8  ;;  %v2061_v51 = vsub.f32 %v2029_v43, %v2045_v4  ;;  %v1990_v6 = vld [vmem:[#allocation3 + $0x78] sm:$0xff]  ;;  %v2076_v8 = vld [vmem:[%s4252_s2 + $0x28] sm:$0xff] }
 0x274   : > { %3327 = vrsqrt.f32 %v2092_v28  ;;  %v2048_v20 = vmul.f32 %v4031_v48, %v4031_v48  ;;  %v2031_v55 = vmul.f32 0.125, %v2015_v30  ;;  %v4039_v40 = vmul.f32 0.125, %v1986_v49  ;;  %v2022_v43 = vld [vmem:[#allocation4 + $0x78] sm:$0xff]  ;;  %v1989_v30 = vld [vmem:[#allocation3 + $0x70] sm:$0xff] }
 0x275   : > { %3329 = vrsqrt.f32 %v2091_v46  ;;  %v2047_v22 = vmul.f32 %v4033_v25, %v4033_v25  ;;  %v2034_v42 = vmul.f32 0.125, %v2018_v7  ;;  %v2093_v17 = vadd.f32 1e-05, %v2061_v51  ;;  %v2021_v49 = vld [vmem:[#allocation4 + $0x70] sm:$0xff] }
 0x276   : > { %3331 = vrsqrt.f32 %v2094_v50  ;;  %v2064_v63 = vsub.f32 %v2032_v45, %v2048_v20  ;;  %v4041_v62 = vmul.f32 0.125, %v1985_v47  ;;  %v2033_v44 = vmul.f32 0.125, %v2017_v39  ;;  %v2075_v50 = vld [vmem:[%s4252_s2 + $0x20] sm:$0xff] }
 0x277   : > { %v2063_v2 = vsub.f32 %v2031_v55, %v2047_v22  ;;  %v2050_v3 = vmul.f32 %v4039_v40, %v4039_v40  ;;  %v4048_v9 = vmul.f32 0.125, %v1988_v27  ;;  %v2036_v10 = vmul.f32 0.125, %v2020_v59 }
 0x278   : > { %3333 = vrsqrt.f32 %v2093_v17  ;;  %v2096_v36 = vadd.f32 1e-05, %v2064_v63  ;;  %v2049_v12 = vmul.f32 %v4041_v62, %v4041_v62  ;;  %v4055_v56 = vmul.f32 0.125, %v1987_v61  ;;  %v2078_v61 = vld [vmem:[%s4252_s2 + $0x38] sm:$0xff] }
 0x279   : > { %v2095_v15 = vadd.f32 1e-05, %v2063_v2  ;;  %v2066_v16 = vsub.f32 %v2034_v42, %v2050_v3  ;;  %v2052_v58 = vmul.f32 %v4048_v9, %v4048_v9  ;;  %v2035_v21 = vmul.f32 0.125, %v2019_v0 }
 0x27a   : > { %v3320_v38 = vpop.eup %3319  ;;  %v2065_v29 = vsub.f32 %v2033_v44, %v2049_v12  ;;  %v2051_v52 = vmul.f32 %v4055_v56, %v4055_v56  ;;  %3335 = vrsqrt.f32 %v2096_v36  ;;  %v4083_v45 = vmul.f32 0.125, %v1990_v6  ;;  %v2077_v44 = vld [vmem:[%s4252_s2 + $0x30] sm:$0xff]  ;;  %v2080_v36 = vld [vmem:[%s4252_s2 + $0x48] sm:$0xff]  ;;  %v2083_v6 = vld [vmem:[%s4252_s2 + $0x60] sm:$0xff] }
 0x27b   : > { %v3322_v23 = vpop.eup %3321  ;;  %v4062_v24 = vmul.f32 %v3320_v38, %v2073_v1  ;;  %v2098_v33 = vadd.f32 1e-05, %v2066_v16  ;;  %v2068_v54 = vsub.f32 %v2036_v10, %v2052_v58  ;;  %3337 = vrsqrt.f32 %v2095_v15 }
 0x27c   : > { %v3324_v31 = vpop.eup %3323  ;;  %v4069_v32 = vmul.f32 %v3322_v23, %v2071_v11  ;;  %v2097_v28 = vadd.f32 1e-05, %v2065_v29  ;;  %v2067_v41 = vsub.f32 %v2035_v21, %v2051_v52  ;;  %v2038_v20 = vmul.f32 0.125, %v2022_v43  ;;  %v2082_v21 = vld [vmem:[%s4252_s2 + $0x58] sm:$0xff] }
 0x27d   : > { %v3326_v34 = vpop.eup %3325  ;;  %2213 = vperm.xlu1 %3318, %v4062_v24   ;;  %v4072_v37 = vmul.f32 %v3324_v31, %v2074_v14  ;;  %3339 = vrsqrt.f32 %v2098_v33  ;;  %v2100_v51 = vadd.f32 1e-05, %v2068_v54  ;;  %v4087_v55 = vmul.f32 0.125, %v1989_v30  ;;  %v2079_v14 = vld [vmem:[%s4252_s2 + $0x40] sm:$0xff]  ;;  %v2084_v33 = vld [vmem:[%s4252_s2 + $0x68] sm:$0xff]  ;;  %v2085_v30 = vld [vmem:[%s4252_s2 + $0x70] sm:$0xff] }
 0x27e   : > { %v3328_v46 = vpop.eup %3327  ;;  %2203 = vperm.xlu0 %3317, %v4069_v32   ;;  %v4078_v4 = vmul.f32 %v3326_v34, %v2072_v26  ;;  %3341 = vrsqrt.f32 %v2097_v28  ;;  %v2099_v27 = vadd.f32 1e-05, %v2067_v41  ;;  %v2054_v59 = vmul.f32 %v4083_v45, %v4083_v45  ;;  %v2081_v26 = vld [vmem:[%s4252_s2 + $0x50] sm:$0xff]  ;;  %v2086_v41 = vld [vmem:[%s4252_s2 + $0x78] sm:$0xff] }
 0x27f   : > { %v3330_v7 = vpop.eup %3329  ;;  %v4085_v39 = vmul.f32 %v3328_v46, %v2076_v8  ;;  %v2037_v22 = vmul.f32 0.125, %v2021_v49  ;;  %v2053_v17 = vmul.f32 %v4087_v55, %v4087_v55  ;;  %3343 = vrsqrt.f32 %v2100_v51  ;;  %v2135_v51 = vld [vmem:[%s4253_s3] sm:$0xff] }
 0x280   : > { %v3332_v47 = vpop.eup %3331  ;;  %v4093_v42 = vmul.f32 %v3330_v7, %v2075_v50  ;;  %v2070_v0 = vsub.f32 %v2038_v20, %v2054_v59  ;;  %3345 = vrsqrt.f32 %v2099_v27  ;;  %v2152_v49 = vmul.f32 %v4078_v4, %v4009_v19 }
 0x281   : > { %2218 = vperm.xlu1 %3318, %v4072_v37   ;;  %v2069_v1 = vsub.f32 %v2037_v22, %v2053_v17  ;;  %v2126_v2 = vmul.f32 %v3332_v47, %v2078_v61  ;;  %v2151_v7 = vmul.f32 %v4069_v32, %v4001_v57  ;;  %v2136_v47 = vld [vmem:[%s4253_s3 + $0x8] sm:$0xff]  ;;  %v2154_v27 = vmul.f32 %v4072_v37, %v4005_v60  ;;  %v2138_v32 = vld [vmem:[%s4253_s3 + $0x18] sm:$0xff]  ;;  %v2139_v37 = vld [vmem:[%s4253_s3 + $0x20] sm:$0xff] }
 0x282   : > { %2208 = vperm.xlu0 %3317, %v4078_v4   ;;  %v3334_v63 = vpop.eup %3333  ;;  %v2102_v3 = vadd.f32 1e-05, %v2070_v0  ;;  %v2168_v20 = vsub.f32 %v2136_v47, %v2152_v49  ;;  %v2153_v19 = vmul.f32 %v4062_v24, %v3999_v53  ;;  %v2137_v4 = vld [vmem:[%s4253_s3 + $0x10] sm:$0xff]  ;;  %v2156_v22 = vmul.f32 %v4085_v39, %v4013_v5  ;;  %v2140_v53 = vld [vmem:[%s4253_s3 + $0x28] sm:$0xff]  ;;  %v2142_v5 = vld [vmem:[%s4253_s3 + $0x38] sm:$0xff] }
 0x283   : > { %v2125_v11 = vmul.f32 %v3334_v63, %v2077_v44  ;;  %v2101_v12 = vadd.f32 1e-05, %v2069_v1  ;;  %v2167_v57 = vsub.f32 %v2135_v51, %v2151_v7  ;;  %v2170_v59 = vsub.f32 %v2138_v32, %v2154_v27  ;;  %v2185_v7 = vld [vmem:[#allocation2] sm:$0xff] }
 0x284   : > { %v3336_v10 = vpop.eup %3335  ;;  %3347 = vrsqrt.f32 %v2102_v3  ;;  %v2169_v60 = vsub.f32 %v2137_v4, %v2153_v19  ;;  %v2155_v24 = vmul.f32 %v4093_v42, %v4017_v13  ;;  %v2172_v61 = vsub.f32 %v2140_v53, %v2156_v22  ;;  %v2141_v13 = vld [vmem:[%s4253_s3 + $0x30] sm:$0xff]  ;;  %v2190_v53 = vld [vmem:[#allocation2 + $0x28] sm:$0xff] }
 0x285   : > { %2228 = vperm.xlu1 %3318, %v4085_v39   ;;  %v3338_v38 = vpop.eup %3337  ;;  %v2128_v16 = vmul.f32 %v3336_v10, %v2080_v36  ;;  %3349 = vrsqrt.f32 %v2101_v12  ;;  %v2158_v17 = vmul.f32 %v2126_v2, %v4021_v18  ;;  %v2157_v39 = vmul.f32 %v2125_v11, %v4027_v35  ;;  %v2144_v18 = vld [vmem:[%s4253_s3 + $0x48] sm:$0xff]  ;;  %v2143_v35 = vld [vmem:[%s4253_s3 + $0x40] sm:$0xff]  ;;  %v2187_v19 = vld [vmem:[#allocation2 + $0x10] sm:$0xff] }
 0x286   : > { %2223 = vperm.xlu0 %3317, %v4093_v42   ;;  %v2127_v58 = vmul.f32 %v3338_v38, %v2079_v14  ;;  %v2171_v63 = vsub.f32 %v2139_v37, %v2155_v24 }
 0x287   : > { %v3340_v15 = vpop.eup %3339  ;;  %v2174_v42 = vsub.f32 %v2142_v5, %v2158_v17  ;;  %v2160_v44 = vmul.f32 %v2128_v16, %v4031_v48  ;;  %v2173_v0 = vsub.f32 %v2141_v13, %v2157_v39  ;;  %v2146_v48 = vld [vmem:[%s4253_s3 + $0x58] sm:$0xff] }
 0x288   : > { %v3342_v23 = vpop.eup %3341  ;;  %v2130_v29 = vmul.f32 %v3340_v15, %v2082_v21  ;;  %v2159_v1 = vmul.f32 %v2127_v58, %v4033_v25  ;;  %v2145_v25 = vld [vmem:[%s4253_s3 + $0x50] sm:$0xff] }
 0x289   : > { %2238 = vperm.xlu1 %3318, %v2126_v2   ;;  %v3344_v52 = vpop.eup %3343  ;;  %v2129_v31 = vmul.f32 %v3342_v23, %v2081_v26  ;;  %v2176_v2 = vsub.f32 %v2144_v18, %v2160_v44 }
 0x28a   : > { %2233 = vperm.xlu0 %3317, %v2125_v11   ;;  %v3346_v54 = vpop.eup %3345  ;;  %v2132_v34 = vmul.f32 %v3344_v52, %v2084_v33  ;;  %v2162_v3 = vmul.f32 %v2130_v29, %v4039_v40  ;;  %v2175_v10 = vsub.f32 %v2143_v35, %v2159_v1  ;;  %v2148_v40 = vld [vmem:[%s4253_s3 + $0x68] sm:$0xff]  ;;  %v2191_v35 = vld [vmem:[#allocation2 + $0x30] sm:$0xff] }
 0x28b   : > { %v2131_v28 = vmul.f32 %v3346_v54, %v2083_v6  ;;  %v2161_v11 = vmul.f32 %v2129_v31, %v4041_v62  ;;  %v2147_v62 = vld [vmem:[%s4253_s3 + $0x60] sm:$0xff] }
 0x28c   : > { %v2178_v36 = vsub.f32 %v2146_v48, %v2162_v3  ;;  %v2164_v12 = vmul.f32 %v2132_v34, %v4048_v9  ;;  %v2150_v9 = vld [vmem:[%s4253_s3 + $0x78] sm:$0xff] }
 0x28d   : > { %2248 = vperm.xlu1 %3318, %v2128_v16   ;;  %v2177_v38 = vsub.f32 %v2145_v25, %v2161_v11  ;;  %v2163_v14 = vmul.f32 %v2131_v28, %v4055_v56  ;;  %v2149_v56 = vld [vmem:[%s4253_s3 + $0x70] sm:$0xff] }
 0x28e   : > { %2243 = vperm.xlu0 %3317, %v2127_v58   ;;  %v3348_v8 = vpop.eup %3347  ;;  %v2180_v15 = vsub.f32 %v2148_v40, %v2164_v12  ;;  %v2194_v12 = vld [vmem:[#allocation2 + $0x48] sm:$0xff] }
 0x28f   : > { %v3350_v43 = vpop.eup %3349  ;;  %v2134_v46 = vmul.f32 %v3348_v8, %v2086_v41  ;;  %v2179_v58 = vsub.f32 %v2147_v62, %v2163_v14  ;;  %v2193_v14 = vld [vmem:[#allocation2 + $0x40] sm:$0xff] }
 0x290   : > { %v2133_v50 = vmul.f32 %v3350_v43, %v2085_v30 }
 0x291   : > { %2258 = vperm.xlu1 %3318, %v2130_v29   ;;  %v2166_v16 = vmul.f32 %v2134_v46, %v4083_v45 }
 0x292   : > { %2253 = vperm.xlu0 %3317, %v2129_v31   ;;  %v2165_v21 = vmul.f32 %v2133_v50, %v4087_v55 }
 0x293   : > { %v2182_v23 = vsub.f32 %v2150_v9, %v2166_v16 }
 0x294   : > { %v2181_v26 = vsub.f32 %v2149_v56, %v2165_v21 }
 0x295   : > { %2268 = vperm.xlu1 %3318, %v2132_v34  }
 0x296   : > { %2263 = vperm.xlu0 %3317, %v2131_v28  }
 0x299   : > { %2278 = vperm.xlu1 %3318, %v2134_v46   ;;  %v2186_v46 = vld [vmem:[#allocation2 + $0x8] sm:$0xff] }
 0x29a   : > { %2273 = vperm.xlu0 %3317, %v2133_v50  }
 0x29d   : > { %2304 = vperm.xlu1 %3318, %v2168_v20   ;;  %v2188_v20 = vld [vmem:[#allocation2 + $0x18] sm:$0xff] }
 0x29e   : > { %2299 = vperm.xlu0 %3317, %v2167_v57  }
 0x2a1   : > { %2314 = vperm.xlu1 %3318, %v2170_v59  }
 0x2a2   : > { %2309 = vperm.xlu0 %3317, %v2169_v60  }
 0x2a5   : > { %2324 = vperm.xlu1 %3318, %v2172_v61   ;;  %v2189_v61 = vld [vmem:[#allocation2 + $0x20] sm:$0xff] }
 0x2a6   : > { %2319 = vperm.xlu0 %3317, %v2171_v63  }
 0x2a9   : > { %2334 = vperm.xlu1 %3318, %v2174_v42  }
 0x2aa   : > { %2329 = vperm.xlu0 %3317, %v2173_v0   ;;  %v2192_v0 = vld [vmem:[#allocation2 + $0x38] sm:$0xff] }
 0x2ad   : > { %2344 = vperm.xlu1 %3318, %v2176_v2  }
 0x2ae   : > { %2339 = vperm.xlu0 %3317, %v2175_v10  }
 0x2b1   : > { %2354 = vperm.xlu1 %3318, %v2178_v36  }
 0x2b2   : > { %2349 = vperm.xlu0 %3317, %v2177_v38  }
 0x2b5   : > { %2364 = vperm.xlu1 %3318, %v2180_v15  }
 0x2b6   : > { %2359 = vperm.xlu0 %3317, %v2179_v58  }
 0x2b9   : > { %2374 = vperm.xlu1 %3318, %v2182_v23   ;;  %v2196_v23 = vld [vmem:[#allocation2 + $0x58] sm:$0xff] }
 0x2ba   : > { %2369 = vperm.xlu0 %3317, %v2181_v26  }
 0x2fc   : > { %v2214_v29 = vpop.permute.xlu1 %2213 }
 0x2fd   : > { %v2204_v45 = vpop.permute.xlu0 %2203  ;;  %v2283_v60 = vmul.f32 %v2214_v29, %v2187_v19 }
 0x2fe   : > { %v2281_v51 = vmul.f32 %v2204_v45, %v2185_v7  ;;  %v2195_v45 = vld [vmem:[#allocation2 + $0x50] sm:$0xff] }
 0x300   : > { %v2219_v52 = vpop.permute.xlu1 %2218 }
 0x301   : > { %v2209_v31 = vpop.permute.xlu0 %2208  ;;  %v2284_v59 = vmul.f32 %v2219_v52, %v2188_v20 }
 0x302   : > { %v2282_v47 = vmul.f32 %v2209_v31, %v2186_v46 }
 0x304   : > { %v2229_v33 = vpop.permute.xlu1 %2228 }
 0x305   : > { %v2224_v54 = vpop.permute.xlu0 %2223  ;;  %v2286_v13 = vmul.f32 %v2229_v33, %v2190_v53 }
 0x306   : > { %v2285_v44 = vmul.f32 %v2224_v54, %v2189_v61 }
 0x308   : > { %v2239_v6 = vpop.permute.xlu1 %2238 }
 0x309   : > { %v2234_v34 = vpop.permute.xlu0 %2233  ;;  %v2288_v11 = vmul.f32 %v2239_v6, %v2192_v0 }
 0x30a   : > { %v2287_v36 = vmul.f32 %v2234_v34, %v2191_v35 }
 0x30c   : > { %v2249_v8 = vpop.permute.xlu1 %2248 }
 0x30d   : > { %v2244_v55 = vpop.permute.xlu0 %2243  ;;  %v2290_v9 = vmul.f32 %v2249_v8, %v2194_v12  ;;  %v2198_v8 = vld [vmem:[#allocation2 + $0x68] sm:$0xff] }
 0x30e   : > { %v2289_v56 = vmul.f32 %v2244_v55, %v2193_v14 }
 0x310   : > { %v4199_v28 = vpop.permute.xlu1 %2258 }
 0x311   : > { %v4201_v41 = vpop.permute.xlu0 %2253  ;;  %v2292_v6 = vmul.f32 %v4199_v28, %v2196_v23 }
 0x312   : > { %v2291_v46 = vmul.f32 %v4201_v41, %v2195_v45 }
 0x314   : > { %v4203_v43 = vpop.permute.xlu1 %2268 }
 0x315   : > { %v4205_v30 = vpop.permute.xlu0 %2263 }
 0x318   : > { %v4207_v49 = vpop.permute.xlu1 %2278 }
 0x319   : > { %v4209_v50 = vpop.permute.xlu0 %2273 }
 0x31c   : > { %v2305_v27 = vpop.permute.xlu1 %2304 }
 0x31d   : > { %v2378_v57 = vadd.f32 %v2305_v27, %v2282_v47  ;;  %v2300_v32 = vpop.permute.xlu0 %2299  ;;  %v2197_v47 = vld [vmem:[#allocation2 + $0x60] sm:$0xff] }
 0x31e   : > { %v2377_v4 = vadd.f32 %v2300_v32, %v2281_v51  ;;  %v2293_v28 = vmul.f32 %v4205_v30, %v2197_v47 }
 0x31f   : > { %v2394_v22 = vmax.f32 %v2378_v57, 0.0  ;;  %v2294_v57 = vmul.f32 %v4203_v43, %v2198_v8 }
 0x320   : > { %v2393_v24 = vmax.f32 %v2377_v4, 0.0  ;;  %v2315_v37 = vpop.permute.xlu1 %2314  ;;  %v2200_v4 = vld [vmem:[#allocation2 + $0x78] sm:$0xff] }
 0x321   : > { %v2380_v17 = vadd.f32 %v2315_v37, %v2284_v59  ;;  %v2310_v63 = vpop.permute.xlu0 %2309  ;;  %v2296_v61 = vmul.f32 %v4207_v49, %v2200_v4 }
 0x322   : > { %v2751_v5 = vpack.c.bf16 %v2394_v22, %v2393_v24  ;;  %v2379_v39 = vadd.f32 %v2310_v63, %v2283_v60  ;;  %v2199_v22 = vld [vmem:[#allocation2 + $0x70] sm:$0xff] }
 0x323   : > { %v2396_v42 = vmax.f32 %v2380_v17, 0.0  ;;  %v2295_v43 = vmul.f32 %v4209_v50, %v2199_v22 }
 0x324   : > { %2752 = vst [vmem:[%s4254_s4] sm:$0xff] %v2751_v5   ;;  %v2395_v18 = vmax.f32 %v2379_v39, 0.0  ;;  %v2325_v1 = vpop.permute.xlu1 %2324 }
 0x325   : > { %v2382_v2 = vadd.f32 %v2325_v1, %v2286_v13  ;;  %v2320_v3 = vpop.permute.xlu0 %2319 }
 0x326   : > { %v2756_v10 = vpack.c.bf16 %v2396_v42, %v2395_v18  ;;  %v2381_v48 = vadd.f32 %v2320_v3, %v2285_v44 }
 0x327   : > { %v2398_v25 = vmax.f32 %v2382_v2, 0.0 }
 0x328   : > { %2788 = vst [vmem:[%s4254_s4 + $0x8] sm:$0xff] %v2756_v10   ;;  %v2397_v38 = vmax.f32 %v2381_v48, 0.0  ;;  %v2335_v40 = vpop.permute.xlu1 %2334 }
 0x329   : > { %v2384_v62 = vadd.f32 %v2335_v40, %v2288_v11  ;;  %v2330_v15 = vpop.permute.xlu0 %2329 }
 0x32a   : > { %v2761_v16 = vpack.c.bf16 %v2398_v25, %v2397_v38  ;;  %v2383_v58 = vadd.f32 %v2330_v15, %v2287_v36 }
 0x32b   : > { %v2400_v21 = vmax.f32 %v2384_v62, 0.0 }
 0x32c   : > { %2789 = vst [vmem:[%s4254_s4 + $0x10] sm:$0xff] %v2761_v16   ;;  %v2399_v26 = vmax.f32 %v2383_v58, 0.0  ;;  %v2345_v29 = vpop.permute.xlu1 %2344 }
 0x32d   : > { %v2386_v52 = vadd.f32 %v2345_v29, %v2290_v9  ;;  %v2340_v31 = vpop.permute.xlu0 %2339 }
 0x32e   : > { %v2766_v33 = vpack.c.bf16 %v2400_v21, %v2399_v26  ;;  %v2385_v54 = vadd.f32 %v2340_v31, %v2289_v56 }
 0x32f   : > { %v2402_v34 = vmax.f32 %v2386_v52, 0.0 }
 0x330   : > { %2790 = vst [vmem:[%s4254_s4 + $0x18] sm:$0xff] %v2766_v33   ;;  %v2401_v55 = vmax.f32 %v2385_v54, 0.0  ;;  %v2355_v7 = vpop.permute.xlu1 %2354 }
 0x331   : > { %v2388_v51 = vadd.f32 %v2355_v7, %v2292_v6  ;;  %v2350_v20 = vpop.permute.xlu0 %2349 }
 0x332   : > { %v2771_v27 = vpack.c.bf16 %v2402_v34, %v2401_v55  ;;  %v2387_v19 = vadd.f32 %v2350_v20, %v2291_v46 }
 0x333   : > { %v2404_v32 = vmax.f32 %v2388_v51, 0.0 }
 0x334   : > { %2791 = vst [vmem:[%s4254_s4 + $0x20] sm:$0xff] %v2771_v27   ;;  %v2403_v41 = vmax.f32 %v2387_v19, 0.0  ;;  %v2365_v59 = vpop.permute.xlu1 %2364 }
 0x335   : > { %v2390_v60 = vadd.f32 %v2365_v59, %v2294_v57  ;;  %v2360_v53 = vpop.permute.xlu0 %2359 }
 0x336   : > { %v2776_v24 = vpack.c.bf16 %v2404_v32, %v2403_v41  ;;  %v2389_v37 = vadd.f32 %v2360_v53, %v2293_v28 }
 0x337   : > { %v2406_v17 = vmax.f32 %v2390_v60, 0.0 }
 0x338   : > { %2792 = vst [vmem:[%s4254_s4 + $0x28] sm:$0xff] %v2776_v24   ;;  %v2405_v30 = vmax.f32 %v2389_v37, 0.0  ;;  %v2375_v63 = vpop.permute.xlu1 %2374 }
 0x339   : > { %v2392_v5 = vadd.f32 %v2375_v63, %v2296_v61  ;;  %v2370_v39 = vpop.permute.xlu0 %2369 }
 0x33a   : > { %v2781_v13 = vpack.c.bf16 %v2406_v17, %v2405_v30  ;;  %v2391_v42 = vadd.f32 %v2370_v39, %v2295_v43 }
 0x33b   : > { %v2408_v44 = vmax.f32 %v2392_v5, 0.0 }
 0x33c   : > { %2793 = vst [vmem:[%s4254_s4 + $0x30] sm:$0xff] %v2781_v13   ;;  %v2407_v0 = vmax.f32 %v2391_v42, 0.0 }
 0x33e   : > { %v2786_v49 = vpack.c.bf16 %v2408_v44, %v2407_v0 }
 0x340   : > { %2794 = vst [vmem:[%s4254_s4 + $0x38] sm:$0xff] %v2786_v49  }
 0x341 PF: > { %s14_s17 = sadd.s32 1, %s3373_s17   ;;  %s4255_s15 = smov %s3369_s16 }
 0x342   : > { %p11_p7 = scmp.ge.s32.totalorder %s14_s17, 4   ;;  %s4256_s16 = smov %s4258_s18 }
 0x344   :  { %13 = sbr.rel (!%p11_p7) target bundleno = 2 (0x2), region = 80 }

// kernel: decoder_forward.7
= control target key start
LH: loop header
LB: loop body
LE: loop exit
PB: predicated region body
PF: predicated region fallthrough
CT: control target
= control target key end

     0   :  { %s1293_s15 = smov 0   ;;  %s1295_s16 = smov 0   ;;  %s1501_s0 = inlined_call_operand.vmem [shape: bf16[32,576], index: 0, kind: input, shape index: {}]   ;;  %s1502_s1 = inlined_call_operand.vmem [shape: bf16[576,128], index: 1, kind: input, shape index: {}]   ;;  %s1503_s2 = inlined_call_operand.vmem [shape: f32[32,1], index: 2, kind: input, shape index: {}]   ;;  %s1504_s3 = inlined_call_operand.vmem [shape: f32[32,1], index: 3, kind: input, shape index: {}]   ;;  %s1505_s4 = inlined_call_operand.vmem [shape: bf16[32,128], index: 4, kind: output, shape index: {}]  }
   0x1   :  { %s1297_s17 = smov 0  }
   0x2 LB: > { %s26_s18 = sadd.s32 1, %s1260_s16  ;;  %p1006_p0 = scmp.ge.s32.totalorder %s1264_s17, 1  ;;  %s1264_s17 = sphi %s1297_s17, %s14_s17   ;;  %s1260_s16 = sphi %s1295_s16, %s1507_s16   ;;  %s1256_s15 = sphi %s1293_s15, %s1506_s15  }
   0x3   : > { %p28_p1 = scmp.ge.s32.totalorder %s26_s18, 2  ;;  %p183_p2 = scmp.lt.s32.totalorder %s1264_s17, 3 }
   0x5   : > { %s1509_s18 = smov (%p28_p1, %s26_s18), 0  ;;  %p184_p3 = pnand %p1006_p0, %p183_p2 }
   0x6   : > { %p225_p4 = scmp.eq.s32.totalorder (!%p184_p3), %s1256_s15, 0 }
   0x7   : > { %187 = sbr.rel (%p184_p3) target bundleno = 619 (0x26b), region = 36 }
   0xe   : > { %230 = sbr.rel (!%p225_p4) target bundleno = 21 (0x15), region = 40  ;;  %vm231_vm0 = vcmask (%p225_p4), 7168   ;;  %v1266_v0 = vmov (%p225_p4), 0.0  }
   0xf   : > { %232 = vst.msk [vmem:[#allocation3] sm:$0xff] (%p225_p4), %vm231_vm0, %v1266_v0  ;;  %233 = vst.msk [vmem:[#allocation3 + $0x8] sm:$0xff] (%p225_p4), %vm231_vm0, %v1266_v0 }
  0x10   : > { %234 = vst.msk [vmem:[#allocation3 + $0x10] sm:$0xff] (%p225_p4), %vm231_vm0, %v1266_v0  ;;  %235 = vst.msk [vmem:[#allocation3 + $0x18] sm:$0xff] (%p225_p4), %vm231_vm0, %v1266_v0 }
  0x11   : > { %236 = vst.msk [vmem:[#allocation4] sm:$0xff] (%p225_p4), %vm231_vm0, %v1266_v0  ;;  %237 = vst.msk [vmem:[#allocation4 + $0x8] sm:$0xff] (%p225_p4), %vm231_vm0, %v1266_v0 }
  0x12   : > { %238 = vst.msk [vmem:[#allocation4 + $0x10] sm:$0xff] (%p225_p4), %vm231_vm0, %v1266_v0  ;;  %239 = vst.msk [vmem:[#allocation4 + $0x18] sm:$0xff] (%p225_p4), %vm231_vm0, %v1266_v0 }
  0x15 PF: > { %p1008_p5 = scmp.ne.s32.totalorder %s1256_s15, 0 }
  0x16   : > { %v1182_v1 = vld [vmem:[%s1502_s1 + $0x40] sm:$0xff] (!%p1008_p5)   ;;  %v1186_v5 = vld [vmem:[%s1502_s1 + $0x48] sm:$0xff] (!%p1008_p5)   ;;  %v1190_v9 = vld [vmem:[%s1502_s1 + $0x50] sm:$0xff] (!%p1008_p5)   ;;  %vm593_vm1 = vcmask (!%p1008_p5), 523264   ;;  %vm769_vm2 = vcmask (!%p1008_p5), 7168  }
  0x17   : > { %242 = sbr.rel (%p1008_p5) target bundleno = 445 (0x1bd), region = 44  ;;  %v1183_v2 = vld [vmem:[%s1502_s1 + $0xc0] sm:$0xff] (!%p1008_p5)   ;;  %1082 = vmatprep.subr.bf16.mxu0 (!%p1008_p5), %v1182_v1  ;;  %v1187_v6 = vld [vmem:[%s1502_s1 + $0xc8] sm:$0xff] (!%p1008_p5)   ;;  %v1191_v10 = vld [vmem:[%s1502_s1 + $0xd0] sm:$0xff] (!%p1008_p5)  }
  0x18   : > { %v1184_v3 = vld [vmem:[%s1502_s1] sm:$0xff] (!%p1008_p5)   ;;  %1110 = vmatprep.subr.bf16.mxu1 (!%p1008_p5), %v1183_v2  ;;  %v1188_v7 = vld [vmem:[%s1502_s1 + $0x8] sm:$0xff] (!%p1008_p5)   ;;  %v1192_v11 = vld [vmem:[%s1502_s1 + $0x10] sm:$0xff] (!%p1008_p5)  }
  0x19   : > { %v1185_v4 = vld [vmem:[%s1502_s1 + $0x80] sm:$0xff] (!%p1008_p5)   ;;  %1083 = vmatpush3.bf16.msra.mxu0 (!%p1008_p5), %v1184_v3  ;;  %v1189_v8 = vld [vmem:[%s1502_s1 + $0x88] sm:$0xff] (!%p1008_p5)   ;;  %v1193_v12 = vld [vmem:[%s1502_s1 + $0x90] sm:$0xff] (!%p1008_p5)  }
  0x1a   : > { %1111 = vmatpush3.bf16.msra.mxu1 (!%p1008_p5), %v1185_v4  ;;  %1084 = vmatprep.subr.bf16.mxu0 (!%p1008_p5), %v1186_v5  ;;  %v1194_v13 = vld [vmem:[%s1502_s1 + $0x58] sm:$0xff] (!%p1008_p5)   ;;  %v1198_v17 = vld [vmem:[%s1502_s1 + $0x60] sm:$0xff] (!%p1008_p5)   ;;  %v1202_v21 = vld [vmem:[%s1502_s1 + $0x68] sm:$0xff] (!%p1008_p5)  }
  0x1b   : > { %1112 = vmatprep.subr.bf16.mxu1 (!%p1008_p5), %v1187_v6  ;;  %v1195_v14 = vld [vmem:[%s1502_s1 + $0xd8] sm:$0xff] (!%p1008_p5)   ;;  %v1199_v18 = vld [vmem:[%s1502_s1 + $0xe0] sm:$0xff] (!%p1008_p5)   ;;  %v1203_v22 = vld [vmem:[%s1502_s1 + $0xe8] sm:$0xff] (!%p1008_p5)  }
  0x1c   : > { %v1196_v15 = vld [vmem:[%s1502_s1 + $0x18] sm:$0xff] (!%p1008_p5)   ;;  %v1200_v19 = vld [vmem:[%s1502_s1 + $0x20] sm:$0xff] (!%p1008_p5)   ;;  %v1204_v23 = vld [vmem:[%s1502_s1 + $0x28] sm:$0xff] (!%p1008_p5)  }
  0x1d   : > { %1085 = vmatpush3.bf16.msra.mxu0 (!%p1008_p5), %v1188_v7  ;;  %v1197_v16 = vld [vmem:[%s1502_s1 + $0x98] sm:$0xff] (!%p1008_p5)   ;;  %v1201_v20 = vld [vmem:[%s1502_s1 + $0xa0] sm:$0xff] (!%p1008_p5)   ;;  %v1205_v24 = vld [vmem:[%s1502_s1 + $0xa8] sm:$0xff] (!%p1008_p5)  }
  0x1e   : > { %1113 = vmatpush3.bf16.msra.mxu1 %v1189_v8  ;;  %1086 = vmatprep.subr.bf16.mxu0 %v1190_v9  ;;  %v1206_v25 = vld [vmem:[%s1502_s1 + $0x70] sm:$0xff]   ;;  %v1210_v29 = vld [vmem:[%s1502_s1 + $0x78] sm:$0xff]   ;;  %v1219_v36 = vld [vmem:[%s1501_s0 + $0xc] ss:$20 sps:$4 sm:$0xff]  }
  0x1f   : > { %1114 = vmatprep.subr.bf16.mxu1 %v1191_v10  ;;  %v1207_v26 = vld [vmem:[%s1502_s1 + $0xf0] sm:$0xff]   ;;  %v1211_v30 = vld [vmem:[%s1502_s1 + $0xf8] sm:$0xff]   ;;  %v1220_v37 = vld [vmem:[%s1502_s1 + $0x100] sm:$0xff]   ;;  %681 = vmatprep.mubr.bf16.mxu1 %v1219_v36 }
  0x20   : > { %v1208_v27 = vld [vmem:[%s1502_s1 + $0x30] sm:$0xff]   ;;  %v1212_v31 = vld [vmem:[%s1502_s1 + $0x38] sm:$0xff]   ;;  %v1221_v38 = vld [vmem:[%s1502_s1 + $0x108] sm:$0xff]  }
  0x21   : > { %1087 = vmatpush3.bf16.msra.mxu0 %v1192_v11  ;;  %v1209_v28 = vld [vmem:[%s1502_s1 + $0xb0] sm:$0xff]   ;;  %v1213_v32 = vld [vmem:[%s1502_s1 + $0xb8] sm:$0xff]   ;;  %v1222_v39 = vld [vmem:[%s1501_s0 + $0x2c] ss:$20 sps:$4 sm:$0xff]  }
  0x22   : > { %1115 = vmatpush3.bf16.msra.mxu1 %v1193_v12  ;;  %1088 = vmatprep.subr.bf16.mxu0 %v1194_v13  ;;  %v1214_v33 = vld [vmem:[%s1501_s0] ss:$20 sps:$4 sm:$0xff]   ;;  %v1216_v34 = vld [vmem:[%s1501_s0 + $0x4] ss:$20 sps:$4 sm:$0xff]   ;;  %v1217_v35 = vld [vmem:[%s1501_s0 + $0x8] ss:$20 sps:$4 sm:$0xff]  }
  0x23   : > { %1116 = vmatprep.subr.bf16.mxu1 %v1195_v14  ;;  %632 = vmatprep.mubr.bf16.mxu0 %v1216_v34  ;;  %v1224_v40 = vld [vmem:[%s1501_s0 + $0x34] ss:$20 sps:$4 sm:$0xff]   ;;  %v1227_v43 = vld [vmem:[%s1501_s0 + $0x30] ss:$20 sps:$4 sm:$0xff]   ;;  %v1229_v45 = vld [vmem:[%s1502_s1 + $0x118] sm:$0xff]  }
  0x24   : > { %v1226_v41 = vld [vmem:[%s1501_s0 + $0x28] ss:$20 sps:$4 sm:$0xff]   ;;  %v1228_v42 = vld [vmem:[%s1502_s1 + $0x110] sm:$0xff]   ;;  %v1231_v46 = vld [vmem:[%s1501_s0 + $0x38] ss:$20 sps:$4 sm:$0xff]  }
  0x25   : > { %1089 = vmatpush3.bf16.msra.mxu0 %v1196_v15  ;;  %v1230_v44 = vld [vmem:[%s1501_s0 + $0x10] ss:$20 sps:$4 sm:$0xff]  }
  0x26   : > { %1117 = vmatpush3.bf16.msra.mxu1 %v1197_v16  ;;  %1090 = vmatprep.subr.bf16.mxu0 %v1198_v17  ;;  %v774_v36 = vld [vmem:[#allocation4] sm:$0xff] }
  0x27   : > { %1118 = vmatprep.subr.bf16.mxu1 %v1199_v18 }
  0x29   : > { %1091 = vmatpush3.bf16.msra.mxu0 %v1200_v19 }
  0x2a   : > { %1119 = vmatpush3.bf16.msra.mxu1 %v1201_v20  ;;  %1092 = vmatprep.subr.bf16.mxu0 %v1202_v21 }
  0x2b   : > { %1120 = vmatprep.subr.bf16.mxu1 %v1203_v22 }
  0x2d   : > { %1093 = vmatpush3.bf16.msra.mxu0 %v1204_v23  ;;  %v755_v23 = vld [vmem:[#allocation3 + $0x10] sm:$0xff] }
  0x2e   : > { %1121 = vmatpush3.bf16.msra.mxu1 %v1205_v24  ;;  %1094 = vmatprep.subr.bf16.mxu0 %v1206_v25  ;;  %v753_v24 = vld [vmem:[#allocation3] sm:$0xff] }
  0x2f   : > { %1122 = vmatprep.subr.bf16.mxu1 %v1207_v26 }
  0x31   : > { %1095 = vmatpush3.bf16.msra.mxu0 %v1208_v27 }
  0x32   : > { %1123 = vmatpush3.bf16.msra.mxu1 %v1209_v28  ;;  %1096 = vmatprep.subr.bf16.mxu0 %v1210_v29  ;;  %v756_v29 = vld [vmem:[#allocation3 + $0x18] sm:$0xff] }
  0x33   : > { %1124 = vmatprep.subr.bf16.mxu1 %v1211_v30  ;;  %v754_v30 = vld [vmem:[#allocation3 + $0x8] sm:$0xff] }
  0x35   : > { %1097 = vmatpush3.bf16.msra.mxu0 %v1212_v31 }
  0x36   : > { %1125 = vmatpush3.bf16.msra.mxu1 %v1213_v32  ;;  %1144 = vmatprep.subr.bf16.mxu0 %v1220_v37 }
  0x38   : > { %633 = vmatmul.mubr.bf16.vlgmr.msra.gmra.mrb[0].mxu0 %v1214_v33 }
  0x39   : > { %682 = vmatmul.mubr.bf16.vlgmr.msra.gmra.mrb[0].mxu1 %v1217_v35  ;;  %1145 = vmatpush3.bf16.msra.mxu0 %v1220_v37  ;;  %v775_v35 = vld [vmem:[#allocation4 + $0x8] sm:$0xff] }
  0x3a   : > { %1146 = vmatprep.subr.bf16.mxu0 %v1221_v38  ;;  %640 = vmatprep.mubr.bf16.mxu0 %v1222_v39 }
  0x3b   : > { %689 = vmatprep.mubr.bf16.mxu1 %v1224_v40 }
  0x3d   : > { %1147 = vmatpush3.bf16.msra.mxu0 %v1221_v38 }
  0x3e   : > { %1148 = vmatprep.subr.bf16.mxu0 %v1228_v42 }
  0x40   : > { %641 = vmatmul.mubr.bf16.gmra.mrb[4].mxu0 %v1226_v41  ;;  %v777_v41 = vld [vmem:[#allocation4 + $0x18] sm:$0xff] }
  0x41   : > { %690 = vmatmul.mubr.bf16.gmra.mrb[4].mxu1 %v1227_v43  ;;  %1152 = vmatprep.mubr.msk.bf16.mxu0 %vm593_vm1, %v1230_v44 }
  0x42   : > { %1149 = vmatpush3.bf16.msra.mxu0 %v1228_v42  ;;  %v776_v42 = vld [vmem:[#allocation4 + $0x10] sm:$0xff] }
  0x43   : > { %1150 = vmatprep.subr.bf16.mxu0 %v1229_v45 }
  0x46   : > { %1151 = vmatpush3.bf16.msra.mxu0 %v1229_v45 }
  0x49   : > { %1153 = vmatmul.mubr.msk.bf16.vlgmr.msra.gmra.mrb[8].mxu0 %vm593_vm1, %v1231_v46 }
 0x10b   : > { %v1098_v47 = vpop.f32.mrb[0].mxu0 }
 0x10c   : > { %v1126_v48 = vpop.f32.mrb[0].mxu1  ;;  %v1099_v49 = vpop.f32.mrb[1].mxu0 }
 0x10d   : > { %v1100_v50 = vadd.f32 %v1099_v49, %v1098_v47  ;;  %v1127_v51 = vpop.f32.mrb[1].mxu1  ;;  %v1101_v52 = vpop.f32.mrb[2].mxu0 }
 0x10e   : > { %v1128_v53 = vadd.f32 %v1127_v51, %v1126_v48  ;;  %v1129_v54 = vpop.f32.mrb[2].mxu1  ;;  %v1102_v55 = vpop.f32.mrb[3].mxu0 }
 0x10f   : > { %v1103_v56 = vadd.f32 %v1102_v55, %v1101_v52  ;;  %v1130_v57 = vpop.f32.mrb[3].mxu1 }
 0x110   : > { %v1131_v58 = vadd.f32 %v1130_v57, %v1129_v54  ;;  %v684_v59 = vadd.f32 %v1128_v53, %v1100_v50 }
 0x112   : > { %v687_v60 = vadd.f32 %v1131_v58, %v1103_v56 }
 0x113   : > { %v1104_v61 = vpop.f32.mrb[4].mxu0 }
 0x114   : > { %v1132_v62 = vpop.f32.mrb[4].mxu1  ;;  %v1105_v63 = vpop.f32.mrb[5].mxu0 }
 0x115   : > { %v1106_v0 = vadd.f32 %v1105_v63, %v1104_v61  ;;  %v1133_v1 = vpop.f32.mrb[5].mxu1  ;;  %v1107_v2 = vpop.f32.mrb[6].mxu0 }
 0x116   : > { %v1134_v3 = vadd.f32 %v1133_v1, %v1132_v62  ;;  %v1135_v4 = vpop.f32.mrb[6].mxu1  ;;  %v1108_v5 = vpop.f32.mrb[7].mxu0 }
 0x117   : > { %v1109_v6 = vadd.f32 %v1108_v5, %v1107_v2  ;;  %v1136_v7 = vpop.f32.mrb[7].mxu1 }
 0x118   : > { %v1137_v8 = vadd.f32 %v1136_v7, %v1135_v4  ;;  %v692_v9 = vadd.f32 %v1134_v3, %v1106_v0 }
 0x11a   : > { %v695_v10 = vadd.f32 %v1137_v8, %v1109_v6 }
 0x11c   : > { %v1154_v11 = vpop.f32.mrb[8].mxu0 }
 0x11d   : > { %v741_v12 = vadd.f32 %v1154_v11, %v692_v9  ;;  %v732_v13 = vpop.f32.mrb[9].mxu0 }
 0x11e   : > { %v733_v14 = vadd.f32 %v732_v13, %v684_v59  ;;  %v1155_v15 = vpop.f32.mrb[10].mxu0 }
 0x11f   : > { %751 = vst [vmem:[#allocation2 + $0x10] sm:$0xff] %v741_v12  ;;  %v744_v16 = vadd.f32 %v1155_v15, %v695_v10  ;;  %v735_v17 = vpop.f32.mrb[11].mxu0  ;;  %761 = vadd.xlane.f32.xlu1 %v741_v12  ;;  %v780_v22 = vmul.f32 %v741_v12, %v741_v12 }
 0x120   : > { %749 = vst [vmem:[#allocation2] sm:$0xff] %v733_v14  ;;  %v736_v18 = vadd.f32 %v735_v17, %v687_v60  ;;  %757 = vadd.xlane.f32.xlu0 %v733_v14  ;;  %v778_v20 = vmul.f32 %v733_v14, %v733_v14 }
 0x121   : > { %752 = vst [vmem:[#allocation2 + $0x18] sm:$0xff] %v744_v16  ;;  %v781_v21 = vmul.f32 %v744_v16, %v744_v16 }
 0x122   : > { %750 = vst [vmem:[#allocation2 + $0x8] sm:$0xff] %v736_v18  ;;  %v779_v19 = vmul.f32 %v736_v18, %v736_v18 }
 0x123   : > { %763 = vadd.xlane.f32.xlu1 %v744_v16 }
 0x124   : > { %759 = vadd.xlane.f32.xlu0 %v736_v18 }
 0x127   : > { %784 = vadd.xlane.f32.xlu1 %v779_v19 }
 0x128   : > { %782 = vadd.xlane.f32.xlu0 %v778_v20 }
 0x12b   : > { %788 = vadd.xlane.f32.xlu1 %v781_v21 }
 0x12c   : > { %786 = vadd.xlane.f32.xlu0 %v780_v22 }
 0x1ac   : > { %v762_v25 = vpop.xlane.xlu1 %761 }
 0x1ad   : > { %v767_v26 = vadd.f32 %v762_v25, %v755_v23  ;;  %v758_v27 = vpop.xlane.xlu0 %757 }
 0x1ae   : > { %v765_v28 = vadd.f32 %v758_v27, %v753_v24 }
 0x1af   : > { %772 = vst.msk [vmem:[#allocation3 + $0x10] sm:$0xff] %vm769_vm2, %v767_v26 }
 0x1b0   : > { %770 = vst.msk [vmem:[#allocation3] sm:$0xff] %vm769_vm2, %v765_v28  ;;  %v764_v31 = vpop.xlane.xlu1 %763 }
 0x1b1   : > { %v768_v32 = vadd.f32 %v764_v31, %v756_v29  ;;  %v760_v33 = vpop.xlane.xlu0 %759 }
 0x1b2   : > { %v766_v34 = vadd.f32 %v760_v33, %v754_v30 }
 0x1b3   : > { %773 = vst.msk [vmem:[#allocation3 + $0x18] sm:$0xff] %vm769_vm2, %v768_v32 }
 0x1b4   : > { %771 = vst.msk [vmem:[#allocation3 + $0x8] sm:$0xff] %vm769_vm2, %v766_v34  ;;  %v785_v37 = vpop.xlane.xlu1 %784 }
 0x1b5   : > { %v791_v38 = vadd.f32 %v785_v37, %v775_v35  ;;  %v783_v39 = vpop.xlane.xlu0 %782 }
 0x1b6   : > { %v790_v40 = vadd.f32 %v783_v39, %v774_v36 }
 0x1b7   : > { %795 = vst.msk [vmem:[#allocation4 + $0x8] sm:$0xff] %vm769_vm2, %v791_v38 }
 0x1b8   : > { %794 = vst.msk [vmem:[#allocation4] sm:$0xff] %vm769_vm2, %v790_v40  ;;  %v789_v43 = vpop.xlane.xlu1 %788 }
 0x1b9   : > { %v793_v44 = vadd.f32 %v789_v43, %v777_v41  ;;  %v787_v45 = vpop.xlane.xlu0 %786 }
 0x1ba   : > { %v792_v46 = vadd.f32 %v787_v45, %v776_v42 }
 0x1bb   : > { %797 = vst.msk [vmem:[#allocation4 + $0x18] sm:$0xff] %vm769_vm2, %v793_v44 }
 0x1bc   : > { %796 = vst.msk [vmem:[#allocation4 + $0x10] sm:$0xff] %vm769_vm2, %v792_v46 }
 0x1bd PF: > { %p1057_p6 = scmp.ne.s32.totalorder %s1256_s15, 1 }
 0x1be   : > { %v804_v47 = vld [vmem:[#allocation3 + $0x10] sm:$0xff] (!%p1057_p6)  ;;  %v1267_v49 = vmov (!%p1057_p6), 0   ;;  %v802_v52 = vld [vmem:[#allocation3] sm:$0xff] (!%p1057_p6)  ;;  %v805_v56 = vld [vmem:[#allocation3 + $0x18] sm:$0xff] (!%p1057_p6) }
 0x1bf   : > { %801 = sbr.rel (%p1057_p6) target bundleno = 619 (0x26b), region = 48  ;;  %1233 = vset.pattern.permute.xlu1 (!%p1057_p6), %v1267_v49  ;;  %1232 = vset.pattern.permute.xlu0 (!%p1057_p6), %v1267_v49  ;;  %v808_v50 = vmul.f32 (!%p1057_p6), 0.010204081, %v804_v47  ;;  %v810_v53 = vld [vmem:[#allocation4] sm:$0xff] (!%p1057_p6)  ;;  %v806_v54 = vmul.f32 (!%p1057_p6), 0.010204081, %v802_v52 }
 0x1c0   : > { %v814_v55 = vmul.f32 (!%p1057_p6), 0.010204081, %v810_v53  ;;  %v809_v58 = vmul.f32 (!%p1057_p6), 0.010204081, %v805_v56  ;;  %v803_v60 = vld [vmem:[#allocation3 + $0x8] sm:$0xff] (!%p1057_p6)  ;;  %v828_v12 = vld [vmem:[%s1503_s2 + $0x10] sm:$0xff] (!%p1057_p6) }
 0x1c1   : > { %v820_v57 = vmul.f32 (!%p1057_p6), %v808_v50, %v808_v50  ;;  %v818_v61 = vmul.f32 (!%p1057_p6), %v806_v54, %v806_v54  ;;  %v807_v63 = vmul.f32 (!%p1057_p6), 0.010204081, %v803_v60  ;;  %v811_v0 = vld [vmem:[#allocation4 + $0x8] sm:$0xff] (!%p1057_p6)  ;;  %v826_v13 = vld [vmem:[%s1503_s2] sm:$0xff] (!%p1057_p6)  ;;  %v829_v15 = vld [vmem:[%s1503_s2 + $0x18] sm:$0xff] (!%p1057_p6) }
 0x1c2   : > { %v813_v59 = vld [vmem:[#allocation4 + $0x18] sm:$0xff] (!%p1057_p6)  ;;  %v821_v2 = vmul.f32 (!%p1057_p6), %v809_v58, %v809_v58  ;;  %v815_v3 = vmul.f32 (!%p1057_p6), 0.010204081, %v811_v0  ;;  %v827_v18 = vld [vmem:[%s1503_s2 + $0x8] sm:$0xff] (!%p1057_p6)  ;;  %v842_v26 = vld [vmem:[%s1504_s3] sm:$0xff] (!%p1057_p6) }
 0x1c3   : > { %v812_v48 = vld [vmem:[#allocation4 + $0x10] sm:$0xff] (!%p1057_p6)  ;;  %v817_v62 = vmul.f32 (!%p1057_p6), 0.010204081, %v813_v59  ;;  %v822_v4 = vsub.f32 (!%p1057_p6), %v814_v55, %v818_v61  ;;  %v819_v5 = vmul.f32 (!%p1057_p6), %v807_v63, %v807_v63  ;;  %v843_v25 = vld [vmem:[%s1504_s3 + $0x8] sm:$0xff] (!%p1057_p6)  ;;  %v845_v32 = vld [vmem:[%s1504_s3 + $0x18] sm:$0xff] (!%p1057_p6) }
 0x1c4   : > { %v816_v51 = vmul.f32 (!%p1057_p6), 0.010204081, %v812_v48  ;;  %v844_v33 = vld [vmem:[%s1504_s3 + $0x10] sm:$0xff] (!%p1057_p6)  ;;  %v857_v39 = vld [vmem:[#allocation2 + $0x8] sm:$0xff] (!%p1057_p6)  ;;  %v856_v40 = vld [vmem:[#allocation2] sm:$0xff] (!%p1057_p6) }
 0x1c5   : > { %v825_v7 = vsub.f32 (!%p1057_p6), %v817_v62, %v821_v2  ;;  %v830_v8 = vadd.f32 (!%p1057_p6), 1e-05, %v822_v4  ;;  %v823_v9 = vsub.f32 (!%p1057_p6), %v815_v3, %v819_v5  ;;  %v859_v44 = vld [vmem:[#allocation2 + $0x18] sm:$0xff] (!%p1057_p6)  ;;  %v858_v46 = vld [vmem:[#allocation2 + $0x10] sm:$0xff] (!%p1057_p6) }
 0x1c6   : > { %v824_v1 = vsub.f32 %v816_v51, %v820_v57 }
 0x1c7   : > { %v833_v10 = vadd.f32 1e-05, %v825_v7  ;;  %v831_v11 = vadd.f32 1e-05, %v823_v9 }
 0x1c8   : > { %v832_v6 = vadd.f32 1e-05, %v824_v1 }
 0x1ca   : > { %1234 = vrsqrt.f32 %v832_v6 }
 0x1cb   : > { %1236 = vrsqrt.f32 %v830_v8 }
 0x1cc   : > { %1238 = vrsqrt.f32 %v833_v10 }
 0x1cd   : > { %1240 = vrsqrt.f32 %v831_v11 }
 0x1d4   : > { %v1235_v14 = vpop.eup %1234 }
 0x1d5   : > { %v1237_v16 = vpop.eup %1236  ;;  %v840_v17 = vmul.f32 %v1235_v14, %v828_v12 }
 0x1d6   : > { %v1239_v19 = vpop.eup %1238  ;;  %v838_v20 = vmul.f32 %v1237_v16, %v826_v13 }
 0x1d7   : > { %v1241_v21 = vpop.eup %1240  ;;  %872 = vperm.xlu1 %1233, %v840_v17   ;;  %v841_v22 = vmul.f32 %v1239_v19, %v829_v15  ;;  %v848_v29 = vmul.f32 %v840_v17, %v808_v50 }
 0x1d8   : > { %862 = vperm.xlu0 %1232, %v838_v20   ;;  %v846_v23 = vmul.f32 %v838_v20, %v806_v54  ;;  %v839_v24 = vmul.f32 %v1241_v21, %v827_v18 }
 0x1d9   : > { %v849_v28 = vmul.f32 %v841_v22, %v809_v58  ;;  %v852_v35 = vsub.f32 %v844_v33, %v848_v29 }
 0x1da   : > { %v847_v27 = vmul.f32 %v839_v24, %v807_v63  ;;  %v850_v31 = vsub.f32 %v842_v26, %v846_v23 }
 0x1db   : > { %877 = vperm.xlu1 %1233, %v841_v22   ;;  %v853_v34 = vsub.f32 %v845_v32, %v849_v28 }
 0x1dc   : > { %867 = vperm.xlu0 %1232, %v839_v24   ;;  %v851_v30 = vsub.f32 %v843_v25, %v847_v27 }
 0x1df   : > { %891 = vperm.xlu1 %1233, %v851_v30  }
 0x1e0   : > { %886 = vperm.xlu0 %1232, %v850_v31  }
 0x1e3   : > { %901 = vperm.xlu1 %1233, %v853_v34  }
 0x1e4   : > { %896 = vperm.xlu0 %1232, %v852_v35  }
 0x256   : > { %v873_v36 = vpop.permute.xlu1 %872 }
 0x257   : > { %v863_v37 = vpop.permute.xlu0 %862  ;;  %v882_v52 = vmul.f32 %v873_v36, %v858_v46 }
 0x258   : > { %v880_v43 = vmul.f32 %v863_v37, %v856_v40 }
 0x25a   : > { %v878_v38 = vpop.permute.xlu1 %877 }
 0x25b   : > { %v868_v41 = vpop.permute.xlu0 %867  ;;  %v883_v50 = vmul.f32 %v878_v38, %v859_v44 }
 0x25c   : > { %v881_v42 = vmul.f32 %v868_v41, %v857_v39 }
 0x25e   : > { %v892_v45 = vpop.permute.xlu1 %891 }
 0x25f   : > { %v905_v47 = vadd.f32 %v892_v45, %v881_v42  ;;  %v887_v48 = vpop.permute.xlu0 %886 }
 0x260   : > { %v904_v49 = vadd.f32 %v887_v48, %v880_v43 }
 0x261   : > { %v909_v51 = vmax.f32 %v905_v47, 0.0 }
 0x262   : > { %v908_v53 = vmax.f32 %v904_v49, 0.0  ;;  %v902_v54 = vpop.permute.xlu1 %901 }
 0x263   : > { %v907_v55 = vadd.f32 %v902_v54, %v883_v50  ;;  %v897_v56 = vpop.permute.xlu0 %896 }
 0x264   : > { %v1074_v57 = vpack.c.bf16 %v909_v51, %v908_v53  ;;  %v906_v58 = vadd.f32 %v897_v56, %v882_v52 }
 0x265   : > { %v911_v59 = vmax.f32 %v907_v55, 0.0 }
 0x266   : > { %1075 = vst [vmem:[%s1505_s4] sm:$0xff] %v1074_v57   ;;  %v910_v60 = vmax.f32 %v906_v58, 0.0 }
 0x268   : > { %v1079_v61 = vpack.c.bf16 %v911_v59, %v910_v60 }
 0x26a   : > { %1081 = vst [vmem:[%s1505_s4 + $0x8] sm:$0xff] %v1079_v61  }
 0x26b PF: > { %s14_s17 = sadd.s32 1, %s1264_s17   ;;  %s1506_s15 = smov %s1260_s16 }
 0x26c   : > { %p11_p7 = scmp.ge.s32.totalorder %s14_s17, 4   ;;  %s1507_s16 = smov %s1509_s18 }
 0x26e   :  { %13 = sbr.rel (!%p11_p7) target bundleno = 2 (0x2), region = 80 }

// kernel: decoder_forward.8
= control target key start
LH: loop header
LB: loop body
LE: loop exit
PB: predicated region body
PF: predicated region fallthrough
CT: control target
= control target key end

     0   :  { %s1415_s15 = smov 0   ;;  %s1417_s16 = smov 0   ;;  %s1696_s0 = inlined_call_operand.vmem [shape: bf16[16,288], index: 0, kind: input, shape index: {}]   ;;  %s1697_s1 = inlined_call_operand.vmem [shape: bf16[288,512], index: 1, kind: input, shape index: {}]   ;;  %s1698_s2 = inlined_call_operand.vmem [shape: f32[16,1], index: 2, kind: input, shape index: {}]   ;;  %s1699_s3 = inlined_call_operand.vmem [shape: f32[16,1], index: 3, kind: input, shape index: {}]   ;;  %s1700_s4 = inlined_call_operand.vmem [shape: bf16[16,512], index: 4, kind: output, shape index: {}]  }
   0x1   :  { %s1419_s17 = smov 0  }
   0x2 LB: > { %s26_s18 = sadd.s32 1, %s1381_s16  ;;  %p1116_p0 = scmp.ge.s32.totalorder %s1385_s17, 1  ;;  %s1385_s17 = sphi %s1419_s17, %s14_s17   ;;  %s1381_s16 = sphi %s1417_s16, %s1702_s16   ;;  %s1377_s15 = sphi %s1415_s15, %s1701_s15  }
   0x3   : > { %p28_p1 = scmp.ge.s32.totalorder %s26_s18, 2  ;;  %p185_p2 = scmp.lt.s32.totalorder %s1385_s17, 3 }
   0x5   : > { %s1704_s18 = smov (%p28_p1, %s26_s18), 0  ;;  %p186_p3 = pnand %p1116_p0, %p185_p2 }
   0x6   : > { %p233_p4 = scmp.eq.s32.totalorder (!%p186_p3), %s1377_s15, 0 }
   0x7   : > { %189 = sbr.rel (%p186_p3) target bundleno = 636 (0x27c), region = 36 }
   0xe   : > { %238 = sbr.rel (!%p233_p4) target bundleno = 21 (0x15), region = 40  ;;  %vm239_vm0 = vcmask (%p233_p4), 7168   ;;  %v1387_v0 = vmov (%p233_p4), 0.0  }
   0xf   : > { %240 = vst.msk [vmem:[#allocation3] sm:$0xff] (%p233_p4), %vm239_vm0, %v1387_v0  ;;  %241 = vst.msk [vmem:[#allocation3 + $0x8] sm:$0xff] (%p233_p4), %vm239_vm0, %v1387_v0 }
  0x10   : > { %242 = vst.msk [vmem:[#allocation4] sm:$0xff] (%p233_p4), %vm239_vm0, %v1387_v0  ;;  %243 = vst.msk [vmem:[#allocation4 + $0x8] sm:$0xff] (%p233_p4), %vm239_vm0, %v1387_v0 }
  0x15 PF: > { %p1118_p5 = scmp.ne.s32.totalorder %s1377_s15, 0 }
  0x16   : > { %v1245_v1 = vld [vmem:[%s1697_s1 + $0x4] ss:$16 sps:$4 sm:$0xff] (!%p1118_p5)   ;;  %v1247_v2 = vld [vmem:[%s1697_s1 + $0xc] ss:$16 sps:$4 sm:$0xff] (!%p1118_p5)   ;;  %v1249_v3 = vld [vmem:[%s1697_s1] ss:$16 sps:$4 sm:$0xff] (!%p1118_p5)  }
  0x17   : > { %246 = sbr.rel (%p1118_p5) target bundleno = 470 (0x1d6), region = 44  ;;  %702 = vmatprep.subr.bf16.mxu0 (!%p1118_p5), %v1245_v1  ;;  %v1250_v4 = vld [vmem:[%s1697_s1 + $0x8] ss:$16 sps:$4 sm:$0xff] (!%p1118_p5)   ;;  %788 = vmatprep.subr.bf16.mxu1 (!%p1118_p5), %v1247_v2  ;;  %v1251_v5 = vld [vmem:[%s1697_s1 + $0x24] ss:$16 sps:$4 sm:$0xff] (!%p1118_p5)   ;;  %vm698_vm1 = vcmask (!%p1118_p5), 261120  }
  0x18   : > { %703 = vmatpush1.bf16.msra.mxu0 (!%p1118_p5), %v1249_v3  ;;  %789 = vmatpush1.bf16.msra.mxu1 (!%p1118_p5), %v1250_v4  ;;  %v1253_v6 = vld [vmem:[%s1697_s1 + $0x2c] ss:$16 sps:$4 sm:$0xff] (!%p1118_p5)   ;;  %v1255_v7 = vld [vmem:[%s1697_s1 + $0x20] ss:$16 sps:$4 sm:$0xff] (!%p1118_p5)   ;;  %v1256_v8 = vld [vmem:[%s1697_s1 + $0x28] ss:$16 sps:$4 sm:$0xff] (!%p1118_p5)  }
  0x19   : > { %704 = vmatprep.subr.bf16.mxu0 (!%p1118_p5), %v1251_v5  ;;  %790 = vmatprep.subr.bf16.mxu1 (!%p1118_p5), %v1253_v6  ;;  %v1257_v9 = vld [vmem:[%s1697_s1 + $0x44] ss:$16 sps:$4 sm:$0xff] (!%p1118_p5)   ;;  %v1259_v10 = vld [vmem:[%s1697_s1 + $0x4c] ss:$16 sps:$4 sm:$0xff] (!%p1118_p5)   ;;  %v1261_v11 = vld [vmem:[%s1697_s1 + $0x40] ss:$16 sps:$4 sm:$0xff] (!%p1118_p5)  }
  0x1a   : > { %v1262_v12 = vld [vmem:[%s1697_s1 + $0x48] ss:$16 sps:$4 sm:$0xff] (!%p1118_p5)   ;;  %v1263_v13 = vld [vmem:[%s1697_s1 + $0x64] ss:$16 sps:$4 sm:$0xff] (!%p1118_p5)   ;;  %v1265_v14 = vld [vmem:[%s1697_s1 + $0x6c] ss:$16 sps:$4 sm:$0xff] (!%p1118_p5)  }
  0x1b   : > { %v1267_v15 = vld [vmem:[%s1697_s1 + $0x60] ss:$16 sps:$4 sm:$0xff] (!%p1118_p5)   ;;  %v1268_v16 = vld [vmem:[%s1697_s1 + $0x68] ss:$16 sps:$4 sm:$0xff] (!%p1118_p5)   ;;  %v1269_v17 = vld [vmem:[%s1697_s1 + $0x84] ss:$16 sps:$4 sm:$0xff] (!%p1118_p5)  }
  0x1c   : > { %705 = vmatpush1.bf16.msra.mxu0 (!%p1118_p5), %v1255_v7  ;;  %791 = vmatpush1.bf16.msra.mxu1 (!%p1118_p5), %v1256_v8  ;;  %v1271_v18 = vld [vmem:[%s1697_s1 + $0x8c] ss:$16 sps:$4 sm:$0xff] (!%p1118_p5)   ;;  %v1273_v19 = vld [vmem:[%s1697_s1 + $0x80] ss:$16 sps:$4 sm:$0xff] (!%p1118_p5)   ;;  %v1274_v20 = vld [vmem:[%s1697_s1 + $0x88] ss:$16 sps:$4 sm:$0xff] (!%p1118_p5)  }
  0x1d   : > { %706 = vmatprep.subr.bf16.mxu0 (!%p1118_p5), %v1257_v9  ;;  %792 = vmatprep.subr.bf16.mxu1 (!%p1118_p5), %v1259_v10  ;;  %v1275_v21 = vld [vmem:[%s1697_s1 + $0xa4] ss:$16 sps:$4 sm:$0xff] (!%p1118_p5)   ;;  %v1277_v22 = vld [vmem:[%s1697_s1 + $0xac] ss:$16 sps:$4 sm:$0xff] (!%p1118_p5)   ;;  %v1279_v23 = vld [vmem:[%s1697_s1 + $0xa0] ss:$16 sps:$4 sm:$0xff] (!%p1118_p5)  }
  0x1e   : > { %v1280_v24 = vld [vmem:[%s1697_s1 + $0xa8] ss:$16 sps:$4 sm:$0xff]   ;;  %v1281_v25 = vld [vmem:[%s1697_s1 + $0xc4] ss:$16 sps:$4 sm:$0xff]   ;;  %v1283_v26 = vld [vmem:[%s1697_s1 + $0xcc] ss:$16 sps:$4 sm:$0xff]  }
  0x1f   : > { %v1285_v27 = vld [vmem:[%s1697_s1 + $0xc0] ss:$16 sps:$4 sm:$0xff]   ;;  %v1286_v28 = vld [vmem:[%s1697_s1 + $0xc8] ss:$16 sps:$4 sm:$0xff]   ;;  %v1287_v29 = vld [vmem:[%s1697_s1 + $0xe4] ss:$16 sps:$4 sm:$0xff]  }
  0x20   : > { %707 = vmatpush1.bf16.msra.mxu0 %v1261_v11  ;;  %793 = vmatpush1.bf16.msra.mxu1 %v1262_v12  ;;  %v1289_v30 = vld [vmem:[%s1697_s1 + $0xec] ss:$16 sps:$4 sm:$0xff]   ;;  %v1291_v31 = vld [vmem:[%s1697_s1 + $0xe0] ss:$16 sps:$4 sm:$0xff]   ;;  %v1292_v32 = vld [vmem:[%s1697_s1 + $0xe8] ss:$16 sps:$4 sm:$0xff]  }
  0x21   : > { %708 = vmatprep.subr.bf16.mxu0 %v1263_v13  ;;  %794 = vmatprep.subr.bf16.mxu1 %v1265_v14  ;;  %v1293_v33 = vld [vmem:[%s1697_s1 + $0x104] ss:$16 sps:$4 sm:$0xff]   ;;  %v1295_v34 = vld [vmem:[%s1697_s1 + $0x10c] ss:$16 sps:$4 sm:$0xff]   ;;  %v1297_v35 = vld [vmem:[%s1697_s1 + $0x100] ss:$16 sps:$4 sm:$0xff]  }
  0x22   : > { %v1298_v36 = vld [vmem:[%s1697_s1 + $0x108] ss:$16 sps:$4 sm:$0xff]   ;;  %v1299_v37 = vld [vmem:[%s1697_s1 + $0x124] ss:$16 sps:$4 sm:$0xff]   ;;  %v1301_v38 = vld [vmem:[%s1697_s1 + $0x12c] ss:$16 sps:$4 sm:$0xff]  }
  0x23   : > { %v1303_v39 = vld [vmem:[%s1697_s1 + $0x120] ss:$16 sps:$4 sm:$0xff]   ;;  %v1304_v40 = vld [vmem:[%s1697_s1 + $0x128] ss:$16 sps:$4 sm:$0xff]   ;;  %v1305_v41 = vld [vmem:[%s1697_s1 + $0x144] ss:$16 sps:$4 sm:$0xff]  }
  0x24   : > { %709 = vmatpush1.bf16.msra.mxu0 %v1267_v15  ;;  %795 = vmatpush1.bf16.msra.mxu1 %v1268_v16  ;;  %v1307_v42 = vld [vmem:[%s1697_s1 + $0x14c] ss:$16 sps:$4 sm:$0xff]   ;;  %v1309_v43 = vld [vmem:[%s1697_s1 + $0x140] ss:$16 sps:$4 sm:$0xff]   ;;  %v1310_v44 = vld [vmem:[%s1697_s1 + $0x148] ss:$16 sps:$4 sm:$0xff]  }
  0x25   : > { %710 = vmatprep.subr.bf16.mxu0 %v1269_v17  ;;  %796 = vmatprep.subr.bf16.mxu1 %v1271_v18  ;;  %v1311_v45 = vld [vmem:[%s1697_s1 + $0x164] ss:$16 sps:$4 sm:$0xff]   ;;  %v1313_v46 = vld [vmem:[%s1697_s1 + $0x16c] ss:$16 sps:$4 sm:$0xff]   ;;  %v1315_v47 = vld [vmem:[%s1697_s1 + $0x160] ss:$16 sps:$4 sm:$0xff]  }
  0x26   : > { %v1316_v48 = vld [vmem:[%s1697_s1 + $0x168] ss:$16 sps:$4 sm:$0xff]   ;;  %v1343_v49 = vld [vmem:[%s1696_s0 + $0x4] ss:$12 sps:$4 sm:$0xff]   ;;  %v1319_v51 = vld [vmem:[%s1697_s1 + $0x18c] ss:$16 sps:$4 sm:$0xff]  }
  0x27   : > { %v1317_v50 = vld [vmem:[%s1697_s1 + $0x184] ss:$16 sps:$4 sm:$0xff]   ;;  %734 = vmatprep.mubr.bf16.mxu0 %v1343_v49  ;;  %820 = vmatprep.mubr.bf16.mxu1 %v1343_v49  ;;  %v1321_v52 = vld [vmem:[%s1697_s1 + $0x180] ss:$16 sps:$4 sm:$0xff]   ;;  %v1322_v53 = vld [vmem:[%s1697_s1 + $0x188] ss:$16 sps:$4 sm:$0xff]  }
  0x28   : > { %711 = vmatpush1.bf16.msra.mxu0 %v1273_v19  ;;  %797 = vmatpush1.bf16.msra.mxu1 %v1274_v20  ;;  %v1323_v54 = vld [vmem:[%s1697_s1 + $0x1a4] ss:$16 sps:$4 sm:$0xff]   ;;  %v1325_v55 = vld [vmem:[%s1697_s1 + $0x1ac] ss:$16 sps:$4 sm:$0xff]   ;;  %v1327_v56 = vld [vmem:[%s1697_s1 + $0x1a0] ss:$16 sps:$4 sm:$0xff]  }
  0x29   : > { %712 = vmatprep.subr.bf16.mxu0 %v1275_v21  ;;  %798 = vmatprep.subr.bf16.mxu1 %v1277_v22  ;;  %v1328_v57 = vld [vmem:[%s1697_s1 + $0x1a8] ss:$16 sps:$4 sm:$0xff]   ;;  %v1329_v58 = vld [vmem:[%s1697_s1 + $0x1c4] ss:$16 sps:$4 sm:$0xff]   ;;  %v1331_v59 = vld [vmem:[%s1697_s1 + $0x1cc] ss:$16 sps:$4 sm:$0xff]  }
  0x2a   : > { %v1333_v60 = vld [vmem:[%s1697_s1 + $0x1c0] ss:$16 sps:$4 sm:$0xff]   ;;  %v1334_v61 = vld [vmem:[%s1697_s1 + $0x1c8] ss:$16 sps:$4 sm:$0xff]   ;;  %v1335_v62 = vld [vmem:[%s1697_s1 + $0x1e4] ss:$16 sps:$4 sm:$0xff]  }
  0x2b   : > { %v1337_v63 = vld [vmem:[%s1697_s1 + $0x1ec] ss:$16 sps:$4 sm:$0xff]   ;;  %v1339_v0 = vld [vmem:[%s1697_s1 + $0x1e0] ss:$16 sps:$4 sm:$0xff]   ;;  %v1340_v1 = vld [vmem:[%s1697_s1 + $0x1e8] ss:$16 sps:$4 sm:$0xff]  }
  0x2c   : > { %713 = vmatpush1.bf16.msra.mxu0 %v1279_v23  ;;  %799 = vmatpush1.bf16.msra.mxu1 %v1280_v24  ;;  %v1346_v2 = vld [vmem:[%s1697_s1 + $0x204] ss:$16 sps:$4 sm:$0xff]   ;;  %v1349_v3 = vld [vmem:[%s1697_s1 + $0x20c] ss:$16 sps:$4 sm:$0xff]   ;;  %v1344_v5 = vld [vmem:[%s1697_s1 + $0x200] ss:$16 sps:$4 sm:$0xff]  }
  0x2d   : > { %714 = vmatprep.subr.bf16.mxu0 %v1281_v25  ;;  %800 = vmatprep.subr.bf16.mxu1 %v1283_v26  ;;  %v1341_v4 = vld [vmem:[%s1696_s0] ss:$12 sps:$4 sm:$0xff]   ;;  %v1347_v6 = vld [vmem:[%s1697_s1 + $0x208] ss:$16 sps:$4 sm:$0xff]   ;;  %v1352_v7 = vld [vmem:[%s1697_s1 + $0x224] ss:$16 sps:$4 sm:$0xff]  }
  0x2e   : > { %v1355_v8 = vld [vmem:[%s1697_s1 + $0x22c] ss:$16 sps:$4 sm:$0xff]   ;;  %v1350_v9 = vld [vmem:[%s1697_s1 + $0x220] ss:$16 sps:$4 sm:$0xff]   ;;  %v1353_v10 = vld [vmem:[%s1697_s1 + $0x228] ss:$16 sps:$4 sm:$0xff]  }
  0x2f   : > { %v1388_v11 = vmov 0   ;;  %v1356_v12 = vld [vmem:[%s1696_s0 + $0x8] ss:$12 sps:$4 sm:$0xff]   ;;  %vm899_vm2 = vcmask 7168  }
  0x30   : > { %715 = vmatpush1.bf16.msra.mxu0 %v1285_v27  ;;  %801 = vmatpush1.bf16.msra.mxu1 %v1286_v28 }
  0x31   : > { %716 = vmatprep.subr.bf16.mxu0 %v1287_v29  ;;  %802 = vmatprep.subr.bf16.mxu1 %v1289_v30 }
  0x34   : > { %717 = vmatpush1.bf16.msra.mxu0 %v1291_v31  ;;  %803 = vmatpush1.bf16.msra.mxu1 %v1292_v32 }
  0x35   : > { %718 = vmatprep.subr.bf16.mxu0 %v1293_v33  ;;  %804 = vmatprep.subr.bf16.mxu1 %v1295_v34 }
  0x38   : > { %719 = vmatpush1.bf16.msra.mxu0 %v1297_v35  ;;  %805 = vmatpush1.bf16.msra.mxu1 %v1298_v36 }
  0x39   : > { %720 = vmatprep.subr.bf16.mxu0 %v1299_v37  ;;  %806 = vmatprep.subr.bf16.mxu1 %v1301_v38 }
  0x3c   : > { %721 = vmatpush1.bf16.msra.mxu0 %v1303_v39  ;;  %807 = vmatpush1.bf16.msra.mxu1 %v1304_v40 }
  0x3d   : > { %722 = vmatprep.subr.bf16.mxu0 %v1305_v41  ;;  %808 = vmatprep.subr.bf16.mxu1 %v1307_v42  ;;  %v885_v41 = vld [vmem:[#allocation3] sm:$0xff] }
  0x40   : > { %723 = vmatpush1.bf16.msra.mxu0 %v1309_v43  ;;  %809 = vmatpush1.bf16.msra.mxu1 %v1310_v44  ;;  %v902_v44 = vld [vmem:[#allocation4] sm:$0xff] }
  0x41   : > { %724 = vmatprep.subr.bf16.mxu0 %v1311_v45  ;;  %810 = vmatprep.subr.bf16.mxu1 %v1313_v46  ;;  %v886_v45 = vld [vmem:[#allocation3 + $0x8] sm:$0xff] }
  0x44   : > { %725 = vmatpush1.bf16.msra.mxu0 %v1315_v47  ;;  %811 = vmatpush1.bf16.msra.mxu1 %v1316_v48 }
  0x45   : > { %726 = vmatprep.subr.bf16.mxu0 %v1317_v50  ;;  %812 = vmatprep.subr.bf16.mxu1 %v1319_v51  ;;  %v903_v50 = vld [vmem:[#allocation4 + $0x8] sm:$0xff] }
  0x48   : > { %727 = vmatpush1.bf16.msra.mxu0 %v1321_v52  ;;  %813 = vmatpush1.bf16.msra.mxu1 %v1322_v53 }
  0x49   : > { %728 = vmatprep.subr.bf16.mxu0 %v1323_v54  ;;  %814 = vmatprep.subr.bf16.mxu1 %v1325_v55 }
  0x4c   : > { %729 = vmatpush1.bf16.msra.mxu0 %v1327_v56  ;;  %815 = vmatpush1.bf16.msra.mxu1 %v1328_v57 }
  0x4d   : > { %730 = vmatprep.subr.bf16.mxu0 %v1329_v58  ;;  %816 = vmatprep.subr.bf16.mxu1 %v1331_v59 }
  0x50   : > { %731 = vmatpush1.bf16.msra.mxu0 %v1333_v60  ;;  %817 = vmatpush1.bf16.msra.mxu1 %v1334_v61 }
  0x51   : > { %732 = vmatprep.subr.bf16.mxu0 %v1335_v62  ;;  %818 = vmatprep.subr.bf16.mxu1 %v1337_v63 }
  0x54   : > { %733 = vmatpush1.bf16.msra.mxu0 %v1339_v0  ;;  %819 = vmatpush1.bf16.msra.mxu1 %v1340_v1 }
  0x55   : > { %745 = vmatprep.subr.bf16.mxu0 %v1346_v2  ;;  %831 = vmatprep.subr.bf16.mxu1 %v1349_v3 }
  0x57   : > { %735 = vmatmul.mubr.bf16.vlgmr.msra.gmra.mrb[0].mxu0 %v1341_v4  ;;  %821 = vmatmul.mubr.bf16.vlgmr.msra.gmra.mrb[0].mxu1 %v1341_v4 }
  0x58   : > { %746 = vmatpush1.bf16.msra.mxu0 %v1344_v5  ;;  %832 = vmatpush1.bf16.msra.mxu1 %v1347_v6 }
  0x59   : > { %747 = vmatprep.subr.bf16.mxu0 %v1352_v7  ;;  %833 = vmatprep.subr.bf16.mxu1 %v1355_v8 }
  0x5a   : > { %777 = vmatprep.mubr.bf16.mxu0 %v1388_v11  ;;  %863 = vmatprep.mubr.bf16.mxu1 %v1388_v11 }
  0x5c   : > { %748 = vmatpush1.bf16.msra.mxu0 %v1350_v9  ;;  %834 = vmatpush1.bf16.msra.mxu1 %v1353_v10 }
  0x63   : > { %1194 = vmatmul.mubr.msk.bf16.vlgmr.msra.gmra.mrb[0].mxu0 %vm698_vm1, %v1356_v12  ;;  %1195 = vmatmul.mubr.msk.bf16.vlgmr.msra.gmra.mrb[0].mxu1 %vm698_vm1, %v1356_v12 }
 0x136   : > { %v779_v13 = vpop.f32.mrb[0].mxu0  ;;  %v865_v14 = vpop.f32.mrb[0].mxu1 }
 0x137   : > { %877 = vst [vmem:[#allocation2] sm:$0xff] %v779_v13  ;;  %v904_v15 = vmul.f32 %v779_v13, %v779_v13  ;;  %879 = vst [vmem:[#allocation2 + $0x10] sm:$0xff] %v865_v14  ;;  %v781_v16 = vpop.f32.mrb[1].mxu0  ;;  %v867_v17 = vpop.f32.mrb[1].mxu1  ;;  %v906_v28 = vmul.f32 %v865_v14, %v865_v14 }
 0x138   : > { %878 = vst [vmem:[#allocation2 + $0x8] sm:$0xff] %v781_v16  ;;  %v887_v18 = vadd.f32 %v781_v16, %v779_v13  ;;  %v905_v19 = vmul.f32 %v781_v16, %v781_v16  ;;  %880 = vst [vmem:[#allocation2 + $0x18] sm:$0xff] %v867_v17  ;;  %v783_v20 = vpop.f32.mrb[2].mxu0  ;;  %v869_v21 = vpop.f32.mrb[2].mxu1  ;;  %v907_v34 = vmul.f32 %v867_v17, %v867_v17 }
 0x139   : > { %881 = vst [vmem:[#allocation2 + $0x20] sm:$0xff] %v783_v20  ;;  %v908_v22 = vmul.f32 %v783_v20, %v783_v20  ;;  %883 = vst [vmem:[#allocation2 + $0x30] sm:$0xff] %v869_v21  ;;  %v785_v23 = vpop.f32.mrb[3].mxu0  ;;  %v871_v24 = vpop.f32.mrb[3].mxu1  ;;  %v910_v30 = vmul.f32 %v869_v21, %v869_v21 }
 0x13a   : > { %882 = vst [vmem:[#allocation2 + $0x28] sm:$0xff] %v785_v23  ;;  %v892_v25 = vadd.f32 %v785_v23, %v783_v20  ;;  %v909_v26 = vmul.f32 %v785_v23, %v785_v23  ;;  %884 = vst [vmem:[#allocation2 + $0x38] sm:$0xff] %v871_v24  ;;  %v888_v27 = vadd.f32 %v887_v18, %v865_v14 }
 0x13b   : > { %v912_v29 = vadd.f32 %v905_v19, %v904_v15  ;;  %v911_v36 = vmul.f32 %v871_v24, %v871_v24 }
 0x13c   : > { %v917_v31 = vadd.f32 %v909_v26, %v908_v22  ;;  %v889_v32 = vadd.f32 %v888_v27, %v867_v17  ;;  %v893_v33 = vadd.f32 %v892_v25, %v869_v21 }
 0x13d   : > { %v913_v35 = vadd.f32 %v912_v29, %v906_v28 }
 0x13e   : > { %890 = vadd.xlane.f32.xlu0 %v889_v32  ;;  %v894_v37 = vadd.f32 %v893_v33, %v871_v24  ;;  %v918_v38 = vadd.f32 %v917_v31, %v910_v30 }
 0x13f   : > { %v914_v39 = vadd.f32 %v913_v35, %v907_v34 }
 0x140   : > { %v919_v40 = vadd.f32 %v918_v38, %v911_v36 }
 0x141   : > { %915 = vadd.xlane.f32.xlu1 %v914_v39 }
 0x142   : > { %895 = vadd.xlane.f32.xlu0 %v894_v37 }
 0x145   : > { %920 = vadd.xlane.f32.xlu1 %v919_v40 }
 0x1cb   : > { %v891_v42 = vpop.xlane.xlu0 %890 }
 0x1cc   : > { %v897_v43 = vadd.f32 %v891_v42, %v885_v41 }
 0x1ce   : > { %900 = vst.msk [vmem:[#allocation3] sm:$0xff] %vm899_vm2, %v897_v43  ;;  %v916_v46 = vpop.xlane.xlu1 %915 }
 0x1cf   : > { %v922_v47 = vadd.f32 %v916_v46, %v902_v44  ;;  %v896_v48 = vpop.xlane.xlu0 %895 }
 0x1d0   : > { %v898_v49 = vadd.f32 %v896_v48, %v886_v45 }
 0x1d1   : > { %924 = vst.msk [vmem:[#allocation4] sm:$0xff] %vm899_vm2, %v922_v47 }
 0x1d2   : > { %901 = vst.msk [vmem:[#allocation3 + $0x8] sm:$0xff] %vm899_vm2, %v898_v49  ;;  %v921_v51 = vpop.xlane.xlu1 %920 }
 0x1d3   : > { %v923_v52 = vadd.f32 %v921_v51, %v903_v50 }
 0x1d5   : > { %925 = vst.msk [vmem:[#allocation4 + $0x8] sm:$0xff] %vm899_vm2, %v923_v52 }
 0x1d6 PF: > { %p1196_p6 = scmp.ne.s32.totalorder %s1377_s15, 1 }
 0x1d7   : > { %v930_v53 = vld [vmem:[#allocation3] sm:$0xff] (!%p1196_p6)  ;;  %v1389_v55 = vmov (!%p1196_p6), 0   ;;  %v943_v5 = vld [vmem:[%s1698_s2 + $0x8] sm:$0xff] (!%p1196_p6)  ;;  %v961_v18 = vld [vmem:[#allocation2 + $0x10] sm:$0xff] (!%p1196_p6) }
 0x1d8   : > { %929 = sbr.rel (%p1196_p6) target bundleno = 636 (0x27c), region = 48  ;;  %v934_v54 = vld [vmem:[#allocation4] sm:$0xff] (!%p1196_p6)  ;;  %1357 = vset.pattern.permute.xlu0 (!%p1196_p6), %v1389_v55  ;;  %v932_v56 = vmul.f32 (!%p1196_p6), 0.0025510204, %v930_v53  ;;  %1358 = vset.pattern.permute.xlu1 (!%p1196_p6), %v1389_v55  ;;  %v942_v4 = vld [vmem:[%s1698_s2] sm:$0xff] (!%p1196_p6)  ;;  %v951_v12 = vld [vmem:[%s1699_s3 + $0x8] sm:$0xff] (!%p1196_p6) }
 0x1d9   : > { %v936_v57 = vmul.f32 (!%p1196_p6), 0.0025510204, %v934_v54  ;;  %v931_v58 = vld [vmem:[#allocation3 + $0x8] sm:$0xff] (!%p1196_p6)  ;;  %v950_v10 = vld [vmem:[%s1699_s3] sm:$0xff] (!%p1196_p6)  ;;  %v962_v19 = vld [vmem:[#allocation2 + $0x18] sm:$0xff] (!%p1196_p6) }
 0x1da   : > { %v933_v60 = vmul.f32 (!%p1196_p6), 0.0025510204, %v931_v58  ;;  %v938_v62 = vmul.f32 (!%p1196_p6), %v932_v56, %v932_v56  ;;  %v959_v16 = vld [vmem:[#allocation2] sm:$0xff] (!%p1196_p6)  ;;  %v960_v17 = vld [vmem:[#allocation2 + $0x8] sm:$0xff] (!%p1196_p6)  ;;  %v965_v27 = vld [vmem:[#allocation2 + $0x30] sm:$0xff] (!%p1196_p6) }
 0x1db   : > { %v963_v25 = vld [vmem:[#allocation2 + $0x20] sm:$0xff] (!%p1196_p6)  ;;  %v964_v26 = vld [vmem:[#allocation2 + $0x28] sm:$0xff] (!%p1196_p6)  ;;  %v966_v28 = vld [vmem:[#allocation2 + $0x38] sm:$0xff] (!%p1196_p6) }
 0x1dc   : > { %v935_v59 = vld [vmem:[#allocation4 + $0x8] sm:$0xff] (!%p1196_p6)  ;;  %v939_v63 = vmul.f32 (!%p1196_p6), %v933_v60, %v933_v60  ;;  %v940_v0 = vsub.f32 (!%p1196_p6), %v936_v57, %v938_v62 }
 0x1dd   : > { %v937_v61 = vmul.f32 (!%p1196_p6), 0.0025510204, %v935_v59 }
 0x1de   : > { %v944_v2 = vadd.f32 (!%p1196_p6), 1e-05, %v940_v0 }
 0x1df   : > { %v941_v1 = vsub.f32 %v937_v61, %v939_v63 }
 0x1e0   : > { %1359 = vrsqrt.f32 %v944_v2 }
 0x1e1   : > { %v945_v3 = vadd.f32 1e-05, %v941_v1 }
 0x1e3   : > { %1361 = vrsqrt.f32 %v945_v3 }
 0x1ea   : > { %v1360_v6 = vpop.eup %1359 }
 0x1eb   : > { %v948_v8 = vmul.f32 %v1360_v6, %v942_v4 }
 0x1ed   : > { %v1362_v7 = vpop.eup %1361  ;;  %969 = vperm.xlu0 %1357, %v948_v8   ;;  %v952_v11 = vmul.f32 %v948_v8, %v932_v56 }
 0x1ee   : > { %v949_v9 = vmul.f32 %v1362_v7, %v943_v5 }
 0x1ef   : > { %v954_v14 = vsub.f32 %v950_v10, %v952_v11 }
 0x1f0   : > { %v953_v13 = vmul.f32 %v949_v9, %v933_v60 }
 0x1f1   : > { %974 = vperm.xlu0 %1357, %v949_v9   ;;  %987 = vperm.xlu1 %1358, %v954_v14  }
 0x1f2   : > { %v955_v15 = vsub.f32 %v951_v12, %v953_v13 }
 0x1f5   : > { %992 = vperm.xlu1 %1358, %v955_v15  }
 0x26c   : > { %v970_v20 = vpop.permute.xlu0 %969 }
 0x26d   : > { %v977_v21 = vmul.f32 %v970_v20, %v959_v16  ;;  %v978_v22 = vmul.f32 %v970_v20, %v960_v17  ;;  %v979_v23 = vmul.f32 %v970_v20, %v961_v18  ;;  %v980_v24 = vmul.f32 %v970_v20, %v962_v19 }
 0x270   : > { %v975_v29 = vpop.permute.xlu0 %974  ;;  %v988_v30 = vpop.permute.xlu1 %987 }
 0x271   : > { %v995_v31 = vadd.f32 %v988_v30, %v977_v21  ;;  %v996_v32 = vadd.f32 %v988_v30, %v978_v22  ;;  %v997_v33 = vadd.f32 %v988_v30, %v979_v23  ;;  %v998_v34 = vadd.f32 %v988_v30, %v980_v24 }
 0x272   : > { %v981_v35 = vmul.f32 %v975_v29, %v963_v25  ;;  %v982_v36 = vmul.f32 %v975_v29, %v964_v26  ;;  %v983_v37 = vmul.f32 %v975_v29, %v965_v27  ;;  %v984_v38 = vmul.f32 %v975_v29, %v966_v28 }
 0x273   : > { %v1003_v39 = vmax.f32 %v995_v31, 0.0  ;;  %v1004_v40 = vmax.f32 %v996_v32, 0.0  ;;  %v1005_v41 = vmax.f32 %v997_v33, 0.0  ;;  %v1006_v42 = vmax.f32 %v998_v34, 0.0 }
 0x274   : > { %v993_v43 = vpop.permute.xlu1 %992 }
 0x275   : > { %v999_v44 = vadd.f32 %v993_v43, %v981_v35  ;;  %v1000_v45 = vadd.f32 %v993_v43, %v982_v36  ;;  %v1001_v46 = vadd.f32 %v993_v43, %v983_v37  ;;  %v1002_v47 = vadd.f32 %v993_v43, %v984_v38 }
 0x276   : > { %v1206_v48 = vpack.c.bf16 %v1004_v40, %v1003_v39  ;;  %v1207_v49 = vpack.c.bf16 %v1006_v42, %v1005_v41 }
 0x277   : > { %v1007_v50 = vmax.f32 %v999_v44, 0.0  ;;  %v1008_v51 = vmax.f32 %v1000_v45, 0.0  ;;  %v1009_v52 = vmax.f32 %v1001_v46, 0.0  ;;  %v1010_v53 = vmax.f32 %v1002_v47, 0.0 }
 0x278   : > { %1035 = vst [vmem:[%s1700_s4] sm:$0xff] %v1206_v48  ;;  %1036 = vst [vmem:[%s1700_s4 + $0x8] sm:$0xff] %v1207_v49 }
 0x279   : > { %v1208_v54 = vpack.c.bf16 %v1008_v51, %v1007_v50  ;;  %v1209_v55 = vpack.c.bf16 %v1010_v53, %v1009_v52 }
 0x27b   : > { %1037 = vst [vmem:[%s1700_s4 + $0x10] sm:$0xff] %v1208_v54  ;;  %1038 = vst [vmem:[%s1700_s4 + $0x18] sm:$0xff] %v1209_v55 }
 0x27c PF: > { %s14_s17 = sadd.s32 1, %s1385_s17   ;;  %s1701_s15 = smov %s1381_s16 }
 0x27d   : > { %p11_p7 = scmp.ge.s32.totalorder %s14_s17, 4   ;;  %s1702_s16 = smov %s1704_s18 }
 0x27f   :  { %13 = sbr.rel (!%p11_p7) target bundleno = 2 (0x2), region = 80 }

// kernel: decoder_forward.9
= control target key start
LH: loop header
LB: loop body
LE: loop exit
PB: predicated region body
PF: predicated region fallthrough
CT: control target
= control target key end

     0   :  { %v1499_v1 = vmov 0   ;;  %vm748_vm0 = vcmask 130048   ;;  %s1966_s2 = inlined_call_operand.vmem [shape: bf16[144,1664], index: 2, kind: input, shape index: {}]   ;;  %s1967_s0 = inlined_call_operand.vmem [shape: bf16[8,144], index: 0, kind: input, shape index: {}]   ;;  %s1968_s1 = inlined_call_operand.vmem [shape: f32[8,1], index: 1, kind: input, shape index: {}]   ;;  %s1969_s3 = inlined_call_operand.vmem [shape: f32[8,1664], index: 3, kind: output, shape index: {}]  }
   0x1   :  { %v1274_v0 = vld [vmem:[%s1966_s2 + $0x4] ss:$52 sps:$4 sm:$0xff]   ;;  %1273 = vset.pattern.permute.xlu0 %v1499_v1  ;;  %v1276_v2 = vld [vmem:[%s1966_s2] ss:$52 sps:$4 sm:$0xff]   ;;  %v1279_v4 = vld [vmem:[%s1966_s2 + $0x68] ss:$52 sps:$4 sm:$0xff]  }
   0x2   :  { %752 = vmatprep.subr.bf16.mxu0 %v1274_v0  ;;  %v1277_v3 = vld [vmem:[%s1966_s2 + $0x6c] ss:$52 sps:$4 sm:$0xff]   ;;  %v1280_v5 = vld [vmem:[%s1966_s2 + $0xd4] ss:$52 sps:$4 sm:$0xff]   ;;  %v1282_v6 = vld [vmem:[%s1966_s2 + $0xd0] ss:$52 sps:$4 sm:$0xff]  }
   0x3   :  { %753 = vmatpush1.bf16.msra.mxu0 %v1276_v2  ;;  %v1283_v7 = vld [vmem:[%s1966_s2 + $0x13c] ss:$52 sps:$4 sm:$0xff]   ;;  %v1285_v8 = vld [vmem:[%s1966_s2 + $0x138] ss:$52 sps:$4 sm:$0xff]   ;;  %v15_v12 = vld [vmem:[%s1967_s0] sm:$0xff] }
   0x4   :  { %754 = vmatprep.subr.bf16.mxu0 %v1277_v3  ;;  %v1286_v9 = vld [vmem:[%s1966_s2 + $0x1a4] ss:$52 sps:$4 sm:$0xff]   ;;  %v1300_v10 = vld [vmem:[%s1966_s2 + $0xc] ss:$52 sps:$4 sm:$0xff]   ;;  %v1303_v11 = vld [vmem:[%s1966_s2 + $0x8] ss:$52 sps:$4 sm:$0xff]   ;;  %v1557_v13 = vcombine.high %v15_v12, %v15_v12  ;;  %v1626_v35 = vcombine.low %v15_v12, %v15_v12 }
   0x5   :  { %793 = vmatprep.subr.bf16.mxu1 %v1300_v10  ;;  %v1306_v14 = vld [vmem:[%s1966_s2 + $0x74] ss:$52 sps:$4 sm:$0xff]   ;;  %v1289_v16 = vld [vmem:[%s1966_s2 + $0x20c] ss:$52 sps:$4 sm:$0xff]   ;;  %v1311_v17 = vld [vmem:[%s1966_s2 + $0x70] ss:$52 sps:$4 sm:$0xff]  }
   0x6   :  { %v1288_v15 = vld [vmem:[%s1966_s2 + $0x1a0] ss:$52 sps:$4 sm:$0xff]   ;;  %794 = vmatpush1.bf16.msra.mxu1 %v1303_v11  ;;  %1265 = vmatprep.mubr.msk.bf16.mxu0 %vm748_vm0, %v1557_v13  ;;  %v1312_v18 = vld [vmem:[%s1966_s2 + $0xdc] ss:$52 sps:$4 sm:$0xff]   ;;  %v1317_v21 = vld [vmem:[%s1966_s2 + $0xd8] ss:$52 sps:$4 sm:$0xff]  }
   0x7   :  { %755 = vmatpush1.bf16.msra.mxu0 %v1279_v4  ;;  %795 = vmatprep.subr.bf16.mxu1 %v1306_v14  ;;  %v1291_v19 = vld [vmem:[%s1966_s2 + $0x208] ss:$52 sps:$4 sm:$0xff]   ;;  %v1318_v22 = vld [vmem:[%s1966_s2 + $0x144] ss:$52 sps:$4 sm:$0xff]   ;;  %v1323_v25 = vld [vmem:[%s1966_s2 + $0x140] ss:$52 sps:$4 sm:$0xff]  }
   0x8   :  { %756 = vmatprep.subr.bf16.mxu0 %v1280_v5  ;;  %1266 = vmatprep.mubr.msk.bf16.mxu1 %vm748_vm0, %v1557_v13  ;;  %v1292_v20 = vld [vmem:[%s1966_s2 + $0x274] ss:$52 sps:$4 sm:$0xff]   ;;  %v1294_v23 = vld [vmem:[%s1966_s2 + $0x270] ss:$52 sps:$4 sm:$0xff]   ;;  %v1324_v26 = vld [vmem:[%s1966_s2 + $0x1ac] ss:$52 sps:$4 sm:$0xff]  }
   0x9   :  { %v1295_v24 = vld [vmem:[%s1966_s2 + $0x2dc] ss:$52 sps:$4 sm:$0xff]   ;;  %v1297_v27 = vld [vmem:[%s1966_s2 + $0x2d8] ss:$52 sps:$4 sm:$0xff]   ;;  %v1330_v30 = vld [vmem:[%s1966_s2 + $0x214] ss:$52 sps:$4 sm:$0xff]  }
   0xa   :  { %796 = vmatpush1.bf16.msra.mxu1 %v1311_v17  ;;  %v1298_v28 = vld [vmem:[%s1966_s2 + $0x344] ss:$52 sps:$4 sm:$0xff]   ;;  %v1329_v29 = vld [vmem:[%s1966_s2 + $0x1a8] ss:$52 sps:$4 sm:$0xff]   ;;  %v1302_v31 = vld [vmem:[%s1966_s2 + $0x340] ss:$52 sps:$4 sm:$0xff]  }
   0xb   :  { %757 = vmatpush1.bf16.msra.mxu0 %v1282_v6  ;;  %797 = vmatprep.subr.bf16.mxu1 %v1312_v18  ;;  %v1310_v32 = vld [vmem:[%s1966_s2 + $0x14] ss:$52 sps:$4 sm:$0xff]   ;;  %v1335_v33 = vld [vmem:[%s1966_s2 + $0x210] ss:$52 sps:$4 sm:$0xff]   ;;  %v1341_v38 = vld [vmem:[%s1966_s2 + $0x278] ss:$52 sps:$4 sm:$0xff]  }
   0xc   :  { %758 = vmatprep.subr.bf16.mxu0 %v1283_v7  ;;  %v1336_v34 = vld [vmem:[%s1966_s2 + $0x27c] ss:$52 sps:$4 sm:$0xff]   ;;  %v1342_v39 = vld [vmem:[%s1966_s2 + $0x2e4] ss:$52 sps:$4 sm:$0xff]   ;;  %v1347_v42 = vld [vmem:[%s1966_s2 + $0x2e0] ss:$52 sps:$4 sm:$0xff]  }
   0xd   :  { %v1308_v36 = vld [vmem:[%s1966_s2 + $0x10] ss:$52 sps:$4 sm:$0xff]   ;;  %v1314_v40 = vld [vmem:[%s1966_s2 + $0x78] ss:$52 sps:$4 sm:$0xff]   ;;  %v1320_v44 = vld [vmem:[%s1966_s2 + $0xe0] ss:$52 sps:$4 sm:$0xff]  }
   0xe   :  { %798 = vmatpush1.bf16.msra.mxu1 %v1317_v21  ;;  %v1316_v37 = vld [vmem:[%s1966_s2 + $0x7c] ss:$52 sps:$4 sm:$0xff]   ;;  %v1322_v41 = vld [vmem:[%s1966_s2 + $0xe4] ss:$52 sps:$4 sm:$0xff]   ;;  %v1348_v43 = vld [vmem:[%s1966_s2 + $0x34c] ss:$52 sps:$4 sm:$0xff]  }
   0xf   :  { %759 = vmatpush1.bf16.msra.mxu0 %v1285_v8  ;;  %799 = vmatprep.subr.bf16.mxu1 %v1318_v22  ;;  %v1328_v45 = vld [vmem:[%s1966_s2 + $0x14c] ss:$52 sps:$4 sm:$0xff]   ;;  %v1353_v46 = vld [vmem:[%s1966_s2 + $0x348] ss:$52 sps:$4 sm:$0xff]   ;;  %v1362_v51 = vld [vmem:[%s1966_s2 + $0x84] ss:$52 sps:$4 sm:$0xff]  }
  0x10   :  { %760 = vmatprep.subr.bf16.mxu0 %v1286_v9  ;;  %v1359_v47 = vld [vmem:[%s1966_s2 + $0x1c] ss:$52 sps:$4 sm:$0xff]   ;;  %v1334_v49 = vld [vmem:[%s1966_s2 + $0x1b4] ss:$52 sps:$4 sm:$0xff]   ;;  %v1357_v50 = vld [vmem:[%s1966_s2 + $0x18] ss:$52 sps:$4 sm:$0xff]  }
  0x11   :  { %v1326_v48 = vld [vmem:[%s1966_s2 + $0x148] ss:$52 sps:$4 sm:$0xff]   ;;  %v1332_v52 = vld [vmem:[%s1966_s2 + $0x1b0] ss:$52 sps:$4 sm:$0xff]   ;;  %v1360_v54 = vld [vmem:[%s1966_s2 + $0x80] ss:$52 sps:$4 sm:$0xff]  }
  0x12   :  { %800 = vmatpush1.bf16.msra.mxu1 %v1323_v25  ;;  %v1340_v53 = vld [vmem:[%s1966_s2 + $0x21c] ss:$52 sps:$4 sm:$0xff]   ;;  %v1368_v55 = vld [vmem:[%s1966_s2 + $0xec] ss:$52 sps:$4 sm:$0xff]   ;;  %v1346_v57 = vld [vmem:[%s1966_s2 + $0x284] ss:$52 sps:$4 sm:$0xff]  }
  0x13   :  { %761 = vmatpush1.bf16.msra.mxu0 %v1288_v15  ;;  %801 = vmatprep.subr.bf16.mxu1 %v1324_v26  ;;  %v1338_v56 = vld [vmem:[%s1966_s2 + $0x218] ss:$52 sps:$4 sm:$0xff]   ;;  %v1366_v58 = vld [vmem:[%s1966_s2 + $0xe8] ss:$52 sps:$4 sm:$0xff]   ;;  %v1344_v60 = vld [vmem:[%s1966_s2 + $0x280] ss:$52 sps:$4 sm:$0xff]  }
  0x14   :  { %762 = vmatprep.subr.bf16.mxu0 %v1289_v16  ;;  %v1374_v59 = vld [vmem:[%s1966_s2 + $0x154] ss:$52 sps:$4 sm:$0xff]   ;;  %v1352_v61 = vld [vmem:[%s1966_s2 + $0x2ec] ss:$52 sps:$4 sm:$0xff]   ;;  %v1372_v62 = vld [vmem:[%s1966_s2 + $0x150] ss:$52 sps:$4 sm:$0xff]  }
  0x15   :  { %v1380_v63 = vld [vmem:[%s1966_s2 + $0x1bc] ss:$52 sps:$4 sm:$0xff]   ;;  %v1356_v2 = vld [vmem:[%s1966_s2 + $0x354] ss:$52 sps:$4 sm:$0xff]   ;;  %v1378_v3 = vld [vmem:[%s1966_s2 + $0x1b8] ss:$52 sps:$4 sm:$0xff]  }
  0x16   :  { %802 = vmatpush1.bf16.msra.mxu1 %v1329_v29  ;;  %v1350_v0 = vld [vmem:[%s1966_s2 + $0x2e8] ss:$52 sps:$4 sm:$0xff]   ;;  %v1386_v4 = vld [vmem:[%s1966_s2 + $0x224] ss:$52 sps:$4 sm:$0xff]   ;;  %v1384_v7 = vld [vmem:[%s1966_s2 + $0x220] ss:$52 sps:$4 sm:$0xff]  }
  0x17   :  { %763 = vmatpush1.bf16.msra.mxu0 %v1291_v19  ;;  %803 = vmatprep.subr.bf16.mxu1 %v1330_v30  ;;  %v1354_v5 = vld [vmem:[%s1966_s2 + $0x350] ss:$52 sps:$4 sm:$0xff]   ;;  %v1392_v8 = vld [vmem:[%s1966_s2 + $0x28c] ss:$52 sps:$4 sm:$0xff]   ;;  %v1390_v11 = vld [vmem:[%s1966_s2 + $0x288] ss:$52 sps:$4 sm:$0xff]  }
  0x18   :  { %764 = vmatprep.subr.bf16.mxu0 %v1292_v20  ;;  %v1365_v6 = vld [vmem:[%s1966_s2 + $0x24] ss:$52 sps:$4 sm:$0xff]   ;;  %v1363_v9 = vld [vmem:[%s1966_s2 + $0x20] ss:$52 sps:$4 sm:$0xff]   ;;  %v1369_v15 = vld [vmem:[%s1966_s2 + $0x88] ss:$52 sps:$4 sm:$0xff]  }
  0x19   :  { %v142_v10 = vld [vmem:[%s1968_s1] sm:$0xff]  ;;  %v1398_v14 = vld [vmem:[%s1966_s2 + $0x2f4] ss:$52 sps:$4 sm:$0xff]   ;;  %v1404_v18 = vld [vmem:[%s1966_s2 + $0x35c] ss:$52 sps:$4 sm:$0xff]  }
  0x1a   :  { %804 = vmatpush1.bf16.msra.mxu1 %v1335_v33  ;;  %v1371_v12 = vld [vmem:[%s1966_s2 + $0x8c] ss:$52 sps:$4 sm:$0xff]   ;;  %145 = vperm.xlu0 %1273, %v142_v10   ;;  %v1377_v16 = vld [vmem:[%s1966_s2 + $0xf4] ss:$52 sps:$4 sm:$0xff]   ;;  %v1396_v17 = vld [vmem:[%s1966_s2 + $0x2f0] ss:$52 sps:$4 sm:$0xff]  }
  0x1b   :  { %765 = vmatpush1.bf16.msra.mxu0 %v1294_v23  ;;  %805 = vmatprep.subr.bf16.mxu1 %v1336_v34  ;;  %v1375_v19 = vld [vmem:[%s1966_s2 + $0xf0] ss:$52 sps:$4 sm:$0xff]   ;;  %v1402_v21 = vld [vmem:[%s1966_s2 + $0x358] ss:$52 sps:$4 sm:$0xff]   ;;  %v1416_v26 = vld [vmem:[%s1966_s2 + $0x94] ss:$52 sps:$4 sm:$0xff]  }
  0x1c   :  { %766 = vmatprep.subr.bf16.mxu0 %v1295_v24  ;;  %v1383_v20 = vld [vmem:[%s1966_s2 + $0x15c] ss:$52 sps:$4 sm:$0xff]   ;;  %v1413_v22 = vld [vmem:[%s1966_s2 + $0x2c] ss:$52 sps:$4 sm:$0xff]   ;;  %v1389_v25 = vld [vmem:[%s1966_s2 + $0x1c4] ss:$52 sps:$4 sm:$0xff]  }
  0x1d   :  { %v1381_v23 = vld [vmem:[%s1966_s2 + $0x158] ss:$52 sps:$4 sm:$0xff]   ;;  %v1411_v24 = vld [vmem:[%s1966_s2 + $0x28] ss:$52 sps:$4 sm:$0xff]  }
  0x1e   :  { %806 = vmatpush1.bf16.msra.mxu1 %v1341_v38  ;;  %v1395_v29 = vld [vmem:[%s1966_s2 + $0x22c] ss:$52 sps:$4 sm:$0xff]   ;;  %v1420_v30 = vld [vmem:[%s1966_s2 + $0xfc] ss:$52 sps:$4 sm:$0xff]   ;;  %v1401_v33 = vld [vmem:[%s1966_s2 + $0x294] ss:$52 sps:$4 sm:$0xff]  }
  0x1f   :  { %767 = vmatpush1.bf16.msra.mxu0 %v1297_v27  ;;  %807 = vmatprep.subr.bf16.mxu1 %v1342_v39  ;;  %v1387_v27 = vld [vmem:[%s1966_s2 + $0x1c0] ss:$52 sps:$4 sm:$0xff]   ;;  %v1424_v34 = vld [vmem:[%s1966_s2 + $0x164] ss:$52 sps:$4 sm:$0xff]   ;;  %v1407_v38 = vld [vmem:[%s1966_s2 + $0x2fc] ss:$52 sps:$4 sm:$0xff]  }
  0x20   :  { %768 = vmatprep.subr.bf16.mxu0 %v1298_v28  ;;  %v1414_v28 = vld [vmem:[%s1966_s2 + $0x90] ss:$52 sps:$4 sm:$0xff]   ;;  %v1428_v39 = vld [vmem:[%s1966_s2 + $0x1cc] ss:$52 sps:$4 sm:$0xff]  }
  0x22   :  { %808 = vmatpush1.bf16.msra.mxu1 %v1347_v42  ;;  %v1410_v42 = vld [vmem:[%s1966_s2 + $0x364] ss:$52 sps:$4 sm:$0xff]  }
  0x23   :  { %769 = vmatpush1.bf16.msra.mxu0 %v1302_v31  ;;  %809 = vmatprep.subr.bf16.mxu1 %v1348_v43  ;;  %v1393_v31 = vld [vmem:[%s1966_s2 + $0x228] ss:$52 sps:$4 sm:$0xff]  }
  0x24   :  { %834 = vmatprep.subr.bf16.mxu0 %v1310_v32  ;;  %v1418_v32 = vld [vmem:[%s1966_s2 + $0xf8] ss:$52 sps:$4 sm:$0xff]   ;;  %v1432_v43 = vld [vmem:[%s1966_s2 + $0x234] ss:$52 sps:$4 sm:$0xff]  }
  0x26   :  { %785 = vmatmul.mubr.bf16.vlgmr.msra.gmra.mrb[0].mxu0 %v1626_v35  ;;  %810 = vmatpush1.bf16.msra.mxu1 %v1353_v46  ;;  %v1436_v46 = vld [vmem:[%s1966_s2 + $0x29c] ss:$52 sps:$4 sm:$0xff]  }
  0x27   :  { %835 = vmatpush1.bf16.msra.mxu0 %v1308_v36  ;;  %1267 = vmatprep.mubr.msk.bf16.mxu0 %vm748_vm0, %v1557_v13  ;;  %v1399_v36 = vld [vmem:[%s1966_s2 + $0x290] ss:$52 sps:$4 sm:$0xff]  }
  0x28   :  { %836 = vmatprep.subr.bf16.mxu0 %v1316_v37  ;;  %875 = vmatprep.subr.bf16.mxu1 %v1359_v47  ;;  %v1422_v37 = vld [vmem:[%s1966_s2 + $0x160] ss:$52 sps:$4 sm:$0xff]   ;;  %v1417_v47 = vld [vmem:[%s1966_s2 + $0x30] ss:$52 sps:$4 sm:$0xff]  }
  0x29   :  { %826 = vmatmul.mubr.bf16.vlgmr.msra.gmra.mrb[0].mxu1 %v1626_v35 }
  0x2a   :  { %876 = vmatpush1.bf16.msra.mxu1 %v1357_v50  ;;  %1268 = vmatprep.mubr.msk.bf16.mxu1 %vm748_vm0, %v1557_v13  ;;  %v1421_v50 = vld [vmem:[%s1966_s2 + $0x98] ss:$52 sps:$4 sm:$0xff]  }
  0x2b   :  { %837 = vmatpush1.bf16.msra.mxu0 %v1314_v40  ;;  %877 = vmatprep.subr.bf16.mxu1 %v1362_v51  ;;  %v1405_v40 = vld [vmem:[%s1966_s2 + $0x2f8] ss:$52 sps:$4 sm:$0xff]   ;;  %v1438_v51 = vld [vmem:[%s1966_s2 + $0x300] ss:$52 sps:$4 sm:$0xff]  }
  0x2c   :  { %838 = vmatprep.subr.bf16.mxu0 %v1322_v41  ;;  %v1426_v41 = vld [vmem:[%s1966_s2 + $0x1c8] ss:$52 sps:$4 sm:$0xff]  }
  0x2e   :  { %878 = vmatpush1.bf16.msra.mxu1 %v1360_v54  ;;  %v1442_v54 = vld [vmem:[%s1966_s2 + $0x368] ss:$52 sps:$4 sm:$0xff]  }
  0x2f   :  { %839 = vmatpush1.bf16.msra.mxu0 %v1320_v44  ;;  %879 = vmatprep.subr.bf16.mxu1 %v1368_v55  ;;  %v1408_v44 = vld [vmem:[%s1966_s2 + $0x360] ss:$52 sps:$4 sm:$0xff]   ;;  %v1429_v55 = vld [vmem:[%s1966_s2 + $0x168] ss:$52 sps:$4 sm:$0xff]  }
  0x30   :  { %840 = vmatprep.subr.bf16.mxu0 %v1328_v45  ;;  %v1430_v45 = vld [vmem:[%s1966_s2 + $0x230] ss:$52 sps:$4 sm:$0xff]  }
  0x32   :  { %880 = vmatpush1.bf16.msra.mxu1 %v1366_v58  ;;  %v1445_v58 = vld [vmem:[%s1966_s2 + $0x308] ss:$52 sps:$4 sm:$0xff]  }
  0x33   :  { %841 = vmatpush1.bf16.msra.mxu0 %v1326_v48  ;;  %881 = vmatprep.subr.bf16.mxu1 %v1374_v59  ;;  %v1434_v48 = vld [vmem:[%s1966_s2 + $0x298] ss:$52 sps:$4 sm:$0xff]   ;;  %v1446_v59 = vld [vmem:[%s1966_s2 + $0x370] ss:$52 sps:$4 sm:$0xff]  }
  0x34   :  { %842 = vmatprep.subr.bf16.mxu0 %v1334_v49  ;;  %v1440_v49 = vld [vmem:[%s1966_s2 + $0x304] ss:$52 sps:$4 sm:$0xff]  }
  0x36   :  { %882 = vmatpush1.bf16.msra.mxu1 %v1372_v62 }
  0x37   :  { %843 = vmatpush1.bf16.msra.mxu0 %v1332_v52  ;;  %883 = vmatprep.subr.bf16.mxu1 %v1380_v63  ;;  %v1444_v52 = vld [vmem:[%s1966_s2 + $0x36c] ss:$52 sps:$4 sm:$0xff]  }
  0x38   :  { %844 = vmatprep.subr.bf16.mxu0 %v1340_v53  ;;  %v1425_v53 = vld [vmem:[%s1966_s2 + $0x100] ss:$52 sps:$4 sm:$0xff]  }
  0x3a   :  { %884 = vmatpush1.bf16.msra.mxu1 %v1378_v3 }
  0x3b   :  { %845 = vmatpush1.bf16.msra.mxu0 %v1338_v56  ;;  %885 = vmatprep.subr.bf16.mxu1 %v1386_v4  ;;  %v1437_v56 = vld [vmem:[%s1966_s2 + $0x238] ss:$52 sps:$4 sm:$0xff]  }
  0x3c   :  { %846 = vmatprep.subr.bf16.mxu0 %v1346_v57  ;;  %v1441_v57 = vld [vmem:[%s1966_s2 + $0x2a0] ss:$52 sps:$4 sm:$0xff]  }
  0x3e   :  { %886 = vmatpush1.bf16.msra.mxu1 %v1384_v7 }
  0x3f   :  { %847 = vmatpush1.bf16.msra.mxu0 %v1344_v60  ;;  %887 = vmatprep.subr.bf16.mxu1 %v1392_v8 }
  0x40   :  { %848 = vmatprep.subr.bf16.mxu0 %v1352_v61 }
  0x42   :  { %888 = vmatpush1.bf16.msra.mxu1 %v1390_v11 }
  0x43   :  { %849 = vmatpush1.bf16.msra.mxu0 %v1350_v0  ;;  %889 = vmatprep.subr.bf16.mxu1 %v1398_v14 }
  0x44   :  { %850 = vmatprep.subr.bf16.mxu0 %v1356_v2 }
  0x46   :  { %890 = vmatpush1.bf16.msra.mxu1 %v1396_v17 }
  0x47   :  { %851 = vmatpush1.bf16.msra.mxu0 %v1354_v5  ;;  %891 = vmatprep.subr.bf16.mxu1 %v1404_v18 }
  0x48   :  { %916 = vmatprep.subr.bf16.mxu0 %v1365_v6 }
  0x4a   :  { %867 = vmatmul.mubr.bf16.vlgmr.msra.gmra.mrb[4].mxu0 %v1626_v35  ;;  %892 = vmatpush1.bf16.msra.mxu1 %v1402_v21 }
  0x4b   :  { %917 = vmatpush1.bf16.msra.mxu0 %v1363_v9  ;;  %1269 = vmatprep.mubr.msk.bf16.mxu0 %vm748_vm0, %v1557_v13 }
  0x4c   :  { %918 = vmatprep.subr.bf16.mxu0 %v1371_v12  ;;  %957 = vmatprep.subr.bf16.mxu1 %v1413_v22 }
  0x4d   :  { %908 = vmatmul.mubr.bf16.vlgmr.msra.gmra.mrb[4].mxu1 %v1626_v35 }
  0x4e   :  { %958 = vmatpush1.bf16.msra.mxu1 %v1411_v24  ;;  %1270 = vmatprep.mubr.msk.bf16.mxu1 %vm748_vm0, %v1557_v13 }
  0x4f   :  { %919 = vmatpush1.bf16.msra.mxu0 %v1369_v15  ;;  %959 = vmatprep.subr.bf16.mxu1 %v1416_v26 }
  0x50   :  { %920 = vmatprep.subr.bf16.mxu0 %v1377_v16 }
  0x52   :  { %960 = vmatpush1.bf16.msra.mxu1 %v1414_v28 }
  0x53   :  { %921 = vmatpush1.bf16.msra.mxu0 %v1375_v19  ;;  %961 = vmatprep.subr.bf16.mxu1 %v1420_v30 }
  0x54   :  { %922 = vmatprep.subr.bf16.mxu0 %v1383_v20 }
  0x56   :  { %962 = vmatpush1.bf16.msra.mxu1 %v1418_v32 }
  0x57   :  { %923 = vmatpush1.bf16.msra.mxu0 %v1381_v23  ;;  %963 = vmatprep.subr.bf16.mxu1 %v1424_v34 }
  0x58   :  { %924 = vmatprep.subr.bf16.mxu0 %v1389_v25 }
  0x5a   :  { %964 = vmatpush1.bf16.msra.mxu1 %v1422_v37 }
  0x5b   :  { %925 = vmatpush1.bf16.msra.mxu0 %v1387_v27  ;;  %965 = vmatprep.subr.bf16.mxu1 %v1428_v39 }
  0x5c   :  { %926 = vmatprep.subr.bf16.mxu0 %v1395_v29 }
  0x5e   :  { %966 = vmatpush1.bf16.msra.mxu1 %v1426_v41 }
  0x5f   :  { %927 = vmatpush1.bf16.msra.mxu0 %v1393_v31  ;;  %967 = vmatprep.subr.bf16.mxu1 %v1432_v43 }
  0x60   :  { %928 = vmatprep.subr.bf16.mxu0 %v1401_v33 }
  0x62   :  { %968 = vmatpush1.bf16.msra.mxu1 %v1430_v45 }
  0x63   :  { %929 = vmatpush1.bf16.msra.mxu0 %v1399_v36  ;;  %969 = vmatprep.subr.bf16.mxu1 %v1436_v46 }
  0x64   :  { %930 = vmatprep.subr.bf16.mxu0 %v1407_v38 }
  0x66   :  { %970 = vmatpush1.bf16.msra.mxu1 %v1434_v48 }
  0x67   :  { %931 = vmatpush1.bf16.msra.mxu0 %v1405_v40  ;;  %971 = vmatprep.subr.bf16.mxu1 %v1440_v49 }
  0x68   :  { %932 = vmatprep.subr.bf16.mxu0 %v1410_v42 }
  0x6a   :  { %972 = vmatpush1.bf16.msra.mxu1 %v1438_v51 }
  0x6b   :  { %933 = vmatpush1.bf16.msra.mxu0 %v1408_v44  ;;  %973 = vmatprep.subr.bf16.mxu1 %v1444_v52 }
  0x6c   :  { %998 = vmatprep.subr.bf16.mxu0 %v1499_v1 }
  0x6e   :  { %949 = vmatmul.mubr.bf16.vlgmr.msra.gmra.mrb[8].mxu0 %v1626_v35  ;;  %974 = vmatpush1.bf16.msra.mxu1 %v1442_v54 }
  0x6f   :  { %999 = vmatpush1.bf16.msra.mxu0 %v1417_v47  ;;  %1271 = vmatprep.mubr.msk.bf16.mxu0 %vm748_vm0, %v1557_v13  ;;  %v1433_v13 = vld [vmem:[%s1966_s2 + $0x1d0] ss:$52 sps:$4 sm:$0xff]  }
  0x70   :  { %1000 = vmatprep.subr.bf16.mxu0 %v1499_v1 }
  0x71   :  { %990 = vmatmul.mubr.bf16.vlgmr.msra.gmra.mrb[8].mxu1 %v1626_v35 }
  0x73   :  { %1001 = vmatpush1.bf16.msra.mxu0 %v1421_v50 }
  0x74   :  { %1002 = vmatprep.subr.bf16.mxu0 %v1499_v1 }
  0x77   :  { %1003 = vmatpush1.bf16.msra.mxu0 %v1425_v53 }
  0x78   :  { %1004 = vmatprep.subr.bf16.mxu0 %v1499_v1 }
  0x7b   :  { %1005 = vmatpush1.bf16.msra.mxu0 %v1429_v55 }
  0x7c   :  { %1006 = vmatprep.subr.bf16.mxu0 %v1499_v1 }
  0x7f   :  { %1007 = vmatpush1.bf16.msra.mxu0 %v1433_v13 }
  0x80   :  { %1008 = vmatprep.subr.bf16.mxu0 %v1499_v1 }
  0x83   :  { %1009 = vmatpush1.bf16.msra.mxu0 %v1437_v56 }
  0x84   :  { %1010 = vmatprep.subr.bf16.mxu0 %v1499_v1 }
  0x87   :  { %1011 = vmatpush1.bf16.msra.mxu0 %v1441_v57 }
  0x88   :  { %1012 = vmatprep.subr.bf16.mxu0 %v1499_v1 }
  0x8b   :  { %1013 = vmatpush1.bf16.msra.mxu0 %v1445_v58 }
  0x8c   :  { %1014 = vmatprep.subr.bf16.mxu0 %v1499_v1 }
  0x8f   :  { %1015 = vmatpush1.bf16.msra.mxu0 %v1446_v59 }
  0x92   :  { %1031 = vmatmul.mubr.bf16.vlgmr.msra.gmra.mrb[12].mxu0 %v1626_v35 }
  0x99   :  { %v1912_v60 = vpop.permute.xlu0 %145 }
  0xf9   :  { %v786_v61 = vpop.f32.mrb[0].mxu0 }
  0xfa   :  { %v787_v62 = vadd.f32 %v786_v61, %v1912_v60  ;;  %v788_v63 = vpop.f32.mrb[1].mxu0 }
  0xfb   :  { %v789_v0 = vadd.f32 %v788_v63, %v1912_v60  ;;  %v790_v2 = vpop.f32.mrb[2].mxu0 }
  0xfc   :  { %v1038_v3 = vsub.f32 0.0, %v787_v62  ;;  %v791_v4 = vpop.f32.mrb[3].mxu0  ;;  %v827_v1 = vpop.f32.mrb[0].mxu1 }
  0xfd   :  { %v1039_v5 = vsub.f32 0.0, %v789_v0  ;;  %v828_v8 = vadd.f32 %v827_v1, %v1912_v60  ;;  %v829_v35 = vpop.f32.mrb[1].mxu1 }
  0xfe   :  { %v1051_v6 = vmul.f32 1.442695, %v1038_v3  ;;  %v830_v9 = vadd.f32 %v829_v35, %v1912_v60  ;;  %v831_v10 = vpop.f32.mrb[2].mxu1 }
  0xff   :  { %v1053_v7 = vmul.f32 1.442695, %v1039_v5  ;;  %v1040_v11 = vsub.f32 0.0, %v828_v8  ;;  %v832_v12 = vpop.f32.mrb[3].mxu1 }
 0x100   :  { %1447 = vpow2.f32 %v1051_v6  ;;  %v1041_v14 = vsub.f32 0.0, %v830_v9 }
 0x101   :  { %1449 = vpow2.f32 %v1053_v7  ;;  %v1055_v16 = vmul.f32 1.442695, %v1040_v11 }
 0x102   :  { %v1057_v19 = vmul.f32 1.442695, %v1041_v14 }
 0x103   :  { %1451 = vpow2.f32 %v1055_v16 }
 0x10a   :  { %v1448_v15 = vpop.eup %1447 }
 0x10b   :  { %v1450_v17 = vpop.eup %1449  ;;  %v1077_v18 = vadd.f32 1.0, %v1448_v15 }
 0x10c   :  { %v1078_v20 = vadd.f32 1.0, %v1450_v17 }
 0x10d   :  { %1453 = vrcp.f32 %v1077_v18  ;;  %v1452_v21 = vpop.eup %1451 }
 0x10e   :  { %1455 = vrcp.f32 %v1078_v20  ;;  %v1079_v23 = vadd.f32 1.0, %v1452_v21 }
 0x10f   :  { %1457 = vpow2.f32 %v1057_v19 }
 0x110   :  { %1459 = vrcp.f32 %v1079_v23 }
 0x117   :  { %v1454_v22 = vpop.eup %1453 }
 0x118   :  { %v1456_v24 = vpop.eup %1455  ;;  %v1103_v25 = vmax.f32 %v1454_v22, 0.0 }
 0x119   :  { %v1458_v26 = vpop.eup %1457  ;;  %v1104_v27 = vmax.f32 %v1456_v24, 0.0 }
 0x11a   :  { %v1116_v28 = vmin.f32 %v1103_v25, 1.0  ;;  %v1080_v29 = vadd.f32 1.0, %v1458_v26  ;;  %v1460_v41 = vpop.eup %1459 }
 0x11b   :  { %v1117_v30 = vmin.f32 %v1104_v27, 1.0  ;;  %v1105_v43 = vmax.f32 %v1460_v41, 0.0 }
 0x11c   :  { %1129 = vst [vmem:[%s1969_s3] sm:$0xff] %v1116_v28  ;;  %1461 = vrcp.f32 %v1080_v29 }
 0x11d   :  { %1130 = vst [vmem:[%s1969_s3 + $0x8] sm:$0xff] %v1117_v30  ;;  %v868_v31 = vpop.f32.mrb[4].mxu0  ;;  %v1118_v45 = vmin.f32 %v1105_v43, 1.0 }
 0x11e   :  { %v869_v32 = vadd.f32 %v868_v31, %v1912_v60  ;;  %v870_v33 = vpop.f32.mrb[5].mxu0 }
 0x11f   :  { %v871_v34 = vadd.f32 %v870_v33, %v1912_v60  ;;  %v872_v36 = vpop.f32.mrb[6].mxu0  ;;  %1131 = vst [vmem:[%s1969_s3 + $0x10] sm:$0xff] %v1118_v45 }
 0x120   :  { %v1042_v37 = vsub.f32 0.0, %v869_v32  ;;  %v873_v38 = vpop.f32.mrb[7].mxu0  ;;  %v909_v48 = vpop.f32.mrb[4].mxu1 }
 0x121   :  { %v1043_v39 = vsub.f32 0.0, %v871_v34  ;;  %v910_v49 = vadd.f32 %v909_v48, %v1912_v60  ;;  %v911_v50 = vpop.f32.mrb[5].mxu1 }
 0x122   :  { %v1059_v40 = vmul.f32 1.442695, %v1042_v37  ;;  %v912_v51 = vadd.f32 %v911_v50, %v1912_v60  ;;  %v913_v52 = vpop.f32.mrb[6].mxu1 }
 0x123   :  { %v1061_v42 = vmul.f32 1.442695, %v1043_v39  ;;  %v1044_v53 = vsub.f32 0.0, %v910_v49  ;;  %v914_v54 = vpop.f32.mrb[7].mxu1 }
 0x124   :  { %1463 = vpow2.f32 %v1059_v40  ;;  %v1045_v55 = vsub.f32 0.0, %v912_v51 }
 0x125   :  { %1465 = vpow2.f32 %v1061_v42  ;;  %v1063_v56 = vmul.f32 1.442695, %v1044_v53 }
 0x126   :  { %v1462_v44 = vpop.eup %1461  ;;  %v1065_v59 = vmul.f32 1.442695, %v1045_v55 }
 0x127   :  { %v1106_v46 = vmax.f32 %v1462_v44, 0.0  ;;  %1467 = vpow2.f32 %v1063_v56 }
 0x129   :  { %v1119_v47 = vmin.f32 %v1106_v46, 1.0 }
 0x12b   :  { %1132 = vst [vmem:[%s1969_s3 + $0x18] sm:$0xff] %v1119_v47 }
 0x12e   :  { %v1464_v13 = vpop.eup %1463 }
 0x12f   :  { %v1466_v57 = vpop.eup %1465  ;;  %v1081_v58 = vadd.f32 1.0, %v1464_v13 }
 0x130   :  { %v1082_v61 = vadd.f32 1.0, %v1466_v57 }
 0x131   :  { %1469 = vrcp.f32 %v1081_v58  ;;  %v1468_v62 = vpop.eup %1467 }
 0x132   :  { %1471 = vrcp.f32 %v1082_v61  ;;  %v1083_v0 = vadd.f32 1.0, %v1468_v62 }
 0x133   :  { %1473 = vpow2.f32 %v1065_v59 }
 0x134   :  { %1475 = vrcp.f32 %v1083_v0 }
 0x13b   :  { %v1470_v63 = vpop.eup %1469 }
 0x13c   :  { %v1472_v2 = vpop.eup %1471  ;;  %v1107_v3 = vmax.f32 %v1470_v63, 0.0 }
 0x13d   :  { %v1474_v4 = vpop.eup %1473  ;;  %v1108_v5 = vmax.f32 %v1472_v2, 0.0 }
 0x13e   :  { %v1120_v6 = vmin.f32 %v1107_v3, 1.0  ;;  %v1084_v7 = vadd.f32 1.0, %v1474_v4  ;;  %v1476_v17 = vpop.eup %1475 }
 0x13f   :  { %v1121_v1 = vmin.f32 %v1108_v5, 1.0  ;;  %v1109_v19 = vmax.f32 %v1476_v17, 0.0 }
 0x140   :  { %1133 = vst [vmem:[%s1969_s3 + $0x20] sm:$0xff] %v1120_v6  ;;  %1477 = vrcp.f32 %v1084_v7 }
 0x141   :  { %1134 = vst [vmem:[%s1969_s3 + $0x28] sm:$0xff] %v1121_v1  ;;  %v950_v8 = vpop.f32.mrb[8].mxu0  ;;  %v1122_v21 = vmin.f32 %v1109_v19, 1.0 }
 0x142   :  { %v951_v35 = vadd.f32 %v950_v8, %v1912_v60  ;;  %v952_v9 = vpop.f32.mrb[9].mxu0 }
 0x143   :  { %v953_v10 = vadd.f32 %v952_v9, %v1912_v60  ;;  %v954_v11 = vpop.f32.mrb[10].mxu0  ;;  %1135 = vst [vmem:[%s1969_s3 + $0x30] sm:$0xff] %v1122_v21 }
 0x144   :  { %v1046_v12 = vsub.f32 0.0, %v951_v35  ;;  %v955_v14 = vpop.f32.mrb[11].mxu0  ;;  %v991_v24 = vpop.f32.mrb[8].mxu1 }
 0x145   :  { %v1047_v15 = vsub.f32 0.0, %v953_v10  ;;  %v992_v25 = vadd.f32 %v991_v24, %v1912_v60  ;;  %v993_v26 = vpop.f32.mrb[9].mxu1 }
 0x146   :  { %v1067_v16 = vmul.f32 1.442695, %v1046_v12  ;;  %v994_v27 = vadd.f32 %v993_v26, %v1912_v60  ;;  %v995_v28 = vpop.f32.mrb[10].mxu1 }
 0x147   :  { %v1069_v18 = vmul.f32 1.442695, %v1047_v15  ;;  %v1048_v29 = vsub.f32 0.0, %v992_v25  ;;  %v996_v30 = vpop.f32.mrb[11].mxu1 }
 0x148   :  { %1479 = vpow2.f32 %v1067_v16  ;;  %v1049_v31 = vsub.f32 0.0, %v994_v27 }
 0x149   :  { %1481 = vpow2.f32 %v1069_v18  ;;  %v1071_v33 = vmul.f32 1.442695, %v1048_v29 }
 0x14a   :  { %v1478_v20 = vpop.eup %1477  ;;  %v1073_v37 = vmul.f32 1.442695, %v1049_v31 }
 0x14b   :  { %v1110_v22 = vmax.f32 %v1478_v20, 0.0  ;;  %1483 = vpow2.f32 %v1071_v33 }
 0x14d   :  { %v1123_v23 = vmin.f32 %v1110_v22, 1.0 }
 0x14f   :  { %1136 = vst [vmem:[%s1969_s3 + $0x38] sm:$0xff] %v1123_v23 }
 0x152   :  { %v1480_v32 = vpop.eup %1479 }
 0x153   :  { %v1482_v34 = vpop.eup %1481  ;;  %v1085_v36 = vadd.f32 1.0, %v1480_v32 }
 0x154   :  { %v1086_v38 = vadd.f32 1.0, %v1482_v34 }
 0x155   :  { %1485 = vrcp.f32 %v1085_v36  ;;  %v1484_v39 = vpop.eup %1483 }
 0x156   :  { %1487 = vrcp.f32 %v1086_v38  ;;  %v1087_v41 = vadd.f32 1.0, %v1484_v39 }
 0x157   :  { %1489 = vpow2.f32 %v1073_v37 }
 0x158   :  { %1491 = vrcp.f32 %v1087_v41 }
 0x15f   :  { %v1486_v40 = vpop.eup %1485 }
 0x160   :  { %v1488_v42 = vpop.eup %1487  ;;  %v1111_v43 = vmax.f32 %v1486_v40, 0.0 }
 0x161   :  { %v1490_v44 = vpop.eup %1489  ;;  %v1112_v45 = vmax.f32 %v1488_v42, 0.0 }
 0x162   :  { %v1124_v46 = vmin.f32 %v1111_v43, 1.0  ;;  %v1088_v47 = vadd.f32 1.0, %v1490_v44  ;;  %v1492_v13 = vpop.eup %1491 }
 0x163   :  { %v1125_v48 = vmin.f32 %v1112_v45, 1.0  ;;  %v1113_v56 = vmax.f32 %v1492_v13, 0.0 }
 0x164   :  { %1137 = vst [vmem:[%s1969_s3 + $0x40] sm:$0xff] %v1124_v46  ;;  %1493 = vrcp.f32 %v1088_v47 }
 0x165   :  { %1138 = vst [vmem:[%s1969_s3 + $0x48] sm:$0xff] %v1125_v48  ;;  %v1032_v49 = vpop.f32.mrb[12].mxu0  ;;  %v1126_v58 = vmin.f32 %v1113_v56, 1.0 }
 0x166   :  { %v1033_v50 = vadd.f32 %v1032_v49, %v1912_v60  ;;  %v1034_v51 = vpop.f32.mrb[13].mxu0 }
 0x167   :  { %v1035_v52 = vpop.f32.mrb[14].mxu0  ;;  %1139 = vst [vmem:[%s1969_s3 + $0x50] sm:$0xff] %v1126_v58 }
 0x168   :  { %v1050_v53 = vsub.f32 0.0, %v1033_v50  ;;  %v1036_v54 = vpop.f32.mrb[15].mxu0 }
 0x16a   :  { %v1075_v55 = vmul.f32 1.442695, %v1050_v53 }
 0x16c   :  { %1495 = vpow2.f32 %v1075_v55 }
 0x16e   :  { %v1494_v57 = vpop.eup %1493 }
 0x16f   :  { %v1114_v59 = vmax.f32 %v1494_v57, 0.0 }
 0x171   :  { %v1127_v61 = vmin.f32 %v1114_v59, 1.0 }
 0x173   :  { %1140 = vst [vmem:[%s1969_s3 + $0x58] sm:$0xff] %v1127_v61 }
 0x176   :  { %v1496_v60 = vpop.eup %1495 }
 0x177   :  { %v1089_v62 = vadd.f32 1.0, %v1496_v60 }
 0x179   :  { %1497 = vrcp.f32 %v1089_v62 }
 0x183   :  { %v1498_v63 = vpop.eup %1497 }
 0x184   :  { %v1115_v0 = vmax.f32 %v1498_v63, 0.0 }
 0x186   :  { %v1128_v2 = vmin.f32 %v1115_v0, 1.0 }
 0x188   :  { %1141 = vst [vmem:[%s1969_s3 + $0x60] sm:$0xff] %v1128_v2 }

</bundles_post_ra>
